<compile_context>
chip_gen: v7x
topology: tpu7x:2x2x1
jax: 0.10.0
libtpu: 0.0.40
codegen_flags: <defaults>
</compile_context>

<pallas_src>
import jax
import jax.numpy as jnp
from jax import lax
from jax.experimental import pallas as pl
from jax.experimental.pallas import tpu as pltpu


# ----------------------------------------------------------------------------
# Pallas kernel: conv3x3 -> BN -> PReLU -> conv3x3 -> BN -> residual add
# ----------------------------------------------------------------------------
def resblock_kernel(x_ref, w1_ref, s1_ref, t1_ref, a_ref,
                    w2_ref, s2_ref, t2_ref, out_ref,
                    colw_ref, acc_ref):
    _, H, W, Cp = x_ref.shape
    HW = H * W
    K = 3 * Cp                                  # contraction depth per matmul

    def fill_colw(src):
        """Width-direction im2col of `src` (H, W, Cp) into colw_ref.

        colw_ref[r, w, kx*Cp + c] = src[r-1, w+kx-1, c]   (zero outside).
        Every element of colw_ref is (re)written -> no stale data between
        the two convs or across grid steps.
        """
        zrow = jnp.zeros((1, W, K), jnp.float32)
        zcol = jnp.zeros((H, 1, Cp), jnp.float32)
        colw_ref[0:1] = zrow                    # row halo (src row -1)
        colw_ref[H + 1:H + 2] = zrow            # row halo (src row H)
        # kx = 1 (center tap) -- lane-aligned full-width store.
        colw_ref[1:H + 1, :, Cp:2 * Cp] = src
        # kx = 0 (left neighbour): dest col w reads src col w-1.
        colw_ref[1:H + 1, 1:W, 0:Cp] = src[:, 0:W - 1, :]
        colw_ref[1:H + 1, 0:1, 0:Cp] = zcol
        # kx = 2 (right neighbour): dest col w reads src col w+1.
        colw_ref[1:H + 1, 0:W - 1, 2 * Cp:3 * Cp] = src[:, 1:W, :]
        colw_ref[1:H + 1, W - 1:W, 2 * Cp:3 * Cp] = zcol

    def conv3x3(w_ref):
        """3x3 conv of whatever is in colw_ref: 3 bf16 MXU matmuls, K = 3*Cp,
        accumulated in the fp32 VMEM accumulator."""
        for ky in range(3):
            lhs = colw_ref[ky:ky + H].reshape(HW, K).astype(jnp.bfloat16)
            contrib = jnp.dot(lhs, w_ref[ky],
                              preferred_element_type=jnp.float32)
            if ky == 0:
                acc_ref[...] = contrib
            else:
                acc_ref[...] += contrib
        return acc_ref[...]

    # ---- conv1 + BN1 (conv bias folded into shift) + PReLU ----
    fill_colw(x_ref[0])
    h = conv3x3(w1_ref) * s1_ref[...] + t1_ref[...]          # fp32
    alpha = a_ref[0]                                          # SMEM scalar
    h = jnp.where(h >= 0.0, h, alpha * h)

    # ---- conv2 + BN2 ----
    fill_colw(h.reshape(H, W, Cp))
    y = conv3x3(w2_ref) * s2_ref[...] + t2_ref[...]           # fp32

    # ---- residual add (fp32), straight from the resident input block ----
    out_ref[0] = x_ref[0] + y.reshape(H, W, Cp)


# ----------------------------------------------------------------------------
# Wrapper: layout / padding / parameter folding / pallas_call
# ----------------------------------------------------------------------------
def _round_up(n, m):
    return ((n + m - 1) // m) * m


def residual_block_pallas(x_nchw, w1, b1, w2, b2, bn1, bn2, alpha, eps=1e-5):
    """x_nchw: (B, C, H, W); w*: (C, C, 3, 3) OIHW; bn*: (gamma, beta, mean, var)."""
    B, C, H, W = x_nchw.shape
    Cp = _round_up(C, 128)                       # lane-dense channel width

    # NCHW -> NHWC, zero-pad channels up to Cp (padded channels stay zero
    # end-to-end, sliced off at the end).
    x = jnp.transpose(x_nchw, (0, 2, 3, 1)).astype(jnp.float32)
    if Cp != C:
        x = jnp.pad(x, ((0, 0), (0, 0), (0, 0), (0, Cp - C)))

    def fold_bn(bias, bn):
        g, beta, mean, var = bn
        s = g / jnp.sqrt(var + eps)
        t = beta + (bias - mean) * s
        s = jnp.pad(s.astype(jnp.float32), (0, Cp - C)).reshape(1, Cp)
        t = jnp.pad(t.astype(jnp.float32), (0, Cp - C)).reshape(1, Cp)
        return s, t

    def pack_w(w):
        # OIHW (co, ci, ky, kx) -> (ky, kx, ci, co) -> pad -> (3, 3*Cp, Cp) bf16
        wt = jnp.transpose(w, (2, 3, 1, 0)).astype(jnp.float32)
        wt = jnp.pad(wt, ((0, 0), (0, 0), (0, Cp - C), (0, Cp - C)))
        return wt.reshape(3, 3 * Cp, Cp).astype(jnp.bfloat16)

    s1, t1 = fold_bn(b1, bn1)
    s2, t2 = fold_bn(b2, bn2)
    w1p, w2p = pack_w(w1), pack_w(w2)
    alpha_arr = jnp.asarray([alpha], dtype=jnp.float32)

    out_nhwc = pl.pallas_call(
        resblock_kernel,
        out_shape=jax.ShapeDtypeStruct((B, H, W, Cp), jnp.float32),
        grid=(B,),
        in_specs=[
            pl.BlockSpec((1, H, W, Cp), lambda b: (b, 0, 0, 0)),     # x block
            pl.BlockSpec((3, 3 * Cp, Cp), lambda b: (0, 0, 0)),      # w1 (resident)
            pl.BlockSpec((1, Cp), lambda b: (0, 0)),                 # BN1 scale
            pl.BlockSpec((1, Cp), lambda b: (0, 0)),                 # BN1 shift (+bias1)
            pl.BlockSpec(memory_space=pltpu.MemorySpace.SMEM),       # PReLU alpha
            pl.BlockSpec((3, 3 * Cp, Cp), lambda b: (0, 0, 0)),      # w2 (resident)
            pl.BlockSpec((1, Cp), lambda b: (0, 0)),                 # BN2 scale
            pl.BlockSpec((1, Cp), lambda b: (0, 0)),                 # BN2 shift (+bias2)
        ],
        out_specs=pl.BlockSpec((1, H, W, Cp), lambda b: (b, 0, 0, 0)),
        scratch_shapes=[
            pltpu.VMEM((H + 2, W, 3 * Cp), jnp.float32),   # width-im2col
            pltpu.VMEM((H * W, Cp), jnp.float32),          # conv accumulator
        ],
        compiler_params=pltpu.CompilerParams(
            dimension_semantics=("parallel",)),
    )(x, w1p, s1, t1, alpha_arr, w2p, s2, t2)

    return jnp.transpose(out_nhwc[..., :C], (0, 3, 1, 2))            # NCHW


# ----------------------------------------------------------------------------
# Pure-JAX reference (lax.conv) for verification
# ----------------------------------------------------------------------------
def residual_block_ref(x, w1, b1, w2, b2, bn1, bn2, alpha, eps=1e-5,
                       conv_dtype=jnp.float32):
    def conv(z, w, b):
        y = lax.conv_general_dilated(
            z.astype(conv_dtype), w.astype(conv_dtype),
            window_strides=(1, 1), padding=((1, 1), (1, 1)),
            dimension_numbers=("NCHW", "OIHW", "NCHW"),
            preferred_element_type=jnp.float32)
        return y + b[None, :, None, None]

    def bn(z, p):
        g, beta, m, v = p
        return (z - m[None, :, None, None]) / jnp.sqrt(v[None, :, None, None] + eps) \
               * g[None, :, None, None] + beta[None, :, None, None]

    h = bn(conv(x, w1, b1), bn1)
    h = jnp.where(h >= 0, h, alpha * h)
    y = bn(conv(h, w2, b2), bn2)
    return x + y


if __name__ == "__main__":
    B, C, H, W = 2, 4, 16, 16
    key = jax.random.PRNGKey(0)
    ks = jax.random.split(key, 13)

    x = jax.random.normal(ks[0], (B, C, H, W), jnp.float32)

    # Conv params (OIHW, like PyTorch).
    w1 = jax.random.normal(ks[1], (C, C, 3, 3), jnp.float32) * 0.1
    b1 = jax.random.normal(ks[2], (C,), jnp.float32) * 0.1
    w2 = jax.random.normal(ks[3], (C, C, 3, 3), jnp.float32) * 0.1
    b2 = jax.random.normal(ks[4], (C,), jnp.float32) * 0.1

    # Non-trivial eval-mode BatchNorm statistics so the scale/shift folding is
    # actually exercised (PyTorch defaults would make BN a near-identity).
    eps = 1e-5
    bn1 = (1.0 + 0.2 * jax.random.normal(ks[5], (C,)),        # gamma
           0.1 * jax.random.normal(ks[6], (C,)),              # beta
           0.1 * jax.random.normal(ks[7], (C,)),              # running_mean
           1.0 + 0.5 * jax.random.uniform(ks[8], (C,)))       # running_var
    bn2 = (1.0 + 0.2 * jax.random.normal(ks[9], (C,)),
           0.1 * jax.random.normal(ks[10], (C,)),
           0.1 * jax.random.normal(ks[11], (C,)),
           1.0 + 0.5 * jax.random.uniform(ks[12], (C,)))

    alpha = 0.25                                              # PReLU default

    out = residual_block_pallas(x, w1, b1, w2, b2, bn1, bn2, alpha, eps)
    out = jax.block_until_ready(out)

    # Precision-matched reference (bf16 MXU operands, fp32 accumulate) and a
    # full-fp32 sanity reference.
    ref_bf16 = residual_block_ref(x, w1, b1, w2, b2, bn1, bn2, alpha, eps,
                                  conv_dtype=jnp.bfloat16)
    ref_f32 = residual_block_ref(x, w1, b1, w2, b2, bn1, bn2, alpha, eps,
                                 conv_dtype=jnp.float32)

    assert out.shape == (B, C, H, W)
    err_bf16 = float(jnp.max(jnp.abs(out - ref_bf16)))
    err_f32 = float(jnp.max(jnp.abs(out - ref_f32)))
    assert err_bf16 < 5e-3, f"bf16-matched max abs err {err_bf16}"
    assert err_f32 < 5e-2, f"fp32 max abs err {err_f32}"
    print("KERNEL_OK")
</pallas_src>

<mosaic_0001>
module attributes {stable_mosaic.version = 11 : i64} {
  func.func @resblock_kernel(%arg0: i32, %arg1: memref<1x16x16x128xf32, #tpu.memory_space<vmem>>, %arg2: memref<3x384x128xbf16, #tpu.memory_space<vmem>>, %arg3: memref<1x128xf32, #tpu.memory_space<vmem>>, %arg4: memref<1x128xf32, #tpu.memory_space<vmem>>, %arg5: memref<1xf32, #tpu.memory_space<smem>>, %arg6: memref<3x384x128xbf16, #tpu.memory_space<vmem>>, %arg7: memref<1x128xf32, #tpu.memory_space<vmem>>, %arg8: memref<1x128xf32, #tpu.memory_space<vmem>>, %arg9: memref<1x16x16x128xf32, #tpu.memory_space<vmem>>, %arg10: memref<18x16x384xf32, #tpu.memory_space<vmem>>, %arg11: memref<256x128xf32, #tpu.memory_space<vmem>>) attributes {dimension_semantics = [#tpu.dimension_semantics<parallel>], iteration_bounds = array<i64: 2>, scalar_prefetch = 0 : i64, scratch_operands = 2 : i64, tpu.core_type = #tpu.core_type<tc>, window_params = [{transform_indices = @transform_0, window_bounds = array<i64: 1, 16, 16, 128>}, {pipeline_mode = #tpu.pipeline_mode<synchronous>, transform_indices = @transform_1, window_bounds = array<i64: 3, 384, 128>}, {pipeline_mode = #tpu.pipeline_mode<synchronous>, transform_indices = @transform_2, window_bounds = array<i64: 1, 128>}, {pipeline_mode = #tpu.pipeline_mode<synchronous>, transform_indices = @transform_3, window_bounds = array<i64: 1, 128>}, {transform_indices = @transform_4, window_bounds = array<i64: 1>}, {pipeline_mode = #tpu.pipeline_mode<synchronous>, transform_indices = @transform_5, window_bounds = array<i64: 3, 384, 128>}, {pipeline_mode = #tpu.pipeline_mode<synchronous>, transform_indices = @transform_6, window_bounds = array<i64: 1, 128>}, {pipeline_mode = #tpu.pipeline_mode<synchronous>, transform_indices = @transform_7, window_bounds = array<i64: 1, 128>}, {transform_indices = @transform_8, window_bounds = array<i64: 1, 16, 16, 128>}]} {
    %c0 = arith.constant 0 : index
    %c0_0 = arith.constant 0 : index
    %c0_1 = arith.constant 0 : index
    %c0_2 = arith.constant 0 : index
    %0 = vector.load %arg1[%c0, %c0_0, %c0_1, %c0_2] : memref<1x16x16x128xf32, #tpu.memory_space<vmem>>, vector<1x16x16x128xf32>
    %1 = vector.shape_cast %0 : vector<1x16x16x128xf32> to vector<16x16x128xf32>
    %cst = arith.constant 0.000000e+00 : f32
    %2 = vector.broadcast %cst : f32 to vector<1x16x384xf32>
    %cst_3 = arith.constant 0.000000e+00 : f32
    %3 = vector.broadcast %cst_3 : f32 to vector<16x1x128xf32>
    %c0_4 = arith.constant 0 : index
    %c0_5 = arith.constant 0 : index
    %c0_6 = arith.constant 0 : index
    %4 = vector.load %arg10[%c0_4, %c0_5, %c0_6] : memref<18x16x384xf32, #tpu.memory_space<vmem>>, vector<1x16x384xf32>
    tpu.vector_store %arg10[%c0_4, %c0_5, %c0_6], %2 {strides = array<i32>} : memref<18x16x384xf32, #tpu.memory_space<vmem>>, vector<1x16x384xf32>,
    %c17 = arith.constant 17 : index
    %c0_7 = arith.constant 0 : index
    %c0_8 = arith.constant 0 : index
    %5 = vector.load %arg10[%c17, %c0_7, %c0_8] : memref<18x16x384xf32, #tpu.memory_space<vmem>>, vector<1x16x384xf32>
    tpu.vector_store %arg10[%c17, %c0_7, %c0_8], %2 {strides = array<i32>} : memref<18x16x384xf32, #tpu.memory_space<vmem>>, vector<1x16x384xf32>,
    %c1 = arith.constant 1 : index
    %c0_9 = arith.constant 0 : index
    %c128 = arith.constant 128 : index
    %6 = vector.load %arg10[%c1, %c0_9, %c128] : memref<18x16x384xf32, #tpu.memory_space<vmem>>, vector<16x16x128xf32>
    tpu.vector_store %arg10[%c1, %c0_9, %c128], %1 {strides = array<i32>} : memref<18x16x384xf32, #tpu.memory_space<vmem>>, vector<16x16x128xf32>,
    %7 = vector.extract_strided_slice %1 {offsets = [0, 0, 0], sizes = [16, 15, 128], strides = [1, 1, 1]} : vector<16x16x128xf32> to vector<16x15x128xf32>
    %c1_10 = arith.constant 1 : index
    %c1_11 = arith.constant 1 : index
    %c0_12 = arith.constant 0 : index
    %8 = vector.load %arg10[%c1_10, %c1_11, %c0_12] : memref<18x16x384xf32, #tpu.memory_space<vmem>>, vector<16x15x128xf32>
    tpu.vector_store %arg10[%c1_10, %c1_11, %c0_12], %7 {strides = array<i32>} : memref<18x16x384xf32, #tpu.memory_space<vmem>>, vector<16x15x128xf32>,
    %c1_13 = arith.constant 1 : index
    %c0_14 = arith.constant 0 : index
    %c0_15 = arith.constant 0 : index
    %9 = vector.load %arg10[%c1_13, %c0_14, %c0_15] : memref<18x16x384xf32, #tpu.memory_space<vmem>>, vector<16x1x128xf32>
    tpu.vector_store %arg10[%c1_13, %c0_14, %c0_15], %3 {strides = array<i32>} : memref<18x16x384xf32, #tpu.memory_space<vmem>>, vector<16x1x128xf32>,
    %10 = vector.extract_strided_slice %1 {offsets = [0, 1, 0], sizes = [16, 15, 128], strides = [1, 1, 1]} : vector<16x16x128xf32> to vector<16x15x128xf32>
    %c1_16 = arith.constant 1 : index
    %c0_17 = arith.constant 0 : index
    %c256 = arith.constant 256 : index
    %11 = vector.load %arg10[%c1_16, %c0_17, %c256] : memref<18x16x384xf32, #tpu.memory_space<vmem>>, vector<16x15x128xf32>
    tpu.vector_store %arg10[%c1_16, %c0_17, %c256], %10 {strides = array<i32>} : memref<18x16x384xf32, #tpu.memory_space<vmem>>, vector<16x15x128xf32>,
    %c1_18 = arith.constant 1 : index
    %c15 = arith.constant 15 : index
    %c256_19 = arith.constant 256 : index
    %12 = vector.load %arg10[%c1_18, %c15, %c256_19] : memref<18x16x384xf32, #tpu.memory_space<vmem>>, vector<16x1x128xf32>
    tpu.vector_store %arg10[%c1_18, %c15, %c256_19], %3 {strides = array<i32>} : memref<18x16x384xf32, #tpu.memory_space<vmem>>, vector<16x1x128xf32>,
    %c0_20 = arith.constant 0 : index
    %c0_21 = arith.constant 0 : index
    %c0_22 = arith.constant 0 : index
    %13 = vector.load %arg10[%c0_20, %c0_21, %c0_22] : memref<18x16x384xf32, #tpu.memory_space<vmem>>, vector<16x16x384xf32>
    %14 = vector.shape_cast %13 : vector<16x16x384xf32> to vector<256x384xf32>
    %15 = arith.truncf %14 : vector<256x384xf32> to vector<256x384xbf16>
    %c0_23 = arith.constant 0 : index
    %c0_24 = arith.constant 0 : index
    %c0_25 = arith.constant 0 : index
    %16 = vector.load %arg2[%c0_23, %c0_24, %c0_25] : memref<3x384x128xbf16, #tpu.memory_space<vmem>>, vector<1x384x128xbf16>
    %17 = vector.shape_cast %16 : vector<1x384x128xbf16> to vector<384x128xbf16>
    %cst_26 = arith.constant dense<0.000000e+00> : vector<256x128xf32>
    %18 = tpu.matmul %15, %17, %cst_26 {dimension_numbers = #tpu.dot_dimension_numbers<[1], [0], [0], [1], [0, 0, 1, 1], [], []>} : vector<256x384xbf16>, vector<384x128xbf16>, vector<256x128xf32> -> vector<256x128xf32>
    %c0_27 = arith.constant 0 : index
    %c0_28 = arith.constant 0 : index
    %19 = vector.load %arg11[%c0_27, %c0_28] : memref<256x128xf32, #tpu.memory_space<vmem>>, vector<256x128xf32>
    tpu.vector_store %arg11[%c0_27, %c0_28], %18 {strides = array<i32>} : memref<256x128xf32, #tpu.memory_space<vmem>>, vector<256x128xf32>,
    %c1_29 = arith.constant 1 : index
    %c0_30 = arith.constant 0 : index
    %c0_31 = arith.constant 0 : index
    %20 = vector.load %arg10[%c1_29, %c0_30, %c0_31] : memref<18x16x384xf32, #tpu.memory_space<vmem>>, vector<16x16x384xf32>
    %21 = vector.shape_cast %20 : vector<16x16x384xf32> to vector<256x384xf32>
    %22 = arith.truncf %21 : vector<256x384xf32> to vector<256x384xbf16>
    %c1_32 = arith.constant 1 : index
    %c0_33 = arith.constant 0 : index
    %c0_34 = arith.constant 0 : index
    %23 = vector.load %arg2[%c1_32, %c0_33, %c0_34] : memref<3x384x128xbf16, #tpu.memory_space<vmem>>, vector<1x384x128xbf16>
    %24 = vector.shape_cast %23 : vector<1x384x128xbf16> to vector<384x128xbf16>
    %cst_35 = arith.constant dense<0.000000e+00> : vector<256x128xf32>
    %25 = tpu.matmul %22, %24, %cst_35 {dimension_numbers = #tpu.dot_dimension_numbers<[1], [0], [0], [1], [0, 0, 1, 1], [], []>} : vector<256x384xbf16>, vector<384x128xbf16>, vector<256x128xf32> -> vector<256x128xf32>
    %c0_36 = arith.constant 0 : index
    %c0_37 = arith.constant 0 : index
    %26 = vector.load %arg11[%c0_36, %c0_37] : memref<256x128xf32, #tpu.memory_space<vmem>>, vector<256x128xf32>
    %27 = arith.addf %26, %25 : vector<256x128xf32>
    %c0_38 = arith.constant 0 : index
    %c0_39 = arith.constant 0 : index
    %28 = vector.load %arg11[%c0_38, %c0_39] : memref<256x128xf32, #tpu.memory_space<vmem>>, vector<256x128xf32>
    tpu.vector_store %arg11[%c0_38, %c0_39], %27 {strides = array<i32>} : memref<256x128xf32, #tpu.memory_space<vmem>>, vector<256x128xf32>,
    %c2 = arith.constant 2 : index
    %c0_40 = arith.constant 0 : index
    %c0_41 = arith.constant 0 : index
    %29 = vector.load %arg10[%c2, %c0_40, %c0_41] : memref<18x16x384xf32, #tpu.memory_space<vmem>>, vector<16x16x384xf32>
    %30 = vector.shape_cast %29 : vector<16x16x384xf32> to vector<256x384xf32>
    %31 = arith.truncf %30 : vector<256x384xf32> to vector<256x384xbf16>
    %c2_42 = arith.constant 2 : index
    %c0_43 = arith.constant 0 : index
    %c0_44 = arith.constant 0 : index
    %32 = vector.load %arg2[%c2_42, %c0_43, %c0_44] : memref<3x384x128xbf16, #tpu.memory_space<vmem>>, vector<1x384x128xbf16>
    %33 = vector.shape_cast %32 : vector<1x384x128xbf16> to vector<384x128xbf16>
    %cst_45 = arith.constant dense<0.000000e+00> : vector<256x128xf32>
    %34 = tpu.matmul %31, %33, %cst_45 {dimension_numbers = #tpu.dot_dimension_numbers<[1], [0], [0], [1], [0, 0, 1, 1], [], []>} : vector<256x384xbf16>, vector<384x128xbf16>, vector<256x128xf32> -> vector<256x128xf32>
    %c0_46 = arith.constant 0 : index
    %c0_47 = arith.constant 0 : index
    %35 = vector.load %arg11[%c0_46, %c0_47] : memref<256x128xf32, #tpu.memory_space<vmem>>, vector<256x128xf32>
    %36 = arith.addf %35, %34 : vector<256x128xf32>
    %c0_48 = arith.constant 0 : index
    %c0_49 = arith.constant 0 : index
    %37 = vector.load %arg11[%c0_48, %c0_49] : memref<256x128xf32, #tpu.memory_space<vmem>>, vector<256x128xf32>
    tpu.vector_store %arg11[%c0_48, %c0_49], %36 {strides = array<i32>} : memref<256x128xf32, #tpu.memory_space<vmem>>, vector<256x128xf32>,
    %c0_50 = arith.constant 0 : index
    %c0_51 = arith.constant 0 : index
    %38 = vector.load %arg11[%c0_50, %c0_51] : memref<256x128xf32, #tpu.memory_space<vmem>>, vector<256x128xf32>
    %c0_52 = arith.constant 0 : index
    %c0_53 = arith.constant 0 : index
    %39 = vector.load %arg3[%c0_52, %c0_53] : memref<1x128xf32, #tpu.memory_space<vmem>>, vector<1x128xf32>
    %40 = vector.broadcast %39 : vector<1x128xf32> to vector<256x128xf32>
    %41 = arith.mulf %38, %40 : vector<256x128xf32>
    %c0_54 = arith.constant 0 : index
    %c0_55 = arith.constant 0 : index
    %42 = vector.load %arg4[%c0_54, %c0_55] : memref<1x128xf32, #tpu.memory_space<vmem>>, vector<1x128xf32>
    %43 = vector.broadcast %42 : vector<1x128xf32> to vector<256x128xf32>
    %44 = arith.addf %41, %43 : vector<256x128xf32>
    %c0_56 = arith.constant 0 : index
    %45 = memref.load %arg5[%c0_56] : memref<1xf32, #tpu.memory_space<smem>>
    %cst_57 = arith.constant 0.000000e+00 : f32
    %46 = vector.broadcast %cst_57 : f32 to vector<256x128xf32>
    %47 = arith.cmpf oge, %44, %46 : vector<256x128xf32>
    %48 = vector.broadcast %45 : f32 to vector<256x128xf32>
    %49 = arith.mulf %48, %44 : vector<256x128xf32>
    %50 = arith.select %47, %44, %49 : vector<256x128xi1>, vector<256x128xf32>
    %51 = vector.shape_cast %50 : vector<256x128xf32> to vector<16x16x128xf32>
    %cst_58 = arith.constant 0.000000e+00 : f32
    %52 = vector.broadcast %cst_58 : f32 to vector<1x16x384xf32>
    %cst_59 = arith.constant 0.000000e+00 : f32
    %53 = vector.broadcast %cst_59 : f32 to vector<16x1x128xf32>
    %c0_60 = arith.constant 0 : index
    %c0_61 = arith.constant 0 : index
    %c0_62 = arith.constant 0 : index
    %54 = vector.load %arg10[%c0_60, %c0_61, %c0_62] : memref<18x16x384xf32, #tpu.memory_space<vmem>>, vector<1x16x384xf32>
    tpu.vector_store %arg10[%c0_60, %c0_61, %c0_62], %52 {strides = array<i32>} : memref<18x16x384xf32, #tpu.memory_space<vmem>>, vector<1x16x384xf32>,
    %c17_63 = arith.constant 17 : index
    %c0_64 = arith.constant 0 : index
    %c0_65 = arith.constant 0 : index
    %55 = vector.load %arg10[%c17_63, %c0_64, %c0_65] : memref<18x16x384xf32, #tpu.memory_space<vmem>>, vector<1x16x384xf32>
    tpu.vector_store %arg10[%c17_63, %c0_64, %c0_65], %52 {strides = array<i32>} : memref<18x16x384xf32, #tpu.memory_space<vmem>>, vector<1x16x384xf32>,
    %c1_66 = arith.constant 1 : index
    %c0_67 = arith.constant 0 : index
    %c128_68 = arith.constant 128 : index
    %56 = vector.load %arg10[%c1_66, %c0_67, %c128_68] : memref<18x16x384xf32, #tpu.memory_space<vmem>>, vector<16x16x128xf32>
    tpu.vector_store %arg10[%c1_66, %c0_67, %c128_68], %51 {strides = array<i32>} : memref<18x16x384xf32, #tpu.memory_space<vmem>>, vector<16x16x128xf32>,
    %57 = vector.extract_strided_slice %51 {offsets = [0, 0, 0], sizes = [16, 15, 128], strides = [1, 1, 1]} : vector<16x16x128xf32> to vector<16x15x128xf32>
    %c1_69 = arith.constant 1 : index
    %c1_70 = arith.constant 1 : index
    %c0_71 = arith.constant 0 : index
    %58 = vector.load %arg10[%c1_69, %c1_70, %c0_71] : memref<18x16x384xf32, #tpu.memory_space<vmem>>, vector<16x15x128xf32>
    tpu.vector_store %arg10[%c1_69, %c1_70, %c0_71], %57 {strides = array<i32>} : memref<18x16x384xf32, #tpu.memory_space<vmem>>, vector<16x15x128xf32>,
    %c1_72 = arith.constant 1 : index
    %c0_73 = arith.constant 0 : index
    %c0_74 = arith.constant 0 : index
    %59 = vector.load %arg10[%c1_72, %c0_73, %c0_74] : memref<18x16x384xf32, #tpu.memory_space<vmem>>, vector<16x1x128xf32>
    tpu.vector_store %arg10[%c1_72, %c0_73, %c0_74], %53 {strides = array<i32>} : memref<18x16x384xf32, #tpu.memory_space<vmem>>, vector<16x1x128xf32>,
    %60 = vector.extract_strided_slice %51 {offsets = [0, 1, 0], sizes = [16, 15, 128], strides = [1, 1, 1]} : vector<16x16x128xf32> to vector<16x15x128xf32>
    %c1_75 = arith.constant 1 : index
    %c0_76 = arith.constant 0 : index
    %c256_77 = arith.constant 256 : index
    %61 = vector.load %arg10[%c1_75, %c0_76, %c256_77] : memref<18x16x384xf32, #tpu.memory_space<vmem>>, vector<16x15x128xf32>
    tpu.vector_store %arg10[%c1_75, %c0_76, %c256_77], %60 {strides = array<i32>} : memref<18x16x384xf32, #tpu.memory_space<vmem>>, vector<16x15x128xf32>,
    %c1_78 = arith.constant 1 : index
    %c15_79 = arith.constant 15 : index
    %c256_80 = arith.constant 256 : index
    %62 = vector.load %arg10[%c1_78, %c15_79, %c256_80] : memref<18x16x384xf32, #tpu.memory_space<vmem>>, vector<16x1x128xf32>
    tpu.vector_store %arg10[%c1_78, %c15_79, %c256_80], %53 {strides = array<i32>} : memref<18x16x384xf32, #tpu.memory_space<vmem>>, vector<16x1x128xf32>,
    %c0_81 = arith.constant 0 : index
    %c0_82 = arith.constant 0 : index
    %c0_83 = arith.constant 0 : index
    %63 = vector.load %arg10[%c0_81, %c0_82, %c0_83] : memref<18x16x384xf32, #tpu.memory_space<vmem>>, vector<16x16x384xf32>
    %64 = vector.shape_cast %63 : vector<16x16x384xf32> to vector<256x384xf32>
    %65 = arith.truncf %64 : vector<256x384xf32> to vector<256x384xbf16>
    %c0_84 = arith.constant 0 : index
    %c0_85 = arith.constant 0 : index
    %c0_86 = arith.constant 0 : index
    %66 = vector.load %arg6[%c0_84, %c0_85, %c0_86] : memref<3x384x128xbf16, #tpu.memory_space<vmem>>, vector<1x384x128xbf16>
    %67 = vector.shape_cast %66 : vector<1x384x128xbf16> to vector<384x128xbf16>
    %cst_87 = arith.constant dense<0.000000e+00> : vector<256x128xf32>
    %68 = tpu.matmul %65, %67, %cst_87 {dimension_numbers = #tpu.dot_dimension_numbers<[1], [0], [0], [1], [0, 0, 1, 1], [], []>} : vector<256x384xbf16>, vector<384x128xbf16>, vector<256x128xf32> -> vector<256x128xf32>
    %c0_88 = arith.constant 0 : index
    %c0_89 = arith.constant 0 : index
    %69 = vector.load %arg11[%c0_88, %c0_89] : memref<256x128xf32, #tpu.memory_space<vmem>>, vector<256x128xf32>
    tpu.vector_store %arg11[%c0_88, %c0_89], %68 {strides = array<i32>} : memref<256x128xf32, #tpu.memory_space<vmem>>, vector<256x128xf32>,
    %c1_90 = arith.constant 1 : index
    %c0_91 = arith.constant 0 : index
    %c0_92 = arith.constant 0 : index
    %70 = vector.load %arg10[%c1_90, %c0_91, %c0_92] : memref<18x16x384xf32, #tpu.memory_space<vmem>>, vector<16x16x384xf32>
    %71 = vector.shape_cast %70 : vector<16x16x384xf32> to vector<256x384xf32>
    %72 = arith.truncf %71 : vector<256x384xf32> to vector<256x384xbf16>
    %c1_93 = arith.constant 1 : index
    %c0_94 = arith.constant 0 : index
    %c0_95 = arith.constant 0 : index
    %73 = vector.load %arg6[%c1_93, %c0_94, %c0_95] : memref<3x384x128xbf16, #tpu.memory_space<vmem>>, vector<1x384x128xbf16>
    %74 = vector.shape_cast %73 : vector<1x384x128xbf16> to vector<384x128xbf16>
    %cst_96 = arith.constant dense<0.000000e+00> : vector<256x128xf32>
    %75 = tpu.matmul %72, %74, %cst_96 {dimension_numbers = #tpu.dot_dimension_numbers<[1], [0], [0], [1], [0, 0, 1, 1], [], []>} : vector<256x384xbf16>, vector<384x128xbf16>, vector<256x128xf32> -> vector<256x128xf32>
    %c0_97 = arith.constant 0 : index
    %c0_98 = arith.constant 0 : index
    %76 = vector.load %arg11[%c0_97, %c0_98] : memref<256x128xf32, #tpu.memory_space<vmem>>, vector<256x128xf32>
    %77 = arith.addf %76, %75 : vector<256x128xf32>
    %c0_99 = arith.constant 0 : index
    %c0_100 = arith.constant 0 : index
    %78 = vector.load %arg11[%c0_99, %c0_100] : memref<256x128xf32, #tpu.memory_space<vmem>>, vector<256x128xf32>
    tpu.vector_store %arg11[%c0_99, %c0_100], %77 {strides = array<i32>} : memref<256x128xf32, #tpu.memory_space<vmem>>, vector<256x128xf32>,
    %c2_101 = arith.constant 2 : index
    %c0_102 = arith.constant 0 : index
    %c0_103 = arith.constant 0 : index
    %79 = vector.load %arg10[%c2_101, %c0_102, %c0_103] : memref<18x16x384xf32, #tpu.memory_space<vmem>>, vector<16x16x384xf32>
    %80 = vector.shape_cast %79 : vector<16x16x384xf32> to vector<256x384xf32>
    %81 = arith.truncf %80 : vector<256x384xf32> to vector<256x384xbf16>
    %c2_104 = arith.constant 2 : index
    %c0_105 = arith.constant 0 : index
    %c0_106 = arith.constant 0 : index
    %82 = vector.load %arg6[%c2_104, %c0_105, %c0_106] : memref<3x384x128xbf16, #tpu.memory_space<vmem>>, vector<1x384x128xbf16>
    %83 = vector.shape_cast %82 : vector<1x384x128xbf16> to vector<384x128xbf16>
    %cst_107 = arith.constant dense<0.000000e+00> : vector<256x128xf32>
    %84 = tpu.matmul %81, %83, %cst_107 {dimension_numbers = #tpu.dot_dimension_numbers<[1], [0], [0], [1], [0, 0, 1, 1], [], []>} : vector<256x384xbf16>, vector<384x128xbf16>, vector<256x128xf32> -> vector<256x128xf32>
    %c0_108 = arith.constant 0 : index
    %c0_109 = arith.constant 0 : index
    %85 = vector.load %arg11[%c0_108, %c0_109] : memref<256x128xf32, #tpu.memory_space<vmem>>, vector<256x128xf32>
    %86 = arith.addf %85, %84 : vector<256x128xf32>
    %c0_110 = arith.constant 0 : index
    %c0_111 = arith.constant 0 : index
    %87 = vector.load %arg11[%c0_110, %c0_111] : memref<256x128xf32, #tpu.memory_space<vmem>>, vector<256x128xf32>
    tpu.vector_store %arg11[%c0_110, %c0_111], %86 {strides = array<i32>} : memref<256x128xf32, #tpu.memory_space<vmem>>, vector<256x128xf32>,
    %c0_112 = arith.constant 0 : index
    %c0_113 = arith.constant 0 : index
    %88 = vector.load %arg11[%c0_112, %c0_113] : memref<256x128xf32, #tpu.memory_space<vmem>>, vector<256x128xf32>
    %c0_114 = arith.constant 0 : index
    %c0_115 = arith.constant 0 : index
    %89 = vector.load %arg7[%c0_114, %c0_115] : memref<1x128xf32, #tpu.memory_space<vmem>>, vector<1x128xf32>
    %90 = vector.broadcast %89 : vector<1x128xf32> to vector<256x128xf32>
    %91 = arith.mulf %88, %90 : vector<256x128xf32>
    %c0_116 = arith.constant 0 : index
    %c0_117 = arith.constant 0 : index
    %92 = vector.load %arg8[%c0_116, %c0_117] : memref<1x128xf32, #tpu.memory_space<vmem>>, vector<1x128xf32>
    %93 = vector.broadcast %92 : vector<1x128xf32> to vector<256x128xf32>
    %94 = arith.addf %91, %93 : vector<256x128xf32>
    %c0_118 = arith.constant 0 : index
    %c0_119 = arith.constant 0 : index
    %c0_120 = arith.constant 0 : index
    %c0_121 = arith.constant 0 : index
    %95 = vector.load %arg1[%c0_118, %c0_119, %c0_120, %c0_121] : memref<1x16x16x128xf32, #tpu.memory_space<vmem>>, vector<1x16x16x128xf32>
    %96 = vector.shape_cast %95 : vector<1x16x16x128xf32> to vector<16x16x128xf32>
    %97 = vector.shape_cast %94 : vector<256x128xf32> to vector<16x16x128xf32>
    %98 = arith.addf %96, %97 : vector<16x16x128xf32>
    %c0_122 = arith.constant 0 : index
    %c0_123 = arith.constant 0 : index
    %c0_124 = arith.constant 0 : index
    %c0_125 = arith.constant 0 : index
    %99 = vector.load %arg9[%c0_122, %c0_123, %c0_124, %c0_125] : memref<1x16x16x128xf32, #tpu.memory_space<vmem>>, vector<1x16x16x128xf32>
    %100 = vector.shape_cast %99 : vector<1x16x16x128xf32> to vector<16x16x128xf32>
    %101 = vector.shape_cast %98 : vector<16x16x128xf32> to vector<1x16x16x128xf32>
    tpu.vector_store %arg9[%c0_122, %c0_123, %c0_124, %c0_125], %101 {strides = array<i32>} : memref<1x16x16x128xf32, #tpu.memory_space<vmem>>, vector<1x16x16x128xf32>,
    return
  }
  func.func @transform_0(%arg0: i32) -> (i32, i32, i32, i32) {
    %c0_i32 = arith.constant 0 : i32
    %c0_i32_0 = arith.constant 0 : i32
    %c0_i32_1 = arith.constant 0 : i32
    %c0_i32_2 = arith.constant 0 : i32
    return %arg0, %c0_i32, %c0_i32_0, %c0_i32_1 : i32, i32, i32, i32
  }
  func.func @transform_1(%arg0: i32) -> (i32, i32, i32) {
    %c0_i32 = arith.constant 0 : i32
    %c0_i32_0 = arith.constant 0 : i32
    %c0_i32_1 = arith.constant 0 : i32
    %c0_i32_2 = arith.constant 0 : i32
    return %c0_i32, %c0_i32_0, %c0_i32_1 : i32, i32, i32
  }
  func.func @transform_2(%arg0: i32) -> (i32, i32) {
    %c0_i32 = arith.constant 0 : i32
    %c0_i32_0 = arith.constant 0 : i32
    %c0_i32_1 = arith.constant 0 : i32
    return %c0_i32, %c0_i32_0 : i32, i32
  }
  func.func @transform_3(%arg0: i32) -> (i32, i32) {
    %c0_i32 = arith.constant 0 : i32
    %c0_i32_0 = arith.constant 0 : i32
    %c0_i32_1 = arith.constant 0 : i32
    return %c0_i32, %c0_i32_0 : i32, i32
  }
  func.func @transform_4(%arg0: i32) -> i32 {
    %c0_i32 = arith.constant 0 : i32
    %c0_i32_0 = arith.constant 0 : i32
    return %c0_i32 : i32
  }
  func.func @transform_5(%arg0: i32) -> (i32, i32, i32) {
    %c0_i32 = arith.constant 0 : i32
    %c0_i32_0 = arith.constant 0 : i32
    %c0_i32_1 = arith.constant 0 : i32
    %c0_i32_2 = arith.constant 0 : i32
    return %c0_i32, %c0_i32_0, %c0_i32_1 : i32, i32, i32
  }
  func.func @transform_6(%arg0: i32) -> (i32, i32) {
    %c0_i32 = arith.constant 0 : i32
    %c0_i32_0 = arith.constant 0 : i32
    %c0_i32_1 = arith.constant 0 : i32
    return %c0_i32, %c0_i32_0 : i32, i32
  }
  func.func @transform_7(%arg0: i32) -> (i32, i32) {
    %c0_i32 = arith.constant 0 : i32
    %c0_i32_0 = arith.constant 0 : i32
    %c0_i32_1 = arith.constant 0 : i32
    return %c0_i32, %c0_i32_0 : i32, i32
  }
  func.func @transform_8(%arg0: i32) -> (i32, i32, i32, i32) {
    %c0_i32 = arith.constant 0 : i32
    %c0_i32_0 = arith.constant 0 : i32
    %c0_i32_1 = arith.constant 0 : i32
    %c0_i32_2 = arith.constant 0 : i32
    return %arg0, %c0_i32, %c0_i32_0, %c0_i32_1 : i32, i32, i32, i32
  }
}

</mosaic_0001>

<bundles_post_ra>
// kernel: tpu_custom_call.1
= control target key start
LH: loop header
LB: loop body
LE: loop exit
PB: predicated region body
PF: predicated region fallthrough
CT: control target
= control target key end

     0   :  { %s10142_s0 = inlined_call_operand.hbm [shape: f32[2,16,16,128], index: 0, kind: input, shape index: {}]   ;;  %s10143_s1 = inlined_call_operand.hbm [shape: bf16[3,384,128], index: 1, kind: input, shape index: {}]   ;;  %s10144_s2 = inlined_call_operand.vmem [shape: f32[1,128], index: 2, kind: input, shape index: {}]   ;;  %s10145_s3 = inlined_call_operand.vmem [shape: f32[1,128], index: 3, kind: input, shape index: {}]   ;;  %s10146_s4 = inlined_call_operand.<no memory space> [shape: f32[1], index: 4, kind: input, shape index: {}]   ;;  %s10147_s5 = inlined_call_operand.hbm [shape: bf16[3,384,128], index: 5, kind: input, shape index: {}]   ;;  %s10148_s6 = inlined_call_operand.vmem [shape: f32[1,128], index: 6, kind: input, shape index: {}]   ;;  %s10149_s7 = inlined_call_operand.vmem [shape: f32[1,128], index: 7, kind: input, shape index: {}]   ;;  %s10150_s8 = inlined_call_operand.hbm [shape: f32[2,16,16,128], index: 8, kind: output, shape index: {}]  }
   0x1   :  { %13 = sst [smem:[#allocation4]] %s10146_s4 }
   0x2   :  { %14 = vsyncpa [#allocation6], 0 }
   0x3   :  { %16 = vsyncpa [#allocation6 + $0x1], 0 }
   0x4   :  { %17 = vsyncpa [#allocation9], 0 }
   0x5   :  { %18 = vsyncpa [#allocation7], 0 }
   0x6   :  { %20 = vsyncpa [#allocation7 + $0x1], 0  ;;  %s8009_s29 = smov 0   ;;  %s8011_s30 = smov 0  }
   0x7   :  { %s8013_s9 = smov 0   ;;  %s8015_s10 = smov 0  }
   0x8 LB: > { %s8030_s4 = sadd.s32 4294967295, %s7947_s10   ;;  %s5976_s11 = sadd.s32 4294967294, %s7947_s10   ;;  %s7947_s10 = sphi %s8015_s10, %s10199_s10   ;;  %s7943_s9 = sphi %s8013_s9, %s10198_s9   ;;  %s7939_s30 = sphi %s8011_s30, %s10197_s30   ;;  %s7935_s29 = sphi %s8009_s29, %s10196_s29  }
   0x9   : > { %p46_p0 = scmp.ne.s32.totalorder %s7939_s30, %s7935_s29  ;;  %p10151_p1 = scmp.eq.s32.totalorder %s8030_s4, 0 }
   0xa   : > { %p223_p3 = scmp.eq.s32.totalorder %s5976_s11, 1  ;;  %p5977_p5 = scmp.ge.s32.totalorder %s7947_s10, 1 }
   0xb   : > { %p8039_p4 = por %p10151_p1, %p46_p0  ;;  %p230_p7 = scmp.lt.s32.totalorder %s7947_s10, 3 }
   0xc   : > { %p8044_p6 = por %p223_p3, %p46_p0  ;;  %s7949_s15 = smov [#allocation8]  }
   0xd   : > { %s10154_s12 = scalar_select %p8039_p4, 1, 0 }
   0xe   : > { %s10155_s13 = scalar_select %p8044_p6, 1, 0 }
   0xf   : > { %p8049_p8 = pnand %p5977_p5, %p230_p7  ;;  %s242_s16 = sshll.u32 %s7949_s15, 4  ;;  %s8053_s16 = int_to_ptr.vmem [resolvable:$true] %s242_s16 }
  0x10   : > { %s7950_s18 = smov [#allocation10]   ;;  %s7791_s22 = scalar_lea.hbm %s10143_s1, 9216 }
  0x11   : > { %p7580_p9 = pneg %p8049_p8  ;;  %s264_s19 = sshll.u32 %s7950_s18, 4  ;;  %s8064_s19 = int_to_ptr.vmem [resolvable:$true] %s264_s19 }
  0x12   : > { %p7792_p12 = scmp.ne.s32.totalorder %s10143_s1, %s7791_s22  ;;  %p7798_p5 = scmp.lt.u32.totalorder %s7791_s22, %s10143_s1 }
  0x13   : > { %p8060_p11 = pnand %p7580_p9, %p10151_p1 }
  0x15   : > { %p7793_p13 = pneg %p8060_p11 }
  0x17   : > { %p7794_p0 = pnand %p7793_p13, %p7792_p12 }
  0x19   : > { %p7795_p3 = pneg %p7794_p0 }
  0x1b   : > { %p7800_p7 = pnand %p7798_p5, %p7795_p3 }
  0x1d   : > { %7803 = shalt.err (!%p7800_p7)
}
  0x1e   : > { %s7804_s27 = scalar_lea.vmem %s8053_s16, 9216  ;;  %p7812_p2 = scmp.lt.s32.totalorder %s8053_s16, %s8053_s16 }
  0x1f   : > { %p7805_p9 = scmp.ne.s32.totalorder %s8053_s16, %s7804_s27  ;;  %p7813_p12 = scmp.lt.s32.totalorder %s7804_s27, %s7804_s27 }
  0x21   : > { %p7807_p10 = pnand %p7805_p9, %p7793_p13  ;;  %p7814_p0 = por %p7813_p12, %p7812_p2 }
  0x23   : > { %p7808_p1 = pneg %p7807_p10 }
  0x25   : > { %p7815_p6 = pnand %p7814_p0, %p7808_p1 }
  0x27   : > { %7818 = shalt.err (!%p7815_p6)
}
  0x28   : > { %s7951_s28 = smov 64   ;;  %s7952_s11 = smov 4  }
  0x29   : > { %7583 = dma.hbm_to_vmem [thread:$0]  (!%p8060_p11), %s10143_s1, 9216, %s8053_s16, [#allocation9], %s7951_s28, %s7951_s28, %s7952_s11  }
  0x2a   : > { %s7819_s22 = scalar_lea.hbm %s10147_s5, 9216 }
  0x2b   : > { %p7820_p2 = scmp.ne.s32.totalorder %s10147_s5, %s7819_s22  ;;  %p7826_p10 = scmp.lt.u32.totalorder %s7819_s22, %s10147_s5 }
  0x2d   : > { %p7822_p1 = pnand %p7820_p2, %p7793_p13 }
  0x2f   : > { %p7823_p6 = pneg %p7822_p1 }
  0x31   : > { %p7828_p3 = pnand %p7826_p10, %p7823_p6 }
  0x33   : > { %7831 = shalt.err (!%p7828_p3)
}
  0x34   : > { %s7832_s16 = scalar_lea.vmem %s8064_s19, 9216  ;;  %p7840_p12 = scmp.lt.s32.totalorder %s8064_s19, %s8064_s19 }
  0x35   : > { %p7833_p5 = scmp.ne.s32.totalorder %s8064_s19, %s7832_s16  ;;  %p7841_p0 = scmp.lt.s32.totalorder %s7832_s16, %s7832_s16 }
  0x37   : > { %p7835_p7 = pnand %p7833_p5, %p7793_p13  ;;  %p7842_p2 = por %p7841_p0, %p7840_p12 }
  0x39   : > { %p7836_p9 = pneg %p7835_p7 }
  0x3b   : > { %p7843_p1 = pnand %p7842_p2, %p7836_p9 }
  0x3d   : > { %7846 = shalt.err (!%p7843_p1)
}
  0x3e   : > { %7586 = dma.hbm_to_vmem [thread:$0]  (!%p8060_p11), %s10147_s5, 9216, %s8064_s19, [#allocation9], %s7951_s28, %s7951_s28, %s7952_s11  }
  0x3f   : > { %s8119_s18 = sadd.s32 1, %s7947_s10   ;;  %s33_s17 = sadd.s32 1, %s7943_s9 }
  0x40   : > { %s30_s20 = ssub.s32 %s7947_s10, %s8119_s18  ;;  %p40_p13 = scmp.ne.s32.totalorder %s7943_s9, %s7939_s30 }
  0x41   : > { %p31_p6 = scmp.eq.s32.totalorder %s30_s20, 0  ;;  %p41_p10 = scmp.eq.s32.totalorder %s7947_s10, 0 }
  0x42   : > { %p10158_p3 = scmp.eq.s32.totalorder %s8030_s4, 1  ;;  %p7597_p7 = scmp.lt.s32.totalorder %s7947_s10, 2 }
  0x43   : > { %s8135_s22 = scalar_select %p31_p6, %s7943_s9, %s33_s17  }
  0x44   : > { %p8129_p5 = por %p10158_p3, %p40_p13  ;;  %p42_p9 = por %p41_p10, %p40_p13 }
  0x45   : > { %s284_s23 = sand.u32 1, %s7943_s9   ;;  %s6142_s19 = sshll.u32 %s7947_s10, 12 }
  0x46   : > { %s10159_s21 = scalar_select %p8129_p5, 1, 0 }
  0x47   : > { %s5981_s24 = sshll.u32 %s284_s23, 8  ;;  %s8142_s25 = scalar_lea.hbm %s10142_s0, %s6142_s19 }
  0x48   : > { %s288_s26 = scalar_lea.vmem [#allocation5], %s5981_s24  ;;  %p8146_p11 = pnand %p7597_p7, %p42_p9 }
  0x49   : > { %s295_s16 = sshll.u32 %s288_s26, 4  ;;  %s8150_s15 = scalar_lea.sflag [#allocation6], %s284_s23  ;;  %s8144_s16 = int_to_ptr.vmem [resolvable:$true] %s295_s16 }
  0x4a   : > { %s7847_s17 = scalar_lea.hbm %s8142_s25, 4096  ;;  %p7849_p0 = pneg %p8146_p11 }
  0x4b   : > { %p7848_p12 = scmp.ne.s32.totalorder %s8142_s25, %s7847_s17  ;;  %s7852_s19 = scalar_lea.hbm %s10142_s0, 8192 }
  0x4c   : > { %p7853_p13 = scmp.lt.u32.totalorder %s8142_s25, %s10142_s0  ;;  %p7854_p6 = scmp.lt.u32.totalorder %s7852_s19, %s7847_s17 }
  0x4d   : > { %p7850_p2 = pnand %p7849_p0, %p7848_p12  ;;  %p7856_p3 = scmp.lt.u32.totalorder %s7847_s17, %s8142_s25 }
  0x4e   : > { %p7855_p10 = por %p7854_p6, %p7853_p13 }
  0x4f   : > { %p7851_p1 = pneg %p7850_p2 }
  0x50   : > { %p7857_p7 = por %p7856_p3, %p7855_p10 }
  0x52   : > { %p7858_p9 = pnand %p7857_p7, %p7851_p1 }
  0x54   : > { %7861 = shalt.err (!%p7858_p9)
}
  0x55   : > { %s7862_s23 = scalar_lea.vmem %s8144_s16, 4096  ;;  %s7953_s26 = smov [#allocation5]  }
  0x56   : > { %p7863_p12 = scmp.ne.s32.totalorder %s8144_s16, %s7862_s23  ;;  %s7867_s20 = sshll.u32 %s7953_s26, 4  ;;  %s7868_s20 = int_to_ptr.vmem [resolvable:$false] %s7867_s20 }
  0x57   : > { %s7869_s24 = scalar_lea.vmem %s7868_s20, 8192  ;;  %p7870_p4 = scmp.lt.s32.totalorder %s8144_s16, %s7868_s20 }
  0x58   : > { %p7865_p2 = pnand %p7863_p12, %p7849_p0  ;;  %p7871_p13 = scmp.lt.s32.totalorder %s7869_s24, %s7862_s23 }
  0x5a   : > { %p7866_p5 = pneg %p7865_p2  ;;  %p7872_p6 = por %p7871_p13, %p7870_p4 }
  0x5c   : > { %p7873_p10 = pnand %p7872_p6, %p7866_p5 }
  0x5e   : > { %7876 = shalt.err (!%p7873_p10)
}
  0x5f   : > { %s7954_s17 = smov 128   ;;  %s7955_s19 = smov 8  }
  0x60   : > { %7590 = dma.hbm_to_vmem [thread:$0]  (!%p8146_p11), %s8142_s25, 4096, %s8144_s16, %s8150_s15, %s7954_s17, %s7954_s17, %s7955_s19  }
  0x61   : > { %307 = sbr.rel (%p8049_p8) target bundleno = 1184 (0x4a0), region = 52 }
  0x68   : > { %s8181_s28 = sand.u32 1, %s7939_s30   ;;  %p10161_p4 = scmp.ne.s32.totalorder %s10154_s12, 0 }
  0x69   : > { %s5985_s11 = sshll.u32 %s8181_s28, 8  ;;  %s310_s23 = scalar_lea.sflag [#allocation6], %s8181_s28 }
  0x6a   : > { %s8187_s26 = scalar_lea.vmem [#allocation5], %s5985_s11 }
  0x6b   : > { %7922 = dma.done.wait (%p10161_p4), %s310_s23, 4096  }
  0x6c   : > { %7924 = vsyncadd (%p10161_p4), %s310_s23, 4294963200  ;;  %p10162_p5 = scmp.eq.s32.totalorder %s8030_s4, 0 }
  0x6e   : > { %7926 = dma.done.wait (%p10162_p5), [#allocation9], 18432   ;;  %p10163_p8 = pmov %p10162_p5 }
  0x6f   : > { %v7956_v0 = vmov 0.0   ;;  %v7957_v1 = vmov 0.0|0.0   ;;  %v7642_v2 = vld [vmem:[#allocation8 + $0x40] sm:$0xff]   ;;  %v7646_v6 = vld [vmem:[#allocation8 + $0x48] sm:$0xff]   ;;  %v7650_v10 = vld [vmem:[#allocation8 + $0x50] sm:$0xff]   ;;  %vm465_vm0 = vcmask 1040384  }
  0x70   : > { %7928 = vsyncadd (%p10163_p8), [#allocation9], 4294948864  ;;  %3133 = vst [vmem:[#allocation2 + $0x8] sm:$0xff] %v7956_v0  ;;  %1091 = vmatprep.mubr.bf16.mxu0 %v7957_v1  ;;  %v7643_v3 = vld [vmem:[#allocation8 + $0x100] sm:$0xff]   ;;  %6144 = vmatprep.subr.bf16.mxu0 %v7642_v2  ;;  %v7647_v7 = vld [vmem:[#allocation8 + $0x108] sm:$0xff]   ;;  %vm594_vm1 = vcmask 1046528  }
  0x71   : > { %578 = vst [vmem:[#allocation2 + $0x30] sm:$0x1] %v7956_v0  ;;  %579 = vst [vmem:[#allocation2 + $0x60] sm:$0x1] %v7956_v0  ;;  %v7644_v4 = vld [vmem:[#allocation8] sm:$0xff]   ;;  %6280 = vmatprep.subr.bf16.mxu1 %v7643_v3  ;;  %v7648_v8 = vld [vmem:[#allocation8 + $0x8] sm:$0xff]  }
  0x72   : > { %580 = vst [vmem:[#allocation2 + $0x90] sm:$0x1] %v7956_v0  ;;  %581 = vst [vmem:[#allocation2 + $0xc0] sm:$0x1] %v7956_v0  ;;  %v7645_v5 = vld [vmem:[#allocation8 + $0xc0] sm:$0xff]   ;;  %6145 = vmatpush3.bf16.msra.mxu0 %v7644_v4  ;;  %v7649_v9 = vld [vmem:[#allocation8 + $0xc8] sm:$0xff]  }
  0x73   : > { %582 = vst [vmem:[#allocation2 + $0xf0] sm:$0x1] %v7956_v0  ;;  %583 = vst [vmem:[#allocation2 + $0x120] sm:$0x1] %v7956_v0  ;;  %6281 = vmatpush3.bf16.msra.mxu1 %v7645_v5  ;;  %6146 = vmatprep.subr.bf16.mxu0 %v7646_v6  ;;  %v7651_v11 = vld [vmem:[#allocation8 + $0x110] sm:$0xff]   ;;  %v7654_v14 = vld [vmem:[#allocation8 + $0x58] sm:$0xff]  }
  0x74   : > { %584 = vst [vmem:[#allocation2 + $0x150] sm:$0x1] %v7956_v0  ;;  %585 = vst [vmem:[#allocation2 + $0x180] sm:$0x1] %v7956_v0  ;;  %6282 = vmatprep.subr.bf16.mxu1 %v7647_v7  ;;  %v7652_v12 = vld [vmem:[#allocation8 + $0x10] sm:$0xff]   ;;  %v7655_v15 = vld [vmem:[#allocation8 + $0x118] sm:$0xff]  }
  0x75   : > { %586 = vst [vmem:[#allocation2 + $0x1b0] sm:$0x1] %v7956_v0  ;;  %587 = vst [vmem:[#allocation2 + $0x1e0] sm:$0x1] %v7956_v0  ;;  %v7653_v13 = vld [vmem:[#allocation8 + $0xd0] sm:$0xff]   ;;  %v7656_v16 = vld [vmem:[#allocation8 + $0x18] sm:$0xff]  }
  0x76   : > { %588 = vst [vmem:[#allocation2 + $0x210] sm:$0x1] %v7956_v0  ;;  %589 = vst [vmem:[#allocation2 + $0x240] sm:$0x1] %v7956_v0  ;;  %6147 = vmatpush3.bf16.msra.mxu0 %v7648_v8  ;;  %v7657_v17 = vld [vmem:[#allocation8 + $0xd8] sm:$0xff]   ;;  %v7658_v18 = vld [vmem:[#allocation8 + $0x60] sm:$0xff]  }
  0x77   : > { %590 = vst [vmem:[#allocation2 + $0x270] sm:$0x1] %v7956_v0  ;;  %591 = vst [vmem:[#allocation2 + $0x2a0] sm:$0x1] %v7956_v0  ;;  %6283 = vmatpush3.bf16.msra.mxu1 %v7649_v9  ;;  %6148 = vmatprep.subr.bf16.mxu0 %v7650_v10  ;;  %v7659_v19 = vld [vmem:[#allocation8 + $0x120] sm:$0xff]   ;;  %v7662_v22 = vld [vmem:[#allocation8 + $0x68] sm:$0xff]  }
  0x78   : > { %592 = vst [vmem:[#allocation2 + $0x2d0] sm:$0x1] %v7956_v0  ;;  %593 = vst [vmem:[#allocation2 + $0x300] sm:$0x1] %v7956_v0  ;;  %6284 = vmatprep.subr.bf16.mxu1 %v7651_v11  ;;  %v7660_v20 = vld [vmem:[#allocation8 + $0x20] sm:$0xff]   ;;  %v7663_v23 = vld [vmem:[#allocation8 + $0x128] sm:$0xff]  }
  0x79   : > { %707 = vst [vmem:[#allocation2 + $0x5f] sm:$0x1] %v7956_v0  ;;  %708 = vst [vmem:[#allocation2 + $0x8f] sm:$0x1] %v7956_v0  ;;  %v7661_v21 = vld [vmem:[#allocation8 + $0xe0] sm:$0xff]   ;;  %v7664_v24 = vld [vmem:[#allocation8 + $0x28] sm:$0xff]  }
  0x7a   : > { %709 = vst [vmem:[#allocation2 + $0xbf] sm:$0x1] %v7956_v0  ;;  %710 = vst [vmem:[#allocation2 + $0xef] sm:$0x1] %v7956_v0  ;;  %6149 = vmatpush3.bf16.msra.mxu0 %v7652_v12  ;;  %v7665_v25 = vld [vmem:[#allocation8 + $0xe8] sm:$0xff]   ;;  %v7666_v26 = vld [vmem:[#allocation8 + $0x70] sm:$0xff]  }
  0x7b   : > { %711 = vst [vmem:[#allocation2 + $0x11f] sm:$0x1] %v7956_v0  ;;  %712 = vst [vmem:[#allocation2 + $0x14f] sm:$0x1] %v7956_v0  ;;  %6285 = vmatpush3.bf16.msra.mxu1 %v7653_v13  ;;  %6150 = vmatprep.subr.bf16.mxu0 %v7654_v14  ;;  %v7667_v27 = vld [vmem:[#allocation8 + $0x130] sm:$0xff]   ;;  %v7670_v30 = vld [vmem:[#allocation8 + $0x78] sm:$0xff]  }
  0x7c   : > { %713 = vst [vmem:[#allocation2 + $0x17f] sm:$0x1] %v7956_v0  ;;  %714 = vst [vmem:[#allocation2 + $0x1af] sm:$0x1] %v7956_v0  ;;  %6286 = vmatprep.subr.bf16.mxu1 %v7655_v15  ;;  %v7668_v28 = vld [vmem:[#allocation8 + $0x30] sm:$0xff]   ;;  %v7671_v31 = vld [vmem:[#allocation8 + $0x138] sm:$0xff]  }
  0x7d   : > { %715 = vst [vmem:[#allocation2 + $0x1df] sm:$0x1] %v7956_v0  ;;  %716 = vst [vmem:[#allocation2 + $0x20f] sm:$0x1] %v7956_v0  ;;  %v7669_v29 = vld [vmem:[#allocation8 + $0xf0] sm:$0xff]   ;;  %v7672_v32 = vld [vmem:[#allocation8 + $0x38] sm:$0xff]  }
  0x7e   : > { %717 = vst [vmem:[#allocation2 + $0x23f] sm:$0x1] %v7956_v0  ;;  %718 = vst [vmem:[#allocation2 + $0x26f] sm:$0x1] %v7956_v0  ;;  %6151 = vmatpush3.bf16.msra.mxu0 %v7656_v16  ;;  %v7673_v33 = vld [vmem:[#allocation8 + $0xf8] sm:$0xff]   ;;  %v8232_v34 = vld [vmem:[%s8187_s26] sm:$0xff] }
  0x7f   : > { %719 = vst [vmem:[#allocation2 + $0x29f] sm:$0x1] %v7956_v0  ;;  %720 = vst [vmem:[#allocation2 + $0x2cf] sm:$0x1] %v7956_v0  ;;  %6287 = vmatpush3.bf16.msra.mxu1 %v7657_v17  ;;  %6152 = vmatprep.subr.bf16.mxu0 %v7658_v18  ;;  %v8235_v35 = vld [vmem:[%s8187_s26 + $0x8] sm:$0xff]  ;;  %v466_v36 = vrot.slane %v8232_v34, 7 }
  0x80   : > { %721 = vst [vmem:[#allocation2 + $0x2ff] sm:$0x1] %v7956_v0  ;;  %722 = vst [vmem:[#allocation2 + $0x32f] sm:$0x1] %v7956_v0  ;;  %6288 = vmatprep.subr.bf16.mxu1 %v7659_v19  ;;  %v596_v37 = vrot.slane %v8235_v35, 1  ;;  %v1510_v38 = vpack.c.bf16 %v8235_v35, %v8232_v34  ;;  %v7674_v39 = vld [vmem:[#allocation8 + $0x80] sm:$0xff]  }
  0x81   : > { %v8242_v40 = vld [vmem:[%s8187_s26 + $0x10] sm:$0xff]  ;;  %v8245_v41 = vld [vmem:[%s8187_s26 + $0x18] sm:$0xff]  ;;  %546 = vst [vmem:[#allocation2 + $0x30] sm:$0xfe] %v466_v36  ;;  %v8255_v44 = vld [vmem:[%s8187_s26 + $0x20] sm:$0xff]  ;;  %v467_v47 = vrot.slane %v8235_v35, 7 }
  0x82   : > { %6153 = vmatpush3.bf16.msra.mxu0 %v7660_v20  ;;  %676 = vst [vmem:[#allocation2 + $0x58] sm:$0x7f] %v596_v37  ;;  %403 = vst [vmem:[#allocation2 + $0x68] sm:$0xff] %v8242_v40  ;;  %v470_v42 = vrot.slane %v8245_v41, 7  ;;  %v599_v43 = vrot.slane %v8245_v41, 1  ;;  %v8258_v45 = vld [vmem:[%s8187_s26 + $0x28] sm:$0xff]  ;;  %1782 = vmatprep.mubr.bf16.mxu1 %v1510_v38  ;;  %v1513_v11 = vpack.c.bf16 %v8245_v41, %v8242_v40 }
  0x83   : > { %6289 = vmatpush3.bf16.msra.mxu1 %v7661_v21  ;;  %6154 = vmatprep.subr.bf16.mxu0 %v7662_v22  ;;  %404 = vst [vmem:[#allocation2 + $0x80] sm:$0xff] %v8245_v41  ;;  %v7675_v46 = vld [vmem:[#allocation8 + $0x88] sm:$0xff]   ;;  %v469_v48 = vrot.slane %v8242_v40, 7  ;;  %405 = vst [vmem:[#allocation2 + $0x98] sm:$0xff] %v8255_v44  ;;  %v473_v49 = vrot.slane %v8258_v45, 7  ;;  %v8266_v50 = vld [vmem:[%s8187_s26 + $0x30] sm:$0xff]  ;;  %v468_v63 = vsel %vm465_vm0, %v466_v36, %v467_v47 }
  0x84   : > { %6290 = vmatprep.subr.bf16.mxu1 %v7663_v23  ;;  %406 = vst [vmem:[#allocation2 + $0xb0] sm:$0xff] %v8258_v45  ;;  %678 = vst [vmem:[#allocation2 + $0x88] sm:$0x7f] %v599_v43  ;;  %v472_v51 = vrot.slane %v8255_v44, 7  ;;  %v8272_v52 = vld [vmem:[%s8187_s26 + $0x38] sm:$0xff]  ;;  %v475_v53 = vrot.slane %v8266_v50, 7 }
  0x85   : > { %407 = vst [vmem:[#allocation2 + $0xc8] sm:$0xff] %v8266_v50  ;;  %v8277_v54 = vsel %vm465_vm0, %v469_v48, %v470_v42  ;;  %548 = vst [vmem:[#allocation2 + $0x60] sm:$0xfe] %v469_v48  ;;  %v476_v55 = vrot.slane %v8272_v52, 7  ;;  %v8282_v56 = vld [vmem:[%s8187_s26 + $0x40] sm:$0xff]  ;;  %v8285_v57 = vld [vmem:[%s8187_s26 + $0x48] sm:$0xff] }
  0x86   : > { %6155 = vmatpush3.bf16.msra.mxu0 %v7664_v24  ;;  %408 = vst [vmem:[#allocation2 + $0xe0] sm:$0xff] %v8272_v52  ;;  %v595_v58 = vrot.slane %v8232_v34, 1  ;;  %549 = vst [vmem:[#allocation2 + $0x78] sm:$0xff] %v8277_v54  ;;  %v8290_v59 = vsel %vm465_vm0, %v472_v51, %v473_v49  ;;  %v479_v60 = vrot.slane %v8285_v57, 7  ;;  %v7676_v61 = vld [vmem:[#allocation8 + $0x90] sm:$0xff]   ;;  %v478_v2 = vrot.slane %v8282_v56, 7 }
  0x87   : > { %6291 = vmatpush3.bf16.msra.mxu1 %v7665_v25  ;;  %6156 = vmatprep.subr.bf16.mxu0 %v7666_v26  ;;  %550 = vst [vmem:[#allocation2 + $0x90] sm:$0xfe] %v472_v51  ;;  %552 = vst [vmem:[#allocation2 + $0xc0] sm:$0xfe] %v475_v53  ;;  %v8296_v62 = vld [vmem:[%s8187_s26 + $0x50] sm:$0xff]  ;;  %v8305_v3 = vld [vmem:[%s8187_s26 + $0x58] sm:$0xff]  ;;  %v1516_v51 = vpack.c.bf16 %v8258_v45, %v8255_v44 }
  0x88   : > { %6292 = vmatprep.subr.bf16.mxu1 %v7667_v27  ;;  %409 = vst [vmem:[#allocation2 + $0xf8] sm:$0xff] %v8282_v56  ;;  %410 = vst [vmem:[#allocation2 + $0x110] sm:$0xff] %v8285_v57  ;;  %v481_v4 = vrot.slane %v8296_v62, 7  ;;  %v8310_v5 = vld [vmem:[%s8187_s26 + $0x60] sm:$0xff]  ;;  %v8313_v6 = vld [vmem:[%s8187_s26 + $0x68] sm:$0xff]  ;;  %v598_v7 = vrot.slane %v8242_v40, 1  ;;  %v8325_v12 = vsel %vm465_vm0, %v478_v2, %v479_v60  ;;  %v8358_v25 = vsel %vm594_vm1, %v595_v58, %v596_v37 }
  0x89   : > { %551 = vst [vmem:[#allocation2 + $0xa8] sm:$0xff] %v8290_v59  ;;  %411 = vst [vmem:[#allocation2 + $0x128] sm:$0xff] %v8296_v62  ;;  %v482_v8 = vrot.slane %v8305_v3, 7  ;;  %v485_v9 = vrot.slane %v8313_v6, 7  ;;  %v1413_v10 = vld [vmem:[#allocation2 + $0x30] sm:$0xff]  ;;  %v8327_v13 = vld [vmem:[#allocation8 + $0x98] sm:$0xff]  }
  0x8a   : > { %6157 = vmatpush3.bf16.msra.mxu0 %v7668_v28  ;;  %412 = vst [vmem:[#allocation2 + $0x140] sm:$0xff] %v8305_v3  ;;  %413 = vst [vmem:[#allocation2 + $0x158] sm:$0xff] %v8310_v5  ;;  %v484_v14 = vrot.slane %v8310_v5, 7  ;;  %v8331_v15 = vld [vmem:[%s8187_s26 + $0x70] sm:$0xff]  ;;  %v1509_v16 = vpack.c.bf16 %v468_v63, %v1413_v10  ;;  %v8339_v18 = vld [vmem:[%s8187_s26 + $0x78] sm:$0xff]  ;;  %v601_v26 = vrot.slane %v8255_v44, 1  ;;  %v8368_v28 = vsel %vm594_vm1, %v598_v7, %v599_v43 }
  0x8b   : > { %6293 = vmatpush3.bf16.msra.mxu1 %v7669_v29  ;;  %6158 = vmatprep.subr.bf16.mxu0 %v7670_v30  ;;  %414 = vst [vmem:[#allocation2 + $0x170] sm:$0xff] %v8313_v6  ;;  %554 = vst [vmem:[#allocation2 + $0xf0] sm:$0xfe] %v478_v2  ;;  %v8336_v17 = vsel %vm465_vm0, %v481_v4, %v482_v8  ;;  %v487_v19 = vrot.slane %v8331_v15, 7  ;;  %v7678_v20 = vld [vmem:[#allocation8 + $0x140] sm:$0xff]   ;;  %v488_v22 = vrot.slane %v8339_v18, 7 }
  0x8c   : > { %6294 = vmatprep.subr.bf16.mxu1 %v7671_v31  ;;  %556 = vst [vmem:[#allocation2 + $0x120] sm:$0xfe] %v481_v4  ;;  %3320 = vst [vmem:[#allocation2 + $0x30] sm:$0x1] %v7956_v0  ;;  %v8345_v21 = vsel %vm465_vm0, %v484_v14, %v485_v9  ;;  %v8350_v23 = vld [vmem:[%s8187_s26 + $0x80] sm:$0xff]  ;;  %v8353_v24 = vld [vmem:[%s8187_s26 + $0x88] sm:$0xff] }
  0x8d   : > { %555 = vst [vmem:[#allocation2 + $0x108] sm:$0xff] %v8325_v12  ;;  %415 = vst [vmem:[#allocation2 + $0x188] sm:$0xff] %v8331_v15  ;;  %v491_v27 = vrot.slane %v8353_v24, 7  ;;  %v1419_v29 = vld [vmem:[#allocation2 + $0x60] sm:$0xff]  ;;  %v8371_v30 = vsel %vm465_vm0, %v487_v19, %v488_v22  ;;  %v604_v34 = vrot.slane %v8266_v50, 1  ;;  %v8380_v35 = vld [vmem:[%s8187_s26 + $0x90] sm:$0xff] }
  0x8e   : > { %6159 = vmatpush3.bf16.msra.mxu0 %v7672_v32  ;;  %557 = vst [vmem:[#allocation2 + $0x138] sm:$0xff] %v8336_v17  ;;  %558 = vst [vmem:[#allocation2 + $0x150] sm:$0xfe] %v484_v14  ;;  %v8373_v31 = vld [vmem:[#allocation8 + $0xa0] sm:$0xff]   ;;  %v490_v32 = vrot.slane %v8350_v23, 7  ;;  %v8383_v36 = vld [vmem:[%s8187_s26 + $0x98] sm:$0xff]  ;;  %v1512_v43 = vpack.c.bf16 %v8277_v54, %v1419_v29 }
  0x8f   : > { %6295 = vmatpush3.bf16.msra.mxu1 %v7673_v33  ;;  %6960 = vmatprep.subr.bf16.mxu0 %v7674_v39  ;;  %416 = vst [vmem:[#allocation2 + $0x1a0] sm:$0xff] %v8339_v18  ;;  %559 = vst [vmem:[#allocation2 + $0x168] sm:$0xff] %v8345_v21  ;;  %v602_v33 = vrot.slane %v8258_v45, 1  ;;  %v605_v37 = vrot.slane %v8272_v52, 1  ;;  %v494_v40 = vrot.slane %v8383_v36, 7  ;;  %v7680_v41 = vld [vmem:[#allocation8 + $0x148] sm:$0xff]  }
  0x90   : > { %560 = vst [vmem:[#allocation2 + $0x180] sm:$0xfe] %v487_v19  ;;  %417 = vst [vmem:[#allocation2 + $0x1b8] sm:$0xff] %v8350_v23  ;;  %7008 = vmatprep.subr.bf16.mxu1 %v7678_v20  ;;  %v8395_v42 = vld [vmem:[%s8187_s26 + $0xa0] sm:$0xff]  ;;  %v8401_v47 = vld [vmem:[%s8187_s26 + $0xa8] sm:$0xff]  ;;  %v608_v63 = vrot.slane %v8285_v57, 1 }
  0x91   : > { %1092 = vmatmul.mubr.bf16.vlgmr.msra.gmra.mrb[0].mxu0 %v7957_v1  ;;  %v8301_v1 = vsel %vm465_vm0, %v475_v53, %v476_v55  ;;  %418 = vst [vmem:[#allocation2 + $0x1d0] sm:$0xff] %v8353_v24  ;;  %561 = vst [vmem:[#allocation2 + $0x198] sm:$0xff] %v8371_v30  ;;  %v496_v48 = vrot.slane %v8395_v42, 7  ;;  %v8406_v49 = vsel %vm594_vm1, %v601_v26, %v602_v33  ;;  %v610_v53 = vrot.slane %v8296_v62, 1  ;;  %v1425_v58 = vld [vmem:[#allocation2 + $0x90] sm:$0xff]  ;;  %v8425_v45 = vld [vmem:[%s8187_s26 + $0xb8] sm:$0xff] }
  0x92   : > { %6961 = vmatpush3.bf16.msra.mxu0 %v7674_v39  ;;  %1099 = vmatprep.mubr.bf16.mxu0 %v1510_v38  ;;  %553 = vst [vmem:[#allocation2 + $0xd8] sm:$0xff] %v8301_v1  ;;  %v607_v38 = vrot.slane %v8282_v56, 1  ;;  %v8389_v39 = vsel %vm465_vm0, %v490_v32, %v491_v27  ;;  %562 = vst [vmem:[#allocation2 + $0x1b0] sm:$0xfe] %v490_v32  ;;  %v497_v54 = vrot.slane %v8401_v47, 7  ;;  %v8422_v44 = vld [vmem:[%s8187_s26 + $0xb0] sm:$0xff] }
  0x93   : > { %6962 = vmatprep.subr.bf16.mxu0 %v7675_v46  ;;  %1783 = vmatmul.mubr.bf16.vlgmr.msra.gmra.mrb[0].mxu1 %v1509_v16  ;;  %419 = vst [vmem:[#allocation2 + $0x1e8] sm:$0xff] %v8380_v35  ;;  %420 = vst [vmem:[#allocation2 + $0x200] sm:$0xff] %v8383_v36  ;;  %v8415_v55 = vpack.c.bf16 %v8401_v47, %v8395_v42  ;;  %v611_v2 = vrot.slane %v8305_v3, 1  ;;  %v7681_v4 = vld [vmem:[#allocation8 + $0xa8] sm:$0xff]   ;;  %v500_v8 = vrot.slane %v8425_v45, 7  ;;  %v7682_v9 = vld [vmem:[#allocation8 + $0x150] sm:$0xff]  }
  0x94   : > { %1790 = vmatprep.mubr.bf16.mxu1 %v1513_v11  ;;  %7009 = vmatpush3.bf16.msra.mxu1 %v7678_v20  ;;  %680 = vst [vmem:[#allocation2 + $0xb8] sm:$0x7f] %v602_v33  ;;  %563 = vst [vmem:[#allocation2 + $0x1c8] sm:$0xff] %v8389_v39  ;;  %v8435_v7 = vsel %vm465_vm0, %v496_v48, %v497_v54  ;;  %v8443_v10 = vpack.c.bf16 %v8425_v45, %v8422_v44  ;;  %v8450_v14 = vld [vmem:[%s8187_s26 + $0xc8] sm:$0xff]  ;;  %v7683_v27 = vld [vmem:[#allocation8 + $0xb0] sm:$0xff]   ;;  %s3034_s12 = sld [smem:[#allocation4]] }
  0x95   : > { %421 = vst [vmem:[#allocation2 + $0x218] sm:$0xff] %v8395_v42  ;;  %682 = vst [vmem:[#allocation2 + $0xe8] sm:$0x7f] %v605_v37  ;;  %7010 = vmatprep.subr.bf16.mxu1 %v7680_v41  ;;  %v503_v19 = vrot.slane %v8450_v14, 7  ;;  %v8463_v22 = vsel %vm594_vm1, %v610_v53, %v611_v2  ;;  %v8471_v32 = vld [vmem:[%s8187_s26 + $0xd0] sm:$0xff]  ;;  %v1515_v33 = vpack.c.bf16 %v8290_v59, %v1425_v58  ;;  %v616_v53 = vrot.slane %v8331_v15, 1 }
  0x96   : > { %6963 = vmatpush3.bf16.msra.mxu0 %v7675_v46  ;;  %v493_v46 = vrot.slane %v8380_v35, 7  ;;  %422 = vst [vmem:[#allocation2 + $0x230] sm:$0xff] %v8401_v47  ;;  %566 = vst [vmem:[#allocation2 + $0x210] sm:$0xfe] %v496_v48  ;;  %v614_v48 = vrot.slane %v8313_v6, 1  ;;  %s9945_s25 = scalar_lea.vmem [#allocation11], %s5985_s11 }
  0x97   : > { %6964 = vmatprep.subr.bf16.mxu0 %v7676_v61  ;;  %423 = vst [vmem:[#allocation2 + $0x248] sm:$0xff] %v8422_v44  ;;  %424 = vst [vmem:[#allocation2 + $0x260] sm:$0xff] %v8425_v45  ;;  %s6143_s11 = sshll.u32 %s8030_s4, 12  ;;  %s5884_s16 = sshll.u32 %s9945_s25, 4  ;;  %s10095_s16 = int_to_ptr.vmem [resolvable:$true] %s5884_s16 }
  0x98   : > { %v8419_v60 = vsel %vm465_vm0, %v493_v46, %v494_v40  ;;  %564 = vst [vmem:[#allocation2 + $0x1e0] sm:$0xfe] %v493_v46  ;;  %7011 = vmatpush3.bf16.msra.mxu1 %v7680_v41  ;;  %567 = vst [vmem:[#allocation2 + $0x228] sm:$0xff] %v8435_v7  ;;  %v8494_v46 = vld [vmem:[%s8187_s26 + $0xe8] sm:$0xff]  ;;  %s10093_s20 = scalar_lea.hbm %s10150_s8, %s6143_s11  ;;  %s5871_s4 = scalar_lea.sflag [#allocation7], %s8181_s28 }
  0x99   : > { %1100 = vmatmul.mubr.bf16.gmra.mrb[4].mxu0 %v1509_v16  ;;  %565 = vst [vmem:[#allocation2 + $0x1f8] sm:$0xff] %v8419_v60  ;;  %v8453_v16 = vsel %vm594_vm1, %v607_v38, %v608_v63  ;;  %684 = vst [vmem:[#allocation2 + $0x118] sm:$0x7f] %v608_v63  ;;  %7012 = vmatprep.subr.bf16.mxu1 %v7682_v9  ;;  %v7684_v38 = vld [vmem:[#allocation8 + $0x158] sm:$0xff]   ;;  %v509_v54 = vrot.slane %v8494_v46, 7  ;;  %p10193_p0 = scmp.ne.s32.totalorder %s10159_s21, 0 }
  0x9a   : > { %1107 = vmatprep.mubr.bf16.mxu0 %v1513_v11  ;;  %6965 = vmatpush3.bf16.msra.mxu0 %v7676_v61  ;;  %v8428_v61 = vsel %vm594_vm1, %v604_v34, %v605_v37  ;;  %v499_v11 = vrot.slane %v8422_v44, 7  ;;  %686 = vst [vmem:[#allocation2 + $0x148] sm:$0x7f] %v611_v2  ;;  %426 = vst [vmem:[#allocation2 + $0x290] sm:$0xff] %v8450_v14  ;;  %v613_v34 = vrot.slane %v8310_v5, 1  ;;  %v505_v37 = vrot.slane %v8471_v32, 7 }
  0x9b   : > { %6966 = vmatprep.subr.bf16.mxu0 %v8327_v13  ;;  %1791 = vmatmul.mubr.bf16.gmra.mrb[4].mxu1 %v1512_v43  ;;  %427 = vst [vmem:[#allocation2 + $0x2a8] sm:$0xff] %v8471_v32  ;;  %430 = vst [vmem:[#allocation2 + $0x2f0] sm:$0xff] %v8494_v46  ;;  %v7686_v2 = vld [vmem:[#allocation8 + $0x160] sm:$0xff]   ;;  %s7958_s24 = smov [#allocation11]  }
  0x9c   : > { %1798 = vmatprep.mubr.bf16.mxu1 %v1516_v51  ;;  %v8467_v26 = vsel %vm465_vm0, %v499_v11, %v500_v8  ;;  %568 = vst [vmem:[#allocation2 + $0x240] sm:$0xfe] %v499_v11  ;;  %7013 = vmatpush3.bf16.msra.mxu1 %v7682_v9  ;;  %572 = vst [vmem:[#allocation2 + $0x2a0] sm:$0xfe] %v505_v37  ;;  %v617_v8 = vrot.slane %v8339_v18, 1  ;;  %v8518_v11 = vld [vmem:[%s8187_s26 + $0xf0] sm:$0xff] }
  0x9d   : > { %569 = vst [vmem:[#allocation2 + $0x258] sm:$0xff] %v8467_v26  ;;  %7014 = vmatprep.subr.bf16.mxu1 %v7684_v38  ;;  %688 = vst [vmem:[#allocation2 + $0x178] sm:$0x7f] %v614_v48  ;;  %s7881_s17 = sshll.u32 %s7958_s24, 4  ;;  %s7882_s17 = int_to_ptr.vmem [resolvable:$false] %s7881_s17 }
  0x9e   : > { %6967 = vmatpush3.bf16.msra.mxu0 %v8327_v13  ;;  %v8447_v13 = vld [vmem:[%s8187_s26 + $0xc0] sm:$0xff]  ;;  %431 = vst [vmem:[#allocation2 + $0x308] sm:$0xff] %v8518_v11  ;;  %690 = vst [vmem:[#allocation2 + $0x1a8] sm:$0x7f] %v617_v8  ;;  %s7883_s19 = scalar_lea.vmem %s7882_s17, 8192  ;;  %p7884_p7 = scmp.lt.s32.totalorder %s10095_s16, %s7882_s17 }
  0x9f   : > { %6968 = vmatprep.subr.bf16.mxu0 %v8373_v31  ;;  %425 = vst [vmem:[#allocation2 + $0x278] sm:$0xff] %v8447_v13  ;;  %v8460_v20 = vpack.c.bf16 %v8450_v14, %v8447_v13  ;;  %v502_v29 = vrot.slane %v8447_v13, 7 }
  0xa0   : > { %7015 = vmatpush3.bf16.msra.mxu1 %v7684_v38  ;;  %v8530_v38 = vsel %vm594_vm1, %v616_v53, %v617_v8  ;;  %v619_v53 = vrot.slane %v8350_v23, 1  ;;  %v623_v8 = vrot.slane %v8383_v36, 1 }
  0xa1   : > { %1108 = vmatmul.mubr.bf16.gmra.mrb[8].mxu0 %v1512_v43  ;;  %v8482_v40 = vsel %vm465_vm0, %v502_v29, %v503_v19  ;;  %570 = vst [vmem:[#allocation2 + $0x270] sm:$0xfe] %v502_v29  ;;  %v8491_v43 = vld [vmem:[%s8187_s26 + $0xe0] sm:$0xff]  ;;  %v8521_v19 = vsel %vm594_vm1, %v613_v34, %v614_v48  ;;  %10164 = vst [vmem:[#allocation15_spill] sm:$0xff] %v8530_v38  ;;  %7016 = vmatprep.subr.bf16.mxu1 %v7686_v2  ;;  %v620_v48 = vrot.slane %v8353_v24, 1  ;;  %v8567_v38 = vld [vmem:[#allocation2 + $0x148] sm:$0xff] }
  0xa2   : > { %1115 = vmatprep.mubr.bf16.mxu0 %v1516_v51  ;;  %6969 = vmatpush3.bf16.msra.mxu0 %v8373_v31  ;;  %v8477_v31 = vld [vmem:[%s8187_s26 + $0xd8] sm:$0xff]  ;;  %v1519_v51 = vpack.c.bf16 %v8272_v52, %v8266_v50  ;;  %571 = vst [vmem:[#allocation2 + $0x288] sm:$0xff] %v8482_v40  ;;  %429 = vst [vmem:[#allocation2 + $0x2d8] sm:$0xff] %v8491_v43  ;;  %v8506_v58 = vpack.c.bf16 %v8494_v46, %v8491_v43  ;;  %v508_v63 = vrot.slane %v8491_v43, 7  ;;  %v1431_v29 = vld [vmem:[#allocation2 + $0xc0] sm:$0xff] }
  0xa3   : > { %6970 = vmatprep.subr.bf16.mxu0 %v7681_v4  ;;  %428 = vst [vmem:[#allocation2 + $0x2c0] sm:$0xff] %v8477_v31  ;;  %v506_v59 = vrot.slane %v8477_v31, 7  ;;  %v8488_v41 = vpack.c.bf16 %v8477_v31, %v8471_v32  ;;  %v7685_v52 = vld [vmem:[#allocation8 + $0xb8] sm:$0xff]   ;;  %1799 = vmatmul.mubr.bf16.gmra.mrb[8].mxu1 %v1515_v33  ;;  %692 = vst [vmem:[#allocation2 + $0x1d8] sm:$0x7f] %v620_v48 }
  0xa4   : > { %v8515_v9 = vsel %vm465_vm0, %v508_v63, %v509_v54  ;;  %574 = vst [vmem:[#allocation2 + $0x2d0] sm:$0xfe] %v508_v63  ;;  %1806 = vmatprep.mubr.bf16.mxu1 %v1519_v51  ;;  %7017 = vmatpush3.bf16.msra.mxu1 %v7686_v2  ;;  %v8542_v54 = vld [vmem:[#allocation2 + $0x58] sm:$0xff]  ;;  %v8544_v63 = vld [vmem:[#allocation2 + $0x88] sm:$0xff]  ;;  %v1522_v2 = vpack.c.bf16 %v8285_v57, %v8282_v56  ;;  %694 = vst [vmem:[#allocation2 + $0x208] sm:$0x7f] %v623_v8 }
  0xa5   : > { %v8509_v50 = vsel %vm465_vm0, %v505_v37, %v506_v59  ;;  %575 = vst [vmem:[#allocation2 + $0x2e8] sm:$0xff] %v8515_v9  ;;  %v8525_v37 = vld [vmem:[%s8187_s26 + $0xf8] sm:$0xff]  ;;  %v622_v59 = vrot.slane %v8380_v35, 1  ;;  %3448 = vst [vmem:[#allocation2 + $0x5f] sm:$0x1] %v7956_v0  ;;  %v1437_v57 = vld [vmem:[#allocation2 + $0xf0] sm:$0xff] }
  0xa6   : > { %6971 = vmatpush3.bf16.msra.mxu0 %v7681_v4  ;;  %573 = vst [vmem:[#allocation2 + $0x2b8] sm:$0xff] %v8509_v50  ;;  %v7687_v4 = vld [vmem:[#allocation8 + $0x168] sm:$0xff]   ;;  %432 = vst [vmem:[#allocation2 + $0x320] sm:$0xff] %v8525_v37  ;;  %v512_v34 = vrot.slane %v8525_v37, 7  ;;  %v7689_v56 = vld [vmem:[#allocation8 + $0x178] sm:$0xff]  }
  0xa7   : > { %6972 = vmatprep.subr.bf16.mxu0 %v7683_v27  ;;  %7018 = vmatprep.subr.bf16.mxu1 %v7687_v4  ;;  %3449 = vst [vmem:[#allocation2 + $0x8f] sm:$0x1] %v7956_v0  ;;  %3453 = vst [vmem:[#allocation2 + $0x14f] sm:$0x1] %v7956_v0 }
  0xa8   : > { %7019 = vmatpush3.bf16.msra.mxu1 %v7687_v4  ;;  %v8563_v4 = vsel %vm594_vm1, %v622_v59, %v623_v8  ;;  %v629_v59 = vrot.slane %v8425_v45, 1  ;;  %v628_v8 = vrot.slane %v8422_v44, 1  ;;  %v8598_v44 = vld [vmem:[#allocation8 + $0x200] sm:$0xff]   ;;  %v632_v45 = vrot.slane %v8450_v14, 1 }
  0xa9   : > { %1116 = vmatmul.mubr.bf16.gmra.mrb[12].mxu0 %v1515_v33  ;;  %v511_v33 = vrot.slane %v8518_v11, 7  ;;  %10165 = vst [vmem:[#allocation16_spill] sm:$0xff] %v8563_v4  ;;  %v8578_v4 = vld [vmem:[#allocation2 + $0x178] sm:$0xff]  ;;  %v638_v14 = vrot.slane %v8494_v46, 1 }
  0xaa   : > { %1123 = vmatprep.mubr.bf16.mxu0 %v1519_v51  ;;  %6973 = vmatpush3.bf16.msra.mxu0 %v7683_v27  ;;  %v1518_v51 = vpack.c.bf16 %v8301_v1, %v1431_v29  ;;  %v7690_v1 = vld [vmem:[#allocation8 + $0x1c0] sm:$0xff]   ;;  %v7688_v29 = vld [vmem:[#allocation8 + $0x170] sm:$0xff]   ;;  %698 = vst [vmem:[#allocation2 + $0x268] sm:$0x7f] %v629_v59  ;;  %700 = vst [vmem:[#allocation2 + $0x298] sm:$0x7f] %v632_v45 }
  0xab   : > { %6974 = vmatprep.subr.bf16.mxu0 %v7685_v52  ;;  %576 = vst [vmem:[#allocation2 + $0x300] sm:$0xfe] %v511_v33  ;;  %v8540_v27 = vsel %vm465_vm0, %v511_v33, %v512_v34  ;;  %v8553_v33 = vld [vmem:[#allocation2 + $0xb8] sm:$0xff]  ;;  %v8555_v34 = vld [vmem:[#allocation2 + $0xe8] sm:$0xff]  ;;  %7020 = vmatprep.subr.bf16.mxu1 %v7688_v29  ;;  %704 = vst [vmem:[#allocation2 + $0x2f8] sm:$0x7f] %v638_v14 }
  0xac   : > { %577 = vst [vmem:[#allocation2 + $0x318] sm:$0xff] %v8540_v27  ;;  %1807 = vmatmul.mubr.bf16.gmra.mrb[12].mxu1 %v1518_v51  ;;  %3450 = vst [vmem:[#allocation2 + $0xbf] sm:$0x1] %v7956_v0 }
  0xad   : > { %3451 = vst [vmem:[#allocation2 + $0xef] sm:$0x1] %v7956_v0  ;;  %1814 = vmatprep.mubr.bf16.mxu1 %v1522_v2  ;;  %7021 = vmatpush3.bf16.msra.mxu1 %v7688_v29  ;;  %v8580_v29 = vld [vmem:[#allocation2 + $0x1a8] sm:$0xff] }
  0xae   : > { %6975 = vmatpush3.bf16.msra.mxu0 %v7685_v52  ;;  %v8560_v52 = vsel %vm594_vm1, %v619_v53, %v620_v48  ;;  %v625_v48 = vrot.slane %v8395_v42, 1  ;;  %7022 = vmatprep.subr.bf16.mxu1 %v7689_v56  ;;  %v1525_v53 = vpack.c.bf16 %v8305_v3, %v8296_v62  ;;  %v8588_v62 = vld [vmem:[#allocation2 + $0x208] sm:$0xff]  ;;  %v8595_v42 = vsel %vm594_vm1, %v628_v8, %v629_v59 }
  0xaf   : > { %6416 = vmatprep.subr.bf16.mxu0 %v7690_v1  ;;  %v8565_v1 = vld [vmem:[#allocation2 + $0x118] sm:$0xff]  ;;  %v634_v59 = vrot.slane %v8471_v32, 1  ;;  %v641_v8 = vrot.slane %v8525_v37, 1 }
  0xb0   : > { %3452 = vst [vmem:[#allocation2 + $0x11f] sm:$0x1] %v7956_v0  ;;  %v8586_v0 = vld [vmem:[#allocation2 + $0x1d8] sm:$0xff] }
  0xb1   : > { %1124 = vmatmul.mubr.bf16.gmra.mrb[16].mxu0 %v1518_v51  ;;  %v626_v51 = vrot.slane %v8401_v47, 1  ;;  %v8582_v47 = vld [vmem:[#allocation2 + $0x8] sm:$0xff]  ;;  %7023 = vmatpush3.bf16.msra.mxu1 %v7689_v56  ;;  %706 = vst [vmem:[#allocation2 + $0x328] sm:$0x7f] %v641_v8 }
  0xb2   : > { %1131 = vmatprep.mubr.bf16.mxu0 %v1522_v2  ;;  %v1521_v2 = vpack.c.bf16 %v8325_v12, %v1437_v57  ;;  %3454 = vst [vmem:[#allocation2 + $0x17f] sm:$0x1] %v8582_v47  ;;  %3455 = vst [vmem:[#allocation2 + $0x1af] sm:$0x1] %v8582_v47  ;;  %v1443_v12 = vld [vmem:[#allocation2 + $0x120] sm:$0xff]  ;;  %v631_v57 = vrot.slane %v8447_v13, 1  ;;  %7056 = vmatprep.subr.bf16.mxu1 %v8598_v44 }
  0xb3   : > { %696 = vst [vmem:[#allocation2 + $0x238] sm:$0x7f] %v626_v51  ;;  %v8591_v3 = vsel %vm594_vm1, %v625_v48, %v626_v51  ;;  %3456 = vst [vmem:[#allocation2 + $0x1df] sm:$0x1] %v8582_v47  ;;  %v1524_v56 = vpack.c.bf16 %v8336_v17, %v1443_v12  ;;  %v1528_v48 = vpack.c.bf16 %v8313_v6, %v8310_v5  ;;  %v1449_v17 = vld [vmem:[#allocation2 + $0x150] sm:$0xff]  ;;  %v637_v6 = vrot.slane %v8491_v43, 1 }
  0xb4   : > { %1815 = vmatmul.mubr.bf16.gmra.mrb[16].mxu1 %v1521_v2  ;;  %3457 = vst [vmem:[#allocation2 + $0x20f] sm:$0x1] %v8582_v47  ;;  %v8615_v13 = vsel %vm594_vm1, %v631_v57, %v632_v45  ;;  %v1527_v32 = vpack.c.bf16 %v8345_v21, %v1449_v17  ;;  %v1531_v12 = vpack.c.bf16 %v8339_v18, %v8331_v15  ;;  %v640_v45 = vrot.slane %v8518_v11, 1  ;;  %v1455_v21 = vld [vmem:[#allocation2 + $0x180] sm:$0xff]  ;;  %v8640_v46 = vld [vmem:[#allocation2 + $0x2f8] sm:$0xff]  ;;  %v8654_v17 = vld [vmem:[#allocation2 + $0x90] sm:$0xff] }
  0xb5   : > { %1822 = vmatprep.mubr.bf16.mxu1 %v1525_v53  ;;  %v8634_v43 = vsel %vm594_vm1, %v637_v6, %v638_v14  ;;  %v1530_v18 = vpack.c.bf16 %v8371_v30, %v1455_v21  ;;  %v1534_v57 = vpack.c.bf16 %v8353_v24, %v8350_v23  ;;  %3462 = vst [vmem:[#allocation2 + $0x2ff] sm:$0x1] %v8582_v47  ;;  %v1467_v24 = vld [vmem:[#allocation2 + $0x1e0] sm:$0xff]  ;;  %3322 = vst [vmem:[#allocation2 + $0x90] sm:$0x1] %v8582_v47  ;;  %v1473_v14 = vld [vmem:[#allocation2 + $0x210] sm:$0xff] }
  0xb6   : > { %v8637_v15 = vsel %vm594_vm1, %v640_v45, %v641_v8  ;;  %v1537_v23 = vpack.c.bf16 %v8383_v36, %v8380_v35  ;;  %v1536_v6 = vpack.c.bf16 %v8419_v60, %v1467_v24  ;;  %v1539_v35 = vpack.c.bf16 %v8435_v7, %v1473_v14  ;;  %v1479_v36 = vld [vmem:[#allocation2 + $0x240] sm:$0xff]  ;;  %v8666_v60 = vld [vmem:[#allocation2 + $0xf0] sm:$0xff]  ;;  %v7701_v24 = vld [vmem:[#allocation8 + $0x208] sm:$0xff]  }
  0xb7   : > { %3324 = vst [vmem:[#allocation2 + $0xf0] sm:$0x1] %v8582_v47  ;;  %v8672_v7 = vld [vmem:[#allocation2 + $0x120] sm:$0xff] }
  0xb8   : > { %3325 = vst [vmem:[#allocation2 + $0x120] sm:$0x1] %v8582_v47  ;;  %v1503_v21 = vld [vmem:[#allocation2 + $0x300] sm:$0xff] }
  0xb9   : > { %1132 = vmatmul.mubr.bf16.gmra.mrb[20].mxu0 %v1521_v2  ;;  %v635_v2 = vrot.slane %v8477_v31, 1  ;;  %v8623_v31 = vld [vmem:[#allocation2 + $0x298] sm:$0xff]  ;;  %v8730_v14 = vld [vmem:[#allocation2 + $0x240] sm:$0xff] }
  0xba   : > { %1139 = vmatprep.mubr.bf16.mxu0 %v1525_v53  ;;  %v8604_v51 = vld [vmem:[#allocation2 + $0x238] sm:$0xff]  ;;  %v8610_v53 = vld [vmem:[#allocation2 + $0x268] sm:$0xff]  ;;  %3460 = vst [vmem:[#allocation2 + $0x29f] sm:$0x1] %v8582_v47  ;;  %3331 = vst [vmem:[#allocation2 + $0x240] sm:$0x1] %v8582_v47 }
  0xbb   : > { %3458 = vst [vmem:[#allocation2 + $0x23f] sm:$0x1] %v8582_v47  ;;  %702 = vst [vmem:[#allocation2 + $0x2c8] sm:$0x7f] %v635_v2  ;;  %v8618_v5 = vsel %vm594_vm1, %v634_v59, %v635_v2  ;;  %v8644_v2 = vld [vmem:[#allocation2 + $0x328] sm:$0xff]  ;;  %v8648_v59 = vld [vmem:[#allocation2 + $0x60] sm:$0xff] }
  0xbc   : > { %3459 = vst [vmem:[#allocation2 + $0x26f] sm:$0x1] %v8582_v47  ;;  %1823 = vmatmul.mubr.bf16.gmra.mrb[20].mxu1 %v1524_v56  ;;  %3463 = vst [vmem:[#allocation2 + $0x32f] sm:$0x1] %v8582_v47 }
  0xbd   : > { %1830 = vmatprep.mubr.bf16.mxu1 %v1528_v48  ;;  %3321 = vst [vmem:[#allocation2 + $0x60] sm:$0x1] %v8582_v47 }
  0xc1   : > { %1140 = vmatmul.mubr.bf16.gmra.mrb[24].mxu0 %v1524_v56 }
  0xc2   : > { %1147 = vmatprep.mubr.bf16.mxu0 %v1528_v48  ;;  %v8629_v56 = vld [vmem:[#allocation2 + $0x2c8] sm:$0xff]  ;;  %v1461_v48 = vld [vmem:[#allocation2 + $0x1b0] sm:$0xff] }
  0xc3   : > { %3461 = vst [vmem:[#allocation2 + $0x2cf] sm:$0x1] %v8582_v47  ;;  %v1533_v30 = vpack.c.bf16 %v8389_v39, %v1461_v48  ;;  %v8660_v39 = vld [vmem:[#allocation2 + $0xc0] sm:$0xff]  ;;  %v7692_v48 = vld [vmem:[#allocation8 + $0x1c8] sm:$0xff]  }
  0xc4   : > { %1831 = vmatmul.mubr.bf16.gmra.mrb[24].mxu1 %v1527_v32  ;;  %3323 = vst [vmem:[#allocation2 + $0xc0] sm:$0x1] %v8582_v47 }
  0xc5   : > { %1838 = vmatprep.mubr.bf16.mxu1 %v1531_v12 }
  0xc9   : > { %1148 = vmatmul.mubr.bf16.gmra.mrb[28].mxu0 %v1527_v32  ;;  %v1542_v32 = vpack.c.bf16 %v8467_v26, %v1479_v36  ;;  %v8678_v26 = vld [vmem:[#allocation2 + $0x150] sm:$0xff]  ;;  %v7702_v36 = vld [vmem:[#allocation8 + $0x1e8] sm:$0xff]  }
  0xca   : > { %1155 = vmatprep.mubr.bf16.mxu0 %v1531_v12  ;;  %3326 = vst [vmem:[#allocation2 + $0x150] sm:$0x1] %v8582_v47 }
  0xcc   : > { %1839 = vmatmul.mubr.bf16.gmra.mrb[28].mxu1 %v1530_v18 }
  0xcd   : > { %1846 = vmatprep.mubr.bf16.mxu1 %v1534_v57 }
  0xd1   : > { %1156 = vmatmul.mubr.bf16.gmra.mrb[32].mxu0 %v1530_v18  ;;  %v1554_v18 = vpack.c.bf16 %v8540_v27, %v1503_v21  ;;  %v7694_v27 = vld [vmem:[#allocation8 + $0x1d0] sm:$0xff]   ;;  %v7713_v21 = vld [vmem:[#allocation8 + $0x238] sm:$0xff]  }
  0xd2   : > { %1163 = vmatprep.mubr.bf16.mxu0 %v1534_v57  ;;  %v7691_v57 = vld [vmem:[#allocation8 + $0x180] sm:$0xff]  }
  0xd4   : > { %1847 = vmatmul.mubr.bf16.gmra.mrb[32].mxu1 %v1533_v30 }
  0xd5   : > { %1854 = vmatprep.mubr.bf16.mxu1 %v1537_v23 }
  0xd9   : > { %1164 = vmatmul.mubr.bf16.gmra.mrb[36].mxu0 %v1533_v30  ;;  %v7693_v30 = vld [vmem:[#allocation8 + $0x188] sm:$0xff]  }
  0xda   : > { %1171 = vmatprep.mubr.bf16.mxu0 %v1537_v23  ;;  %v7696_v23 = vld [vmem:[#allocation8 + $0x1d8] sm:$0xff]  }
  0xdc   : > { %1855 = vmatmul.mubr.bf16.gmra.mrb[36].mxu1 %v1536_v6 }
  0xdd   : > { %1862 = vmatprep.mubr.bf16.mxu1 %v8415_v55 }
  0xe1   : > { %1172 = vmatmul.mubr.bf16.gmra.mrb[40].mxu0 %v1536_v6  ;;  %v7700_v6 = vld [vmem:[#allocation8 + $0x1a0] sm:$0xff]  }
  0xe2   : > { %1179 = vmatprep.mubr.bf16.mxu0 %v8415_v55  ;;  %v1485_v55 = vld [vmem:[#allocation2 + $0x270] sm:$0xff] }
  0xe3   : > { %v1545_v8 = vpack.c.bf16 %v8482_v40, %v1485_v55  ;;  %v8684_v40 = vld [vmem:[#allocation2 + $0x180] sm:$0xff] }
  0xe4   : > { %1863 = vmatmul.mubr.bf16.gmra.mrb[40].mxu1 %v1539_v35  ;;  %3327 = vst [vmem:[#allocation2 + $0x180] sm:$0x1] %v8582_v47  ;;  %v10167_v55 = vld [vmem:[#allocation15_spill] sm:$0xff] }
  0xe5   : > { %1870 = vmatprep.mubr.bf16.mxu1 %v8443_v10 }
  0xe9   : > { %1180 = vmatmul.mubr.bf16.gmra.mrb[44].mxu0 %v1539_v35  ;;  %v8734_v35 = vpack.c.bf16 %v8567_v38, %v8463_v22  ;;  %v7706_v22 = vld [vmem:[#allocation8 + $0x1f0] sm:$0xff]   ;;  %v7707_v38 = vld [vmem:[#allocation8 + $0x220] sm:$0xff]  }
  0xea   : > { %1187 = vmatprep.mubr.bf16.mxu0 %v8443_v10  ;;  %v1491_v10 = vld [vmem:[#allocation2 + $0x2a0] sm:$0xff] }
  0xeb   : > { %v1548_v12 = vpack.c.bf16 %v8509_v50, %v1491_v10  ;;  %v10166_v50 = vpack.c.bf16 %v8525_v37, %v8518_v11  ;;  %v8704_v11 = vpack.c.bf16 %v8544_v63, %v8368_v28  ;;  %v8706_v37 = vld [vmem:[#allocation2 + $0x1e0] sm:$0xff]  ;;  %v8714_v28 = vld [vmem:[#allocation2 + $0x210] sm:$0xff]  ;;  %v8718_v63 = vpack.c.bf16 %v8555_v34, %v8428_v61  ;;  %v7709_v10 = vld [vmem:[#allocation8 + $0x228] sm:$0xff]  }
  0xec   : > { %1871 = vmatmul.mubr.bf16.gmra.mrb[44].mxu1 %v1542_v32  ;;  %3329 = vst [vmem:[#allocation2 + $0x1e0] sm:$0x1] %v8582_v47  ;;  %3330 = vst [vmem:[#allocation2 + $0x210] sm:$0x1] %v8582_v47  ;;  %v7703_v61 = vld [vmem:[#allocation8 + $0x210] sm:$0xff]   ;;  %v8728_v34 = vpack.c.bf16 %v8565_v1, %v8453_v16  ;;  %v7704_v16 = vld [vmem:[#allocation8 + $0x1a8] sm:$0xff]   ;;  %v8743_v1 = vpack.c.bf16 %v8578_v4, %v8521_v19 }
  0xed   : > { %1878 = vmatprep.mubr.bf16.mxu1 %v8460_v20  ;;  %v7712_v19 = vld [vmem:[#allocation8 + $0x1b8] sm:$0xff]   ;;  %v7711_v4 = vld [vmem:[#allocation8 + $0x230] sm:$0xff]  }
  0xf1   : > { %1188 = vmatmul.mubr.bf16.gmra.mrb[48].mxu0 %v1542_v32  ;;  %v7708_v32 = vld [vmem:[#allocation8 + $0x1b0] sm:$0xff]  }
  0xf2   : > { %1195 = vmatprep.mubr.bf16.mxu0 %v8460_v20  ;;  %v1497_v20 = vld [vmem:[#allocation2 + $0x2d0] sm:$0xff] }
  0xf3   : > { %v1551_v45 = vpack.c.bf16 %v8515_v9, %v1497_v20  ;;  %v1511_v9 = vpack.c.bf16 %v8542_v54, %v8358_v25  ;;  %v8712_v25 = vpack.c.bf16 %v8553_v33, %v8406_v49  ;;  %v7695_v54 = vld [vmem:[#allocation8 + $0x190] sm:$0xff]   ;;  %v7697_v49 = vld [vmem:[#allocation8 + $0x198] sm:$0xff]   ;;  %v7698_v33 = vld [vmem:[#allocation8 + $0x1e0] sm:$0xff]  }
  0xf4   : > { %1879 = vmatmul.mubr.bf16.gmra.mrb[48].mxu1 %v1545_v8  ;;  %v8749_v20 = vld [vmem:[#allocation2 + $0x270] sm:$0xff] }
  0xf5   : > { %1886 = vmatprep.mubr.bf16.mxu1 %v8488_v41  ;;  %3332 = vst [vmem:[#allocation2 + $0x270] sm:$0x1] %v8582_v47 }
  0xf9   : > { %1196 = vmatmul.mubr.bf16.gmra.mrb[52].mxu0 %v1545_v8  ;;  %v8747_v8 = vpack.c.bf16 %v8580_v29, %v10167_v55  ;;  %v8758_v29 = vpack.c.bf16 %v8586_v0, %v8560_v52  ;;  %v8773_v52 = vpack.c.bf16 %v8604_v51, %v8591_v3  ;;  %v8777_v0 = vpack.c.bf16 %v8610_v53, %v8595_v42  ;;  %v8794_v51 = vld [vmem:[#allocation2 + $0x300] sm:$0xff]  ;;  %v2170_v53 = vld [vmem:[#allocation2 + $0x68] sm:$0xff] }
  0xfa   : > { %1203 = vmatprep.mubr.bf16.mxu0 %v8488_v41  ;;  %v8690_v41 = vpack.c.bf16 %v8582_v47, %v8582_v47  ;;  %v8788_v3 = vpack.c.bf16 %v8623_v31, %v8615_v13  ;;  %v8792_v42 = vpack.c.bf16 %v8629_v56, %v8618_v5  ;;  %3335 = vst [vmem:[#allocation2 + $0x300] sm:$0x1] %v8582_v47  ;;  %v2172_v31 = vld [vmem:[#allocation2 + $0x78] sm:$0xff]  ;;  %v2179_v56 = vld [vmem:[#allocation2 + $0xb0] sm:$0xff] }
  0xfb   : > { %v8803_v13 = vpack.c.bf16 %v8640_v46, %v8634_v43  ;;  %v2178_v43 = vld [vmem:[#allocation2 + $0xa8] sm:$0xff] }
  0xfc   : > { %1887 = vmatmul.mubr.bf16.gmra.mrb[52].mxu1 %v1548_v12  ;;  %v2182_v46 = vld [vmem:[#allocation2 + $0xc8] sm:$0xff] }
  0xfd   : > { %1894 = vmatprep.mubr.bf16.mxu1 %v8506_v58 }
 0x101   : > { %1204 = vmatmul.mubr.bf16.gmra.mrb[56].mxu0 %v1548_v12  ;;  %v7710_v12 = vld [vmem:[#allocation8 + $0x1f8] sm:$0xff]  }
 0x102   : > { %1211 = vmatprep.mubr.bf16.mxu0 %v8506_v58  ;;  %v8696_v58 = vld [vmem:[#allocation2 + $0x1b0] sm:$0xff] }
 0x103   : > { %3328 = vst [vmem:[#allocation2 + $0x1b0] sm:$0x1] %v8582_v47 }
 0x104   : > { %1895 = vmatmul.mubr.bf16.gmra.mrb[56].mxu1 %v1551_v45 }
 0x105   : > { %1902 = vmatprep.mubr.bf16.mxu1 %v10166_v50 }
 0x109   : > { %1212 = vmatmul.mubr.bf16.gmra.mrb[60].mxu0 %v1551_v45  ;;  %v10168_v45 = vld [vmem:[#allocation16_spill] sm:$0xff] }
 0x10a   : > { %6976 = vmatprep.mubr.bf16.mxu0 %v8690_v41  ;;  %v8762_v50 = vpack.c.bf16 %v8588_v62, %v10168_v45  ;;  %v8779_v62 = vld [vmem:[#allocation2 + $0x2d0] sm:$0xff] }
 0x10b   : > { %3334 = vst [vmem:[#allocation2 + $0x2d0] sm:$0x1] %v8582_v47 }
 0x10c   : > { %1903 = vmatmul.mubr.bf16.gmra.mrb[60].mxu1 %v1554_v18  ;;  %v8764_v18 = vld [vmem:[#allocation2 + $0x2a0] sm:$0xff] }
 0x10d   : > { %7024 = vmatprep.mubr.bf16.mxu1 %v1511_v9  ;;  %3333 = vst [vmem:[#allocation2 + $0x2a0] sm:$0x1] %v8582_v47  ;;  %v2176_v47 = vld [vmem:[#allocation2 + $0x98] sm:$0xff] }
 0x111   : > { %6977 = vmatmul.mubr.bf16.vlgmr.msra.gmra.mrb[64].mxu0 %v1511_v9  ;;  %v2173_v9 = vld [vmem:[#allocation2 + $0x80] sm:$0xff] }
 0x112   : > { %6417 = vmatpush3.bf16.msra.mxu0 %v7691_v57  ;;  %6980 = vmatprep.mubr.bf16.mxu0 %v8704_v11  ;;  %v2266_v5 = vpack.c.bf16 %v2173_v9, %v2170_v53  ;;  %v8810_v57 = vpack.c.bf16 %v8644_v2, %v8637_v15  ;;  %v2184_v15 = vld [vmem:[#allocation2 + $0xd8] sm:$0xff] }
 0x113   : > { %6418 = vmatprep.subr.bf16.mxu0 %v7692_v48  ;;  %v2265_v48 = vpack.c.bf16 %v2172_v31, %v8648_v59  ;;  %v2188_v2 = vld [vmem:[#allocation2 + $0xf8] sm:$0xff]  ;;  %v2191_v59 = vld [vmem:[#allocation2 + $0x110] sm:$0xff]  ;;  %v2209_v31 = vld [vmem:[#allocation2 + $0x1a0] sm:$0xff] }
 0x114   : > { %7025 = vmatmul.mubr.bf16.vlgmr.msra.gmra.mrb[64].mxu1 %v8704_v11 }
 0x115   : > { %7028 = vmatprep.mubr.bf16.mxu1 %v8712_v25  ;;  %7057 = vmatpush3.bf16.msra.mxu1 %v8598_v44  ;;  %v7705_v44 = vld [vmem:[#allocation8 + $0x218] sm:$0xff]  }
 0x116   : > { %6419 = vmatpush3.bf16.msra.mxu0 %v7693_v30  ;;  %7058 = vmatprep.subr.bf16.mxu1 %v7701_v24  ;;  %v2269_v30 = vpack.c.bf16 %v2179_v56, %v2176_v47 }
 0x117   : > { %6420 = vmatprep.subr.bf16.mxu0 %v7694_v27  ;;  %v2185_v27 = vld [vmem:[#allocation2 + $0xe0] sm:$0xff] }
 0x119   : > { %6981 = vmatmul.mubr.bf16.gmra.mrb[68].mxu0 %v8712_v25  ;;  %7059 = vmatpush3.bf16.msra.mxu1 %v7701_v24  ;;  %v2271_v24 = vpack.c.bf16 %v2184_v15, %v8660_v39 }
 0x11a   : > { %6984 = vmatprep.mubr.bf16.mxu0 %v8718_v63  ;;  %6421 = vmatpush3.bf16.msra.mxu0 %v7695_v54  ;;  %v2268_v54 = vpack.c.bf16 %v2178_v43, %v8654_v17  ;;  %v2190_v17 = vld [vmem:[#allocation2 + $0x108] sm:$0xff] }
 0x11b   : > { %6422 = vmatprep.subr.bf16.mxu0 %v7696_v23  ;;  %7060 = vmatprep.subr.bf16.mxu1 %v7703_v61  ;;  %v2272_v23 = vpack.c.bf16 %v2185_v27, %v2182_v46 }
 0x11c   : > { %7029 = vmatmul.mubr.bf16.gmra.mrb[68].mxu1 %v8718_v63 }
 0x11d   : > { %7032 = vmatprep.mubr.bf16.mxu1 %v8728_v34  ;;  %7061 = vmatpush3.bf16.msra.mxu1 %v7703_v61  ;;  %v2197_v61 = vld [vmem:[#allocation2 + $0x140] sm:$0xff] }
 0x11e   : > { %6423 = vmatpush3.bf16.msra.mxu0 %v7697_v49  ;;  %7062 = vmatprep.subr.bf16.mxu1 %v7705_v44  ;;  %v2275_v49 = vpack.c.bf16 %v2191_v59, %v2188_v2 }
 0x11f   : > { %6424 = vmatprep.subr.bf16.mxu0 %v7698_v33 }
 0x121   : > { %6985 = vmatmul.mubr.bf16.gmra.mrb[72].mxu0 %v8728_v34  ;;  %7063 = vmatpush3.bf16.msra.mxu1 %v7705_v44  ;;  %v2274_v44 = vpack.c.bf16 %v2190_v17, %v8666_v60 }
 0x122   : > { %6988 = vmatprep.mubr.bf16.mxu0 %v8734_v35  ;;  %6425 = vmatpush3.bf16.msra.mxu0 %v7700_v6 }
 0x123   : > { %6426 = vmatprep.subr.bf16.mxu0 %v7702_v36  ;;  %7064 = vmatprep.subr.bf16.mxu1 %v7707_v38 }
 0x124   : > { %7033 = vmatmul.mubr.bf16.gmra.mrb[72].mxu1 %v8734_v35 }
 0x125   : > { %7036 = vmatprep.mubr.bf16.mxu1 %v8743_v1  ;;  %7065 = vmatpush3.bf16.msra.mxu1 %v7707_v38 }
 0x126   : > { %6427 = vmatpush3.bf16.msra.mxu0 %v7704_v16  ;;  %7066 = vmatprep.subr.bf16.mxu1 %v7709_v10 }
 0x127   : > { %6428 = vmatprep.subr.bf16.mxu0 %v7706_v22  ;;  %v2203_v22 = vld [vmem:[#allocation2 + $0x170] sm:$0xff] }
 0x129   : > { %6989 = vmatmul.mubr.bf16.gmra.mrb[76].mxu0 %v8743_v1  ;;  %7067 = vmatpush3.bf16.msra.mxu1 %v7709_v10 }
 0x12a   : > { %6992 = vmatprep.mubr.bf16.mxu0 %v8747_v8  ;;  %6429 = vmatpush3.bf16.msra.mxu0 %v7708_v32 }
 0x12b   : > { %6430 = vmatprep.subr.bf16.mxu0 %v7710_v12  ;;  %7068 = vmatprep.subr.bf16.mxu1 %v7711_v4 }
 0x12c   : > { %7037 = vmatmul.mubr.bf16.gmra.mrb[76].mxu1 %v8747_v8 }
 0x12d   : > { %7040 = vmatprep.mubr.bf16.mxu1 %v8758_v29  ;;  %7069 = vmatpush3.bf16.msra.mxu1 %v7711_v4 }
 0x12e   : > { %6431 = vmatpush3.bf16.msra.mxu0 %v7712_v19  ;;  %7070 = vmatprep.subr.bf16.mxu1 %v7713_v21 }
 0x131   : > { %6993 = vmatmul.mubr.bf16.gmra.mrb[80].mxu0 %v8758_v29  ;;  %7071 = vmatpush3.bf16.msra.mxu1 %v7713_v21 }
 0x132   : > { %6996 = vmatprep.mubr.bf16.mxu0 %v8762_v50 }
 0x134   : > { %7041 = vmatmul.mubr.bf16.gmra.mrb[80].mxu1 %v8762_v50 }
 0x135   : > { %7044 = vmatprep.mubr.bf16.mxu1 %v8773_v52 }
 0x139   : > { %6997 = vmatmul.mubr.bf16.gmra.mrb[84].mxu0 %v8773_v52 }
 0x13a   : > { %7000 = vmatprep.mubr.bf16.mxu0 %v8777_v0 }
 0x13c   : > { %7045 = vmatmul.mubr.bf16.gmra.mrb[84].mxu1 %v8777_v0 }
 0x13d   : > { %7048 = vmatprep.mubr.bf16.mxu1 %v8788_v3 }
 0x141   : > { %7001 = vmatmul.mubr.bf16.gmra.mrb[88].mxu0 %v8788_v3 }
 0x142   : > { %7004 = vmatprep.mubr.bf16.mxu0 %v8792_v42 }
 0x144   : > { %7049 = vmatmul.mubr.bf16.gmra.mrb[88].mxu1 %v8792_v42 }
 0x145   : > { %7052 = vmatprep.mubr.bf16.mxu1 %v8803_v13 }
 0x149   : > { %7005 = vmatmul.mubr.bf16.gmra.mrb[92].mxu0 %v8803_v13 }
 0x14a   : > { %2538 = vmatprep.mubr.bf16.mxu0 %v2266_v5  ;;  %v2206_v5 = vld [vmem:[#allocation2 + $0x188] sm:$0xff] }
 0x14b   : > { %v2284_v27 = vpack.c.bf16 %v2209_v31, %v2206_v5 }
 0x14c   : > { %7053 = vmatmul.mubr.bf16.gmra.mrb[92].mxu1 %v8810_v57 }
 0x14d   : > { %7072 = vmatprep.mubr.bf16.mxu1 %v8704_v11 }
 0x151   : > { %2539 = vmatmul.mubr.bf16.vlgmr.msra.gmra.mrb[96].mxu0 %v2265_v48 }
 0x152   : > { %2546 = vmatprep.mubr.bf16.mxu0 %v2269_v30 }
 0x154   : > { %7073 = vmatmul.mubr.bf16.vlgmr.msra.gmra.mrb[64].mxu1 %v8712_v25  ;;  %v2194_v25 = vld [vmem:[#allocation2 + $0x128] sm:$0xff] }
 0x155   : > { %7076 = vmatprep.mubr.bf16.mxu1 %v8718_v63  ;;  %v2278_v16 = vpack.c.bf16 %v2197_v61, %v2194_v25 }
 0x159   : > { %2547 = vmatmul.mubr.bf16.gmra.mrb[100].mxu0 %v2268_v54 }
 0x15a   : > { %2554 = vmatprep.mubr.bf16.mxu0 %v2272_v23 }
 0x15c   : > { %7077 = vmatmul.mubr.bf16.gmra.mrb[68].mxu1 %v8728_v34  ;;  %v2196_v34 = vld [vmem:[#allocation2 + $0x138] sm:$0xff] }
 0x15d   : > { %7080 = vmatprep.mubr.bf16.mxu1 %v8734_v35  ;;  %v2200_v35 = vld [vmem:[#allocation2 + $0x158] sm:$0xff]  ;;  %v2277_v10 = vpack.c.bf16 %v2196_v34, %v8672_v7  ;;  %v2202_v7 = vld [vmem:[#allocation2 + $0x168] sm:$0xff] }
 0x15e   : > { %v2281_v60 = vpack.c.bf16 %v2203_v22, %v2200_v35  ;;  %v2280_v30 = vpack.c.bf16 %v2202_v7, %v8678_v26  ;;  %v2208_v26 = vld [vmem:[#allocation2 + $0x198] sm:$0xff] }
 0x15f   : > { %v2283_v25 = vpack.c.bf16 %v2208_v26, %v8684_v40  ;;  %v2214_v40 = vld [vmem:[#allocation2 + $0x1c8] sm:$0xff] }
 0x161   : > { %2555 = vmatmul.mubr.bf16.gmra.mrb[104].mxu0 %v2271_v24  ;;  %v2212_v24 = vld [vmem:[#allocation2 + $0x1b8] sm:$0xff] }
 0x162   : > { %2562 = vmatprep.mubr.bf16.mxu0 %v2275_v49  ;;  %v2215_v49 = vld [vmem:[#allocation2 + $0x1d0] sm:$0xff] }
 0x164   : > { %v6160_v11 = vpop.f32.mrb[0].mxu0  ;;  %7081 = vmatmul.mubr.bf16.gmra.mrb[72].mxu1 %v8743_v1 }
 0x165   : > { %v6161_v33 = vpop.f32.mrb[1].mxu0  ;;  %7084 = vmatprep.mubr.bf16.mxu1 %v8747_v8 }
 0x166   : > { %v6163_v6 = vpop.f32.mrb[2].mxu0  ;;  %v8821_v63 = vadd.f32 %v6161_v33, %v6160_v11  ;;  %v6296_v32 = vpop.f32.mrb[0].mxu1 }
 0x167   : > { %v6164_v36 = vpop.f32.mrb[3].mxu0  ;;  %v6297_v12 = vpop.f32.mrb[1].mxu1 }
 0x168   : > { %v8824_v39 = vadd.f32 %v6164_v36, %v6163_v6  ;;  %v8829_v4 = vadd.f32 %v6297_v12, %v6296_v32  ;;  %v6299_v45 = vpop.f32.mrb[2].mxu1  ;;  %v2287_v36 = vpack.c.bf16 %v2215_v49, %v2212_v24  ;;  %v2221_v32 = vld [vmem:[#allocation2 + $0x200] sm:$0xff] }
 0x169   : > { %2563 = vmatmul.mubr.bf16.gmra.mrb[108].mxu0 %v2274_v44  ;;  %v6300_v53 = vpop.f32.mrb[3].mxu1 }
 0x16a   : > { %2570 = vmatprep.mubr.bf16.mxu0 %v2278_v16  ;;  %v8833_v8 = vadd.f32 %v6300_v53, %v6299_v45 }
 0x16c   : > { %v6166_v38 = vpop.f32.mrb[4].mxu0  ;;  %7085 = vmatmul.mubr.bf16.gmra.mrb[76].mxu1 %v8758_v29 }
 0x16d   : > { %v6167_v55 = vpop.f32.mrb[5].mxu0  ;;  %7088 = vmatprep.mubr.bf16.mxu1 %v8762_v50 }
 0x16e   : > { %v6169_v19 = vpop.f32.mrb[6].mxu0  ;;  %v8831_v21 = vadd.f32 %v6167_v55, %v6166_v38  ;;  %v6302_v56 = vpop.f32.mrb[4].mxu1  ;;  %v2218_v38 = vld [vmem:[#allocation2 + $0x1e8] sm:$0xff] }
 0x16f   : > { %v6170_v1 = vpop.f32.mrb[7].mxu0  ;;  %v6303_v43 = vpop.f32.mrb[5].mxu1 }
 0x170   : > { %v8835_v9 = vadd.f32 %v6170_v1, %v6169_v19  ;;  %v8840_v54 = vadd.f32 %v6303_v43, %v6302_v56  ;;  %v6305_v23 = vpop.f32.mrb[6].mxu1  ;;  %v2286_v19 = vpack.c.bf16 %v2214_v40, %v8696_v58  ;;  %v2290_v1 = vpack.c.bf16 %v2221_v32, %v2218_v38  ;;  %v2220_v58 = vld [vmem:[#allocation2 + $0x1f8] sm:$0xff] }
 0x171   : > { %2571 = vmatmul.mubr.bf16.gmra.mrb[112].mxu0 %v2277_v10  ;;  %v6306_v2 = vpop.f32.mrb[7].mxu1  ;;  %v2224_v56 = vld [vmem:[#allocation2 + $0x218] sm:$0xff] }
 0x172   : > { %2578 = vmatprep.mubr.bf16.mxu0 %v2281_v60  ;;  %v8844_v50 = vadd.f32 %v6306_v2, %v6305_v23 }
 0x174   : > { %v6172_v47 = vpop.f32.mrb[8].mxu0  ;;  %7089 = vmatmul.mubr.bf16.gmra.mrb[80].mxu1 %v8773_v52 }
 0x175   : > { %v6173_v48 = vpop.f32.mrb[9].mxu0  ;;  %7092 = vmatprep.mubr.bf16.mxu1 %v8777_v0 }
 0x176   : > { %v6175_v46 = vpop.f32.mrb[10].mxu0  ;;  %v8842_v15 = vadd.f32 %v6173_v48, %v6172_v47  ;;  %v6308_v17 = vpop.f32.mrb[8].mxu1  ;;  %v2227_v48 = vld [vmem:[#allocation2 + $0x230] sm:$0xff] }
 0x177   : > { %v6176_v29 = vpop.f32.mrb[11].mxu0  ;;  %v6309_v61 = vpop.f32.mrb[9].mxu1  ;;  %v2293_v2 = vpack.c.bf16 %v2227_v48, %v2224_v56 }
 0x178   : > { %v8846_v59 = vadd.f32 %v6176_v29, %v6175_v46  ;;  %v8851_v44 = vadd.f32 %v6309_v61, %v6308_v17  ;;  %v6311_v16 = vpop.f32.mrb[10].mxu1  ;;  %v7787_v17 = vld [vmem:[#allocation2 + $0x8] sm:$0xff] }
 0x179   : > { %2579 = vmatmul.mubr.bf16.gmra.mrb[116].mxu0 %v2280_v30  ;;  %v6312_v35 = vpop.f32.mrb[11].mxu1  ;;  %v2230_v61 = vld [vmem:[#allocation2 + $0x248] sm:$0xff] }
 0x17a   : > { %2586 = vmatprep.mubr.bf16.mxu0 %v2284_v27  ;;  %v8855_v0 = vadd.f32 %v6312_v35, %v6311_v16  ;;  %v2289_v27 = vpack.c.bf16 %v2220_v58, %v8706_v37  ;;  %v2226_v37 = vld [vmem:[#allocation2 + $0x228] sm:$0xff] }
 0x17b   : > { %v2292_v35 = vpack.c.bf16 %v2226_v37, %v8714_v28  ;;  %v2236_v28 = vld [vmem:[#allocation2 + $0x278] sm:$0xff]  ;;  %v7716_v37 = vld [vmem:[#allocation10 + $0x48] sm:$0xff]  }
 0x17c   : > { %v6178_v11 = vpop.f32.mrb[12].mxu0  ;;  %7093 = vmatmul.mubr.bf16.gmra.mrb[84].mxu1 %v8788_v3 }
 0x17d   : > { %v6179_v33 = vpop.f32.mrb[13].mxu0  ;;  %7096 = vmatprep.mubr.bf16.mxu1 %v8792_v42 }
 0x17e   : > { %v6181_v6 = vpop.f32.mrb[14].mxu0  ;;  %v8853_v34 = vadd.f32 %v6179_v33, %v6178_v11  ;;  %v8879_v33 = vpack.c.bf16 %v7787_v17, %v7787_v17 }
 0x17f   : > { %v6182_v52 = vpop.f32.mrb[15].mxu0  ;;  %v6314_v10 = vpop.f32.mrb[12].mxu1 }
 0x180   : > { %v8857_v22 = vadd.f32 %v6182_v52, %v6181_v6  ;;  %v6315_v60 = vpop.f32.mrb[13].mxu1  ;;  %v2233_v6 = vld [vmem:[#allocation2 + $0x260] sm:$0xff] }
 0x181   : > { %2587 = vmatmul.mubr.bf16.gmra.mrb[120].mxu0 %v2283_v25  ;;  %v8862_v53 = vadd.f32 %v6315_v60, %v6314_v10  ;;  %v6317_v7 = vpop.f32.mrb[14].mxu1  ;;  %v2296_v32 = vpack.c.bf16 %v2233_v6, %v2230_v61  ;;  %v7717_v61 = vld [vmem:[#allocation10 + $0x8] sm:$0xff]   ;;  %v7718_v6 = vld [vmem:[#allocation10 + $0x50] sm:$0xff]  }
 0x182   : > { %2594 = vmatprep.mubr.bf16.mxu0 %v2287_v36  ;;  %v6318_v31 = vpop.f32.mrb[15].mxu1 }
 0x183   : > { %v8866_v42 = vadd.f32 %v6318_v31, %v6317_v7  ;;  %v7714_v7 = vld [vmem:[#allocation10 + $0x40] sm:$0xff]   ;;  %v2239_v31 = vld [vmem:[#allocation2 + $0x290] sm:$0xff] }
 0x184   : > { %v6184_v55 = vpop.f32.mrb[16].mxu0  ;;  %7097 = vmatmul.mubr.bf16.gmra.mrb[88].mxu1 %v8803_v13  ;;  %6552 = vmatprep.subr.bf16.mxu0 %v7714_v7 }
 0x185   : > { %v6185_v12 = vpop.f32.mrb[17].mxu0  ;;  %7100 = vmatprep.mubr.bf16.mxu1 %v8810_v57 }
 0x186   : > { %v6187_v45 = vpop.f32.mrb[18].mxu0  ;;  %v8864_v5 = vadd.f32 %v6185_v12, %v6184_v55 }
 0x187   : > { %v6188_v3 = vpop.f32.mrb[19].mxu0  ;;  %v6320_v43 = vpop.f32.mrb[16].mxu1 }
 0x188   : > { %v8868_v47 = vadd.f32 %v6188_v3, %v6187_v45  ;;  %v6321_v23 = vpop.f32.mrb[17].mxu1  ;;  %v7715_v3 = vld [vmem:[#allocation10] sm:$0xff]  }
 0x189   : > { %2595 = vmatmul.mubr.bf16.gmra.mrb[124].mxu0 %v2286_v19  ;;  %v8873_v26 = vadd.f32 %v6321_v23, %v6320_v43  ;;  %v6323_v24 = vpop.f32.mrb[18].mxu1 }
 0x18a   : > { %2602 = vmatprep.mubr.bf16.mxu0 %v2290_v1  ;;  %v6324_v11 = vpop.f32.mrb[19].mxu1  ;;  %v2232_v1 = vld [vmem:[#allocation2 + $0x258] sm:$0xff]  ;;  %6553 = vmatpush3.bf16.msra.mxu0 %v7715_v3 }
 0x18b   : > { %v8877_v57 = vadd.f32 %v6324_v11, %v6323_v24  ;;  %6554 = vmatprep.subr.bf16.mxu0 %v7716_v37  ;;  %v7724_v37 = vld [vmem:[#allocation10 + $0x60] sm:$0xff]  }
 0x18c   : > { %v6190_v30 = vpop.f32.mrb[20].mxu0  ;;  %7101 = vmatmul.mubr.bf16.gmra.mrb[92].mxu1 %v8690_v41 }
 0x18d   : > { %v6191_v46 = vpop.f32.mrb[21].mxu0  ;;  %7120 = vmatprep.mubr.bf16.mxu1 %v8879_v33 }
 0x18e   : > { %v6193_v29 = vpop.f32.mrb[22].mxu0  ;;  %v8875_v49 = vadd.f32 %v6191_v46, %v6190_v30  ;;  %v2295_v30 = vpack.c.bf16 %v2232_v1, %v8730_v14  ;;  %v2238_v14 = vld [vmem:[#allocation2 + $0x288] sm:$0xff]  ;;  %6555 = vmatpush3.bf16.msra.mxu0 %v7717_v61 }
 0x18f   : > { %v6194_v13 = vpop.f32.mrb[23].mxu0  ;;  %v6326_v16 = vpop.f32.mrb[20].mxu1  ;;  %6556 = vmatprep.subr.bf16.mxu0 %v7718_v6 }
 0x190   : > { %v8881_v25 = vadd.f32 %v6194_v13, %v6193_v29  ;;  %v6327_v40 = vpop.f32.mrb[21].mxu1 }
 0x191   : > { %2603 = vmatmul.mubr.bf16.gmra.mrb[128].mxu0 %v2289_v27  ;;  %v8886_v55 = vadd.f32 %v6327_v40, %v6326_v16  ;;  %v6329_v10 = vpop.f32.mrb[22].mxu1  ;;  %v2299_v27 = vpack.c.bf16 %v2239_v31, %v2236_v28  ;;  %v2242_v16 = vld [vmem:[#allocation2 + $0x2a8] sm:$0xff] }
 0x192   : > { %2610 = vmatprep.mubr.bf16.mxu0 %v2293_v2  ;;  %v6330_v19 = vpop.f32.mrb[23].mxu1 }
 0x193   : > { %v8890_v60 = vadd.f32 %v6330_v19, %v6329_v10  ;;  %v2298_v10 = vpack.c.bf16 %v2238_v14, %v8749_v20  ;;  %v2244_v20 = vld [vmem:[#allocation2 + $0x2b8] sm:$0xff] }
 0x194   : > { %v6196_v36 = vpop.f32.mrb[24].mxu0  ;;  %v2301_v14 = vpack.c.bf16 %v2244_v20, %v8764_v18  ;;  %v7727_v18 = vld [vmem:[#allocation10 + $0x68] sm:$0xff]  }
 0x195   : > { %v6197_v52 = vpop.f32.mrb[25].mxu0 }
 0x196   : > { %v6199_v38 = vpop.f32.mrb[26].mxu0  ;;  %v8888_v12 = vadd.f32 %v6197_v52, %v6196_v36  ;;  %v7719_v36 = vld [vmem:[#allocation10 + $0x80] sm:$0xff]  }
 0x197   : > { %v6200_v41 = vpop.f32.mrb[27].mxu0  ;;  %v6332_v56 = vpop.f32.mrb[24].mxu1  ;;  %v2245_v52 = vld [vmem:[#allocation2 + $0x2c0] sm:$0xff]  ;;  %7104 = vmatprep.subr.bf16.mxu1 %v7719_v36 }
 0x198   : > { %v8892_v45 = vadd.f32 %v6200_v41, %v6199_v38  ;;  %v6333_v43 = vpop.f32.mrb[25].mxu1  ;;  %7105 = vmatpush3.bf16.msra.mxu1 %v7719_v36  ;;  %v2302_v7 = vpack.c.bf16 %v2245_v52, %v2242_v16  ;;  %v7726_v36 = vld [vmem:[#allocation10 + $0x20] sm:$0xff]  }
 0x199   : > { %2611 = vmatmul.mubr.bf16.gmra.mrb[132].mxu0 %v2292_v35  ;;  %v8895_v23 = vadd.f32 %v6333_v43, %v6332_v56  ;;  %v6335_v29 = vpop.f32.mrb[26].mxu1  ;;  %v7720_v35 = vld [vmem:[#allocation10 + $0x10] sm:$0xff]   ;;  %v7723_v43 = vld [vmem:[#allocation10 + $0x18] sm:$0xff]  }
 0x19a   : > { %2618 = vmatprep.mubr.bf16.mxu0 %v2296_v32  ;;  %v6336_v13 = vpop.f32.mrb[27].mxu1  ;;  %6557 = vmatpush3.bf16.msra.mxu0 %v7720_v35 }
 0x19b   : > { %v8899_v11 = vadd.f32 %v6336_v13, %v6335_v29  ;;  %v7722_v29 = vld [vmem:[#allocation10 + $0x88] sm:$0xff]  }
 0x19c   : > { %v6202_v58 = vpop.f32.mrb[28].mxu0  ;;  %7106 = vmatprep.subr.bf16.mxu1 %v7722_v29 }
 0x19d   : > { %v6203_v48 = vpop.f32.mrb[29].mxu0  ;;  %7107 = vmatpush3.bf16.msra.mxu1 %v7722_v29 }
 0x19e   : > { %v6205_v46 = vpop.f32.mrb[30].mxu0  ;;  %v8897_v2 = vadd.f32 %v6203_v48, %v6202_v58 }
 0x19f   : > { %v6206_v24 = vpop.f32.mrb[31].mxu0  ;;  %v6338_v38 = vpop.f32.mrb[28].mxu1 }
 0x1a0   : > { %v8901_v17 = vadd.f32 %v6206_v24, %v6205_v46  ;;  %v6339_v41 = vpop.f32.mrb[29].mxu1  ;;  %v2248_v46 = vld [vmem:[#allocation2 + $0x2d8] sm:$0xff] }
 0x1a1   : > { %2619 = vmatmul.mubr.bf16.gmra.mrb[136].mxu0 %v2295_v30  ;;  %v8906_v3 = vadd.f32 %v6339_v41, %v6338_v38  ;;  %v6341_v28 = vpop.f32.mrb[30].mxu1  ;;  %v7721_v30 = vld [vmem:[#allocation10 + $0x58] sm:$0xff]   ;;  %v7725_v41 = vld [vmem:[#allocation10 + $0x90] sm:$0xff]  }
 0x1a2   : > { %2626 = vmatprep.mubr.bf16.mxu0 %v2299_v27  ;;  %v6342_v58 = vpop.f32.mrb[31].mxu1  ;;  %6558 = vmatprep.subr.bf16.mxu0 %v7721_v30  ;;  %v2251_v27 = vld [vmem:[#allocation2 + $0x2f0] sm:$0xff]  ;;  %v2257_v30 = vld [vmem:[#allocation2 + $0x320] sm:$0xff] }
 0x1a3   : > { %v8910_v48 = vadd.f32 %v6342_v58, %v6341_v28  ;;  %6559 = vmatpush3.bf16.msra.mxu0 %v7723_v43  ;;  %v2305_v35 = vpack.c.bf16 %v2251_v27, %v2248_v46  ;;  %7108 = vmatprep.subr.bf16.mxu1 %v7725_v41  ;;  %v7729_v28 = vld [vmem:[#allocation10 + $0x28] sm:$0xff]   ;;  %v7728_v43 = vld [vmem:[#allocation10 + $0x98] sm:$0xff]   ;;  %v7730_v27 = vld [vmem:[#allocation10 + $0x70] sm:$0xff]  }
 0x1a4   : > { %v6208_v40 = vpop.f32.mrb[32].mxu0  ;;  %6560 = vmatprep.subr.bf16.mxu0 %v7724_v37  ;;  %7109 = vmatpush3.bf16.msra.mxu1 %v7725_v41  ;;  %v2254_v58 = vld [vmem:[#allocation2 + $0x308] sm:$0xff]  ;;  %v7732_v37 = vld [vmem:[#allocation10 + $0x30] sm:$0xff]  }
 0x1a5   : > { %v6209_v32 = vpop.f32.mrb[33].mxu0  ;;  %7110 = vmatprep.subr.bf16.mxu1 %v7728_v43 }
 0x1a6   : > { %v8904_v19 = vadd.f32 %v6209_v32, %v6208_v40  ;;  %v6211_v1 = vpop.f32.mrb[34].mxu0 }
 0x1a7   : > { %v6212_v31 = vpop.f32.mrb[35].mxu0  ;;  %v6344_v13 = vpop.f32.mrb[32].mxu1  ;;  %6561 = vmatpush3.bf16.msra.mxu0 %v7726_v36 }
 0x1a8   : > { %v8908_v56 = vadd.f32 %v6212_v31, %v6211_v1  ;;  %v6345_v6 = vpop.f32.mrb[33].mxu1  ;;  %v2250_v31 = vld [vmem:[#allocation2 + $0x2e8] sm:$0xff]  ;;  %6562 = vmatprep.subr.bf16.mxu0 %v7727_v18  ;;  %7111 = vmatpush3.bf16.msra.mxu1 %v7728_v43  ;;  %v7735_v18 = vld [vmem:[#allocation10 + $0x38] sm:$0xff]  }
 0x1a9   : > { %2627 = vmatmul.mubr.bf16.gmra.mrb[140].mxu0 %v2298_v10  ;;  %v8915_v40 = vadd.f32 %v6345_v6, %v6344_v13  ;;  %v6347_v38 = vpop.f32.mrb[34].mxu1  ;;  %v2308_v6 = vpack.c.bf16 %v2257_v30, %v2254_v58 }
 0x1aa   : > { %2634 = vmatprep.mubr.bf16.mxu0 %v2302_v7  ;;  %v6348_v10 = vpop.f32.mrb[35].mxu1 }
 0x1ab   : > { %v8919_v7 = vadd.f32 %v6348_v10, %v6347_v38  ;;  %6563 = vmatpush3.bf16.msra.mxu0 %v7729_v28  ;;  %v2256_v28 = vld [vmem:[#allocation2 + $0x318] sm:$0xff] }
 0x1ac   : > { %v6214_v24 = vpop.f32.mrb[36].mxu0  ;;  %6564 = vmatprep.subr.bf16.mxu0 %v7730_v27 }
 0x1ad   : > { %v6215_v61 = vpop.f32.mrb[37].mxu0 }
 0x1ae   : > { %v8913_v16 = vadd.f32 %v6215_v61, %v6214_v24  ;;  %v6217_v52 = vpop.f32.mrb[38].mxu0  ;;  %v2304_v24 = vpack.c.bf16 %v2250_v31, %v8779_v62  ;;  %v7733_v62 = vld [vmem:[#allocation10 + $0x78] sm:$0xff]   ;;  %v7734_v31 = vld [vmem:[#allocation10 + $0xa8] sm:$0xff]  }
 0x1af   : > { %v6218_v32 = vpop.f32.mrb[39].mxu0  ;;  %v6350_v46 = vpop.f32.mrb[36].mxu1  ;;  %6565 = vmatpush3.bf16.msra.mxu0 %v7732_v37 }
 0x1b0   : > { %v8917_v1 = vadd.f32 %v6218_v32, %v6217_v52  ;;  %v6351_v13 = vpop.f32.mrb[37].mxu1  ;;  %v7731_v32 = vld [vmem:[#allocation10 + $0xa0] sm:$0xff]   ;;  %6566 = vmatprep.subr.bf16.mxu0 %v7733_v62 }
 0x1b1   : > { %2635 = vmatmul.mubr.bf16.gmra.mrb[144].mxu0 %v2301_v14  ;;  %v8924_v36 = vadd.f32 %v6351_v13, %v6350_v46  ;;  %v6353_v52 = vpop.f32.mrb[38].mxu1  ;;  %7112 = vmatprep.subr.bf16.mxu1 %v7731_v32 }
 0x1b2   : > { %2642 = vmatprep.mubr.bf16.mxu0 %v2305_v35  ;;  %v6354_v38 = vpop.f32.mrb[39].mxu1  ;;  %7113 = vmatpush3.bf16.msra.mxu1 %v7731_v32 }
 0x1b3   : > { %v8928_v41 = vadd.f32 %v6354_v38, %v6353_v52  ;;  %6567 = vmatpush3.bf16.msra.mxu0 %v7735_v18  ;;  %7114 = vmatprep.subr.bf16.mxu1 %v7734_v31 }
 0x1b4   : > { %v6220_v20 = vpop.f32.mrb[40].mxu0 }
 0x1b5   : > { %v6221_v29 = vpop.f32.mrb[41].mxu0 }
 0x1b6   : > { %v8922_v61 = vadd.f32 %v6221_v29, %v6220_v20  ;;  %v6223_v14 = vpop.f32.mrb[42].mxu0  ;;  %v2307_v20 = vpack.c.bf16 %v2256_v28, %v8794_v51  ;;  %7115 = vmatpush3.bf16.msra.mxu1 %v7734_v31  ;;  %v7737_v51 = vld [vmem:[#allocation10 + $0xb8] sm:$0xff]  }
 0x1b7   : > { %v6224_v35 = vpop.f32.mrb[43].mxu0  ;;  %v6356_v30 = vpop.f32.mrb[40].mxu1 }
 0x1b8   : > { %v8926_v10 = vadd.f32 %v6224_v35, %v6223_v14  ;;  %v6357_v46 = vpop.f32.mrb[41].mxu1 }
 0x1b9   : > { %2643 = vmatmul.mubr.bf16.gmra.mrb[148].mxu0 %v2304_v24  ;;  %v8933_v13 = vadd.f32 %v6357_v46, %v6356_v30  ;;  %v6359_v24 = vpop.f32.mrb[42].mxu1 }
 0x1ba   : > { %10169 = vst [vmem:[#allocation15_spill] sm:$0xff] %v8926_v10  ;;  %2650 = vmatprep.mubr.bf16.mxu0 %v2308_v6  ;;  %v6360_v14 = vpop.f32.mrb[43].mxu1  ;;  %v7736_v6 = vld [vmem:[#allocation10 + $0xb0] sm:$0xff]  }
 0x1bb   : > { %v8937_v35 = vadd.f32 %v6360_v14, %v6359_v24  ;;  %7116 = vmatprep.subr.bf16.mxu1 %v7736_v6 }
 0x1bc   : > { %v6226_v58 = vpop.f32.mrb[44].mxu0  ;;  %7117 = vmatpush3.bf16.msra.mxu1 %v7736_v6 }
 0x1bd   : > { %v6227_v43 = vpop.f32.mrb[45].mxu0  ;;  %10170 = vst [vmem:[#allocation16_spill] sm:$0xff] %v8937_v35  ;;  %7118 = vmatprep.subr.bf16.mxu1 %v7737_v51 }
 0x1be   : > { %v8931_v27 = vadd.f32 %v6227_v43, %v6226_v58  ;;  %v6229_v29 = vpop.f32.mrb[46].mxu0 }
 0x1bf   : > { %v6230_v37 = vpop.f32.mrb[47].mxu0  ;;  %v6362_v32 = vpop.f32.mrb[44].mxu1 }
 0x1c0   : > { %v8935_v52 = vadd.f32 %v6230_v37, %v6229_v29  ;;  %v6363_v18 = vpop.f32.mrb[45].mxu1  ;;  %7119 = vmatpush3.bf16.msra.mxu1 %v7737_v51 }
 0x1c1   : > { %2651 = vmatmul.mubr.bf16.gmra.mrb[152].mxu0 %v2307_v20  ;;  %v8942_v58 = vadd.f32 %v6363_v18, %v6362_v32  ;;  %v6365_v30 = vpop.f32.mrb[46].mxu1 }
 0x1c2   : > { %2658 = vmatprep.mubr.bf16.mxu0 %v8879_v33  ;;  %v6366_v46 = vpop.f32.mrb[47].mxu1 }
 0x1c3   : > { %v8946_v29 = vadd.f32 %v6366_v46, %v6365_v30 }
 0x1c4   : > { %v6232_v38 = vpop.f32.mrb[48].mxu0 }
 0x1c5   : > { %v6233_v62 = vpop.f32.mrb[49].mxu0  ;;  %10173 = vst [vmem:[#allocation19_spill] sm:$0xff] %v8946_v29 }
 0x1c6   : > { %v8940_v28 = vadd.f32 %v6233_v62, %v6232_v38  ;;  %v6235_v31 = vpop.f32.mrb[50].mxu0 }
 0x1c7   : > { %v6236_v43 = vpop.f32.mrb[51].mxu0  ;;  %v6368_v37 = vpop.f32.mrb[48].mxu1 }
 0x1c8   : > { %10171 = vst [vmem:[#allocation17_spill] sm:$0xff] %v8940_v28  ;;  %v8944_v20 = vadd.f32 %v6236_v43, %v6235_v31  ;;  %v6369_v6 = vpop.f32.mrb[49].mxu1 }
 0x1c9   : > { %2659 = vmatmul.mubr.bf16.gmra.mrb[156].mxu0 %v8879_v33  ;;  %v8952_v62 = vadd.f32 %v6369_v6, %v6368_v37  ;;  %v6371_v51 = vpop.f32.mrb[50].mxu1 }
 0x1ca   : > { %10172 = vst [vmem:[#allocation18_spill] sm:$0xff] %v8944_v20  ;;  %3832 = vmatprep.mubr.bf16.mxu0 %v8879_v33  ;;  %v6372_v28 = vpop.f32.mrb[51].mxu1 }
 0x1cb   : > { %10175 = vst [vmem:[#allocation21_spill] sm:$0xff] %v8952_v62  ;;  %v8956_v30 = vadd.f32 %v6372_v28, %v6371_v51 }
 0x1cc   : > { %v6238_v24 = vpop.f32.mrb[52].mxu0 }
 0x1cd   : > { %v6239_v14 = vpop.f32.mrb[53].mxu0  ;;  %10177 = vst [vmem:[#allocation23_spill] sm:$0xff] %v8956_v30 }
 0x1ce   : > { %v8950_v38 = vadd.f32 %v6239_v14, %v6238_v24  ;;  %v6241_v32 = vpop.f32.mrb[54].mxu0 }
 0x1cf   : > { %v6242_v18 = vpop.f32.mrb[55].mxu0  ;;  %v6374_v46 = vpop.f32.mrb[52].mxu1 }
 0x1d0   : > { %10174 = vst [vmem:[#allocation20_spill] sm:$0xff] %v8950_v38  ;;  %v8954_v31 = vadd.f32 %v6242_v18, %v6241_v32  ;;  %v6375_v35 = vpop.f32.mrb[53].mxu1 }
 0x1d1   : > { %3833 = vmatmul.mubr.bf16.vlgmr.msra.gmra.mrb[160].mxu0 %v8879_v33  ;;  %v8961_v14 = vadd.f32 %v6375_v35, %v6374_v46  ;;  %v6377_v37 = vpop.f32.mrb[54].mxu1 }
 0x1d2   : > { %10176 = vst [vmem:[#allocation22_spill] sm:$0xff] %v8954_v31  ;;  %v6378_v62 = vpop.f32.mrb[55].mxu1 }
 0x1d3   : > { %v8965_v32 = vadd.f32 %v6378_v62, %v6377_v37 }
 0x1d4   : > { %v6244_v43 = vpop.f32.mrb[56].mxu0 }
 0x1d5   : > { %v6245_v20 = vpop.f32.mrb[57].mxu0  ;;  %10180 = vst [vmem:[#allocation26_spill] sm:$0xff] %v8965_v32 }
 0x1d6   : > { %v8959_v29 = vadd.f32 %v6245_v20, %v6244_v43  ;;  %v6247_v24 = vpop.f32.mrb[58].mxu0 }
 0x1d7   : > { %v6248_v6 = vpop.f32.mrb[59].mxu0  ;;  %v6380_v51 = vpop.f32.mrb[56].mxu1 }
 0x1d8   : > { %10178 = vst [vmem:[#allocation24_spill] sm:$0xff] %v8959_v29  ;;  %v8963_v38 = vadd.f32 %v6248_v6, %v6247_v24  ;;  %v6381_v33 = vpop.f32.mrb[57].mxu1 }
 0x1d9   : > { %v8969_v10 = vadd.f32 %v6381_v33, %v6380_v51  ;;  %v6383_v20 = vpop.f32.mrb[58].mxu1 }
 0x1da   : > { %10179 = vst [vmem:[#allocation25_spill] sm:$0xff] %v8963_v38  ;;  %v6384_v35 = vpop.f32.mrb[59].mxu1 }
 0x1db   : > { %v8973_v29 = vadd.f32 %v6384_v35, %v6383_v20 }
 0x1dc   : > { %v6250_v28 = vpop.f32.mrb[60].mxu0 }
 0x1dd   : > { %v6251_v18 = vpop.f32.mrb[61].mxu0 }
 0x1de   : > { %v8967_v30 = vadd.f32 %v6251_v18, %v6250_v28  ;;  %v6253_v31 = vpop.f32.mrb[62].mxu0 }
 0x1df   : > { %v6254_v43 = vpop.f32.mrb[63].mxu0  ;;  %v6386_v6 = vpop.f32.mrb[60].mxu1 }
 0x1e0   : > { %v8971_v46 = vadd.f32 %v6254_v43, %v6253_v31  ;;  %v6387_v38 = vpop.f32.mrb[61].mxu1 }
 0x1e1   : > { %v8977_v18 = vadd.f32 %v6387_v38, %v6386_v6  ;;  %v6389_v51 = vpop.f32.mrb[62].mxu1 }
 0x1e2   : > { %v6390_v20 = vpop.f32.mrb[63].mxu1 }
 0x1e4   : > { %v6978_v24 = vpop.f32.mrb[64].mxu0 }
 0x1e5   : > { %v1263_v62 = vadd.f32 %v6978_v24, %v8831_v21  ;;  %v1254_v37 = vpop.f32.mrb[65].mxu0  ;;  %v8987_v24 = vadd.f32 %v6390_v20, %v6389_v51 }
 0x1e6   : > { %v1255_v32 = vadd.f32 %v8821_v63, %v1254_v37  ;;  %v6979_v28 = vpop.f32.mrb[66].mxu0 }
 0x1e7   : > { %v8980_v33 = vadd.f32 %v8840_v54, %v1263_v62  ;;  %v1266_v31 = vadd.f32 %v6979_v28, %v8835_v9  ;;  %v1257_v43 = vpop.f32.mrb[67].mxu0 }
 0x1e8   : > { %v8984_v35 = vadd.f32 %v8829_v4, %v1255_v32  ;;  %v1258_v21 = vadd.f32 %v8824_v39, %v1257_v43 }
 0x1e9   : > { %v8990_v63 = vadd.f32 %v8844_v50, %v1266_v31 }
 0x1ea   : > { %v8993_v38 = vadd.f32 %v8833_v8, %v1258_v21 }
 0x1ec   : > { %v6982_v6 = vpop.f32.mrb[68].mxu0 }
 0x1ed   : > { %v1279_v54 = vadd.f32 %v6982_v6, %v8853_v34  ;;  %v1270_v62 = vpop.f32.mrb[69].mxu0 }
 0x1ee   : > { %v1271_v9 = vadd.f32 %v8842_v15, %v1270_v62  ;;  %v6983_v37 = vpop.f32.mrb[70].mxu0 }
 0x1ef   : > { %v8998_v4 = vadd.f32 %v8862_v53, %v1279_v54  ;;  %v1282_v39 = vadd.f32 %v6983_v37, %v8857_v22  ;;  %v1273_v32 = vpop.f32.mrb[71].mxu0 }
 0x1f0   : > { %v9002_v28 = vadd.f32 %v8851_v44, %v1271_v9  ;;  %v1274_v50 = vadd.f32 %v8846_v59, %v1273_v32 }
 0x1f1   : > { %v9006_v8 = vadd.f32 %v8866_v42, %v1282_v39 }
 0x1f2   : > { %v9009_v34 = vadd.f32 %v8855_v0, %v1274_v50  ;;  %v9059_v50 = vld [vmem:[#allocation10 + $0x140] sm:$0xff]  }
 0x1f3   : > { %7152 = vmatprep.subr.bf16.mxu1 %v9059_v50 }
 0x1f4   : > { %v6986_v51 = vpop.f32.mrb[72].mxu0 }
 0x1f5   : > { %v1295_v15 = vadd.f32 %v6986_v51, %v8875_v49  ;;  %v1286_v31 = vpop.f32.mrb[73].mxu0 }
 0x1f6   : > { %v1287_v53 = vadd.f32 %v8864_v5, %v1286_v31  ;;  %v6987_v43 = vpop.f32.mrb[74].mxu0  ;;  %v10181_v31 = vld [vmem:[#allocation15_spill] sm:$0xff] }
 0x1f7   : > { %v9014_v22 = vadd.f32 %v8886_v55, %v1295_v15  ;;  %v1298_v44 = vadd.f32 %v6987_v43, %v8881_v25  ;;  %v1289_v20 = vpop.f32.mrb[75].mxu0  ;;  %v10182_v43 = vld [vmem:[#allocation19_spill] sm:$0xff] }
 0x1f8   : > { %v9018_v59 = vadd.f32 %v8873_v26, %v1287_v53  ;;  %v1290_v42 = vadd.f32 %v8868_v47, %v1289_v20  ;;  %v10183_v20 = vld [vmem:[#allocation16_spill] sm:$0xff] }
 0x1f9   : > { %v9022_v0 = vadd.f32 %v8890_v60, %v1298_v44 }
 0x1fa   : > { %v9025_v49 = vadd.f32 %v8877_v57, %v1290_v42 }
 0x1fc   : > { %v6990_v21 = vpop.f32.mrb[76].mxu0 }
 0x1fd   : > { %v1311_v5 = vadd.f32 %v6990_v21, %v8897_v2  ;;  %v1302_v6 = vpop.f32.mrb[77].mxu0 }
 0x1fe   : > { %v1303_v55 = vadd.f32 %v8888_v12, %v1302_v6  ;;  %v6991_v54 = vpop.f32.mrb[78].mxu0 }
 0x1ff   : > { %v9030_v25 = vadd.f32 %v8906_v3, %v1311_v5  ;;  %v1314_v26 = vadd.f32 %v6991_v54, %v8901_v17  ;;  %v1305_v62 = vpop.f32.mrb[79].mxu0 }
 0x200   : > { %v9034_v47 = vadd.f32 %v8895_v23, %v1303_v55  ;;  %v1306_v60 = vadd.f32 %v8892_v45, %v1305_v62  ;;  %v10187_v62 = vld [vmem:[#allocation21_spill] sm:$0xff] }
 0x201   : > { %v9038_v57 = vadd.f32 %v8910_v48, %v1314_v26 }
 0x202   : > { %v9041_v2 = vadd.f32 %v8899_v11, %v1306_v60 }
 0x204   : > { %v6994_v9 = vpop.f32.mrb[80].mxu0 }
 0x205   : > { %v1327_v12 = vadd.f32 %v6994_v9, %v8913_v16  ;;  %v1318_v37 = vpop.f32.mrb[81].mxu0  ;;  %v10188_v9 = vld [vmem:[#allocation18_spill] sm:$0xff] }
 0x206   : > { %v1319_v3 = vadd.f32 %v8904_v19, %v1318_v37  ;;  %v6995_v39 = vpop.f32.mrb[82].mxu0  ;;  %v10189_v37 = vld [vmem:[#allocation26_spill] sm:$0xff] }
 0x207   : > { %v9046_v17 = vadd.f32 %v8924_v36, %v1327_v12  ;;  %v1330_v23 = vadd.f32 %v6995_v39, %v8917_v1  ;;  %v1321_v32 = vpop.f32.mrb[83].mxu0  ;;  %v10190_v39 = vld [vmem:[#allocation23_spill] sm:$0xff] }
 0x208   : > { %v9050_v45 = vadd.f32 %v8915_v40, %v1319_v3  ;;  %v1322_v48 = vadd.f32 %v8908_v56, %v1321_v32 }
 0x209   : > { %v9054_v11 = vadd.f32 %v8928_v41, %v1330_v23 }
 0x20a   : > { %v9057_v16 = vadd.f32 %v8919_v7, %v1322_v48 }
 0x20c   : > { %v6998_v19 = vpop.f32.mrb[84].mxu0 }
 0x20d   : > { %v1343_v36 = vadd.f32 %v6998_v19, %v8931_v27  ;;  %v1334_v1 = vpop.f32.mrb[85].mxu0 }
 0x20e   : > { %v1335_v51 = vadd.f32 %v8922_v61, %v1334_v1  ;;  %v6999_v40 = vpop.f32.mrb[86].mxu0  ;;  %v10184_v61 = vld [vmem:[#allocation20_spill] sm:$0xff] }
 0x20f   : > { %v9065_v15 = vadd.f32 %v8942_v58, %v1343_v36  ;;  %v1346_v56 = vadd.f32 %v6999_v40, %v8935_v52  ;;  %v1337_v41 = vpop.f32.mrb[87].mxu0  ;;  %v10185_v58 = vld [vmem:[#allocation17_spill] sm:$0xff]  ;;  %v10191_v36 = vld [vmem:[#allocation24_spill] sm:$0xff]  ;;  %v7744_v40 = vld [vmem:[#allocation10 + $0xc0] sm:$0xff]  }
 0x210   : > { %v9069_v7 = vadd.f32 %v8933_v13, %v1335_v51  ;;  %v1338_v53 = vadd.f32 %v10181_v31, %v1337_v41  ;;  %v10186_v13 = vld [vmem:[#allocation22_spill] sm:$0xff] }
 0x211   : > { %v9073_v44 = vadd.f32 %v10182_v43, %v1346_v56  ;;  %v10192_v43 = vld [vmem:[#allocation25_spill] sm:$0xff] }
 0x212   : > { %v9076_v27 = vadd.f32 %v10183_v20, %v1338_v53 }
 0x214   : > { %v7002_v42 = vpop.f32.mrb[88].mxu0 }
 0x215   : > { %v1359_v21 = vadd.f32 %v7002_v42, %v10184_v61  ;;  %v1350_v5 = vpop.f32.mrb[89].mxu0  ;;  %v7745_v42 = vld [vmem:[#allocation10 + $0x108] sm:$0xff]  }
 0x216   : > { %v1351_v6 = vadd.f32 %v10185_v58, %v1350_v5  ;;  %v7003_v55 = vpop.f32.mrb[90].mxu0  ;;  %v7747_v5 = vld [vmem:[#allocation10 + $0x110] sm:$0xff]  }
 0x217   : > { %v9081_v52 = vadd.f32 %v8961_v14, %v1359_v21  ;;  %v1362_v54 = vadd.f32 %v7003_v55, %v10186_v13  ;;  %v1353_v26 = vpop.f32.mrb[91].mxu0  ;;  %v7742_v14 = vld [vmem:[#allocation10 + $0x100] sm:$0xff]   ;;  %v7746_v21 = vld [vmem:[#allocation10 + $0xc8] sm:$0xff]  }
 0x218   : > { %v9085_v60 = vadd.f32 %v10187_v62, %v1351_v6  ;;  %v1354_v12 = vadd.f32 %v10188_v9, %v1353_v26  ;;  %6688 = vmatprep.subr.bf16.mxu0 %v7742_v14  ;;  %v7751_v26 = vld [vmem:[#allocation10 + $0xd8] sm:$0xff]  }
 0x219   : > { %v9089_v3 = vadd.f32 %v10189_v37, %v1362_v54  ;;  %6689 = vmatpush3.bf16.msra.mxu0 %v7744_v40  ;;  %v9115_v37 = vld [vmem:[%s10144_s2] ss:$0 sm:$0xff] }
 0x21a   : > { %v9092_v23 = vadd.f32 %v10190_v39, %v1354_v12  ;;  %6690 = vmatprep.subr.bf16.mxu0 %v7745_v42  ;;  %v7755_v42 = vld [vmem:[#allocation10 + $0x128] sm:$0xff]  }
 0x21c   : > { %v7006_v32 = vpop.f32.mrb[92].mxu0 }
 0x21d   : > { %v1375_v48 = vadd.f32 %v7006_v32, %v8967_v30  ;;  %v1366_v19 = vpop.f32.mrb[93].mxu0  ;;  %6691 = vmatpush3.bf16.msra.mxu0 %v7746_v21  ;;  %v7752_v32 = vld [vmem:[#allocation10 + $0x120] sm:$0xff]  }
 0x21e   : > { %v1367_v1 = vadd.f32 %v10191_v36, %v1366_v19  ;;  %v7007_v51 = vpop.f32.mrb[94].mxu0  ;;  %6692 = vmatprep.subr.bf16.mxu0 %v7747_v5  ;;  %v7754_v36 = vld [vmem:[#allocation10 + $0xe0] sm:$0xff]  }
 0x21f   : > { %v9097_v56 = vadd.f32 %v8977_v18, %v1375_v48  ;;  %v1378_v41 = vadd.f32 %v7007_v51, %v8971_v46  ;;  %v1369_v31 = vpop.f32.mrb[95].mxu0 }
 0x220   : > { %v9101_v53 = vadd.f32 %v8969_v10, %v1367_v1  ;;  %v1370_v20 = vadd.f32 %v10192_v43, %v1369_v31  ;;  %v7749_v10 = vld [vmem:[#allocation10 + $0xd0] sm:$0xff]  }
 0x221   : > { %v9105_v30 = vadd.f32 %v8987_v24, %v1378_v41  ;;  %6693 = vmatpush3.bf16.msra.mxu0 %v7749_v10  ;;  %v7750_v24 = vld [vmem:[#allocation10 + $0x118] sm:$0xff]  }
 0x222   : > { %v9108_v61 = vadd.f32 %v8973_v29, %v1370_v20  ;;  %6694 = vmatprep.subr.bf16.mxu0 %v7750_v24  ;;  %v9124_v20 = vstv %s3034_s12  ;;  %v7759_v24 = vld [vmem:[#allocation10 + $0xf0] sm:$0xff]  }
 0x224   : > { %v6432_v18 = vpop.f32.mrb[96].mxu0 }
 0x225   : > { %v6433_v46 = vpop.f32.mrb[97].mxu0  ;;  %6695 = vmatpush3.bf16.msra.mxu0 %v7751_v26 }
 0x226   : > { %v6434_v58 = vadd.f32 %v6433_v46, %v6432_v18  ;;  %v6435_v6 = vpop.f32.mrb[98].mxu0  ;;  %6696 = vmatprep.subr.bf16.mxu0 %v7752_v32 }
 0x227   : > { %v6436_v55 = vpop.f32.mrb[99].mxu0  ;;  %v7074_v62 = vpop.f32.mrb[64].mxu1 }
 0x228   : > { %v7254_v13 = vadd.f32 %v8984_v35, %v6434_v58  ;;  %v6437_v54 = vadd.f32 %v6436_v55, %v6435_v6  ;;  %v2701_v12 = vpop.f32.mrb[65].mxu1  ;;  %v7756_v58 = vld [vmem:[#allocation10 + $0xe8] sm:$0xff]   ;;  %v7757_v6 = vld [vmem:[#allocation10 + $0x130] sm:$0xff]  }
 0x229   : > { %v7075_v48 = vpop.f32.mrb[66].mxu1  ;;  %6697 = vmatpush3.bf16.msra.mxu0 %v7754_v36 }
 0x22a   : > { %v7262_v29 = vadd.f32 %v8993_v38, %v6437_v54  ;;  %v7255_v35 = vadd.f32 %v7254_v13, %v2701_v12  ;;  %v9120_v38 = vld [vmem:[%s10145_s3] ss:$0 sm:$0xff]  ;;  %v2704_v1 = vpop.f32.mrb[67].mxu1  ;;  %6698 = vmatprep.subr.bf16.mxu0 %v7755_v42 }
 0x22c   : > { %v6438_v9 = vpop.f32.mrb[100].mxu0  ;;  %v2963_v40 = vmul.f32 %v7255_v35, %v9115_v37  ;;  %v7263_v41 = vadd.f32 %v7262_v29, %v2704_v1 }
 0x22d   : > { %v6439_v39 = vpop.f32.mrb[101].mxu0  ;;  %6699 = vmatpush3.bf16.msra.mxu0 %v7756_v58 }
 0x22e   : > { %v6440_v19 = vadd.f32 %v6439_v39, %v6438_v9  ;;  %v6441_v14 = vpop.f32.mrb[102].mxu0  ;;  %v3002_v21 = vadd.f32 %v9120_v38, %v2963_v40  ;;  %v2964_v18 = vmul.f32 %v7263_v41, %v9115_v37  ;;  %6700 = vmatprep.subr.bf16.mxu0 %v7757_v6 }
 0x22f   : > { %v6442_v51 = vpop.f32.mrb[103].mxu0  ;;  %v9131_v55 = vpop.f32.mrb[68].mxu1 }
 0x230   : > { %v7250_v31 = vadd.f32 %v8980_v33, %v6440_v19  ;;  %v6443_v43 = vadd.f32 %v6442_v51, %v6441_v14  ;;  %vm3035_vm2 = vcmp.ge.f32.partialorder %v3002_v21, 0.0  ;;  %v3068_v10 = vmul.f32 %v9124_v20, %v3002_v21  ;;  %v2717_v29 = vpop.f32.mrb[69].mxu1 }
 0x231   : > { %v3003_v33 = vadd.f32 %v9120_v38, %v2964_v18  ;;  %v9136_v32 = vpop.f32.mrb[70].mxu1  ;;  %6701 = vmatpush3.bf16.msra.mxu0 %v7759_v24 }
 0x232   : > { %v7251_v46 = vadd.f32 %v7250_v31, %v7074_v62  ;;  %v7258_v5 = vadd.f32 %v8990_v63, %v6443_v43  ;;  %v7760_v63 = vld [vmem:[#allocation10 + $0x138] sm:$0xff]   ;;  %v3100_v9 = vsel %vm3035_vm2, %v3002_v21, %v3068_v10  ;;  %v2720_v1 = vpop.f32.mrb[71].mxu1 }
 0x233   : > { %vm3036_vm3 = vcmp.ge.f32.partialorder %v3003_v33, 0.0  ;;  %v3069_v12 = vmul.f32 %v9124_v20, %v3003_v33  ;;  %3144 = vst [vmem:[#allocation2 + $0x38] sm:$0xff] %v3100_v9  ;;  %v3208_v19 = vrot.slane %v3100_v9, 7  ;;  %v3336_v14 = vrot.slane %v3100_v9, 1  ;;  %v7761_v43 = vld [vmem:[#allocation10 + $0xf8] sm:$0xff]   ;;  %6702 = vmatprep.subr.bf16.mxu0 %v7760_v63 }
 0x234   : > { %v2965_v13 = vmul.f32 %v7251_v46, %v9115_v37  ;;  %v6444_v54 = vpop.f32.mrb[104].mxu0  ;;  %v7259_v26 = vadd.f32 %v7258_v5, %v7075_v48 }
 0x235   : > { %v6445_v62 = vpop.f32.mrb[105].mxu0  ;;  %v3101_v40 = vsel %vm3036_vm3, %v3003_v33, %v3069_v12  ;;  %3288 = vst [vmem:[#allocation2 + $0x30] sm:$0xfe] %v3208_v19  ;;  %6703 = vmatpush3.bf16.msra.mxu0 %v7761_v43 }
 0x236   : > { %v3004_v39 = vadd.f32 %v9120_v38, %v2965_v13  ;;  %v6447_v35 = vpop.f32.mrb[106].mxu0  ;;  %v2966_v36 = vmul.f32 %v7259_v26, %v9115_v37  ;;  %v6446_v51 = vadd.f32 %v6445_v62, %v6444_v54  ;;  %3145 = vst [vmem:[#allocation2 + $0x50] sm:$0xff] %v3101_v40  ;;  %v3209_v42 = vrot.slane %v3101_v40, 7 }
 0x237   : > { %v6448_v48 = vpop.f32.mrb[107].mxu0  ;;  %v3337_v21 = vrot.slane %v3101_v40, 1  ;;  %v3564_v6 = vpack.c.bf16 %v3101_v40, %v3100_v9 }
 0x238   : > { %vm3037_vm4 = vcmp.ge.f32.partialorder %v3004_v39, 0.0  ;;  %v3070_v41 = vmul.f32 %v9124_v20, %v3004_v39  ;;  %v6449_v31 = vadd.f32 %v6448_v48, %v6447_v35  ;;  %v3005_v18 = vadd.f32 %v9120_v38, %v2966_v36 }
 0x239   : > { %v7270_v46 = vadd.f32 %v9002_v28, %v6446_v51  ;;  %v3210_v10 = vsel %vm465_vm0, %v3208_v19, %v3209_v42  ;;  %v9145_v33 = vsel %vm594_vm1, %v3336_v14, %v3337_v21  ;;  %3417 = vst [vmem:[#allocation2 + $0x58] sm:$0x7f] %v3337_v21  ;;  %v9149_v28 = vpop.f32.mrb[72].mxu1  ;;  %3840 = vmatprep.mubr.bf16.mxu0 %v3564_v6 }
 0x23a   : > { %v3102_v5 = vsel %vm3037_vm4, %v3004_v39, %v3070_v41  ;;  %v7278_v58 = vadd.f32 %v9009_v34, %v6449_v31  ;;  %3289 = vst [vmem:[#allocation2 + $0x48] sm:$0xff] %v3210_v10  ;;  %3416 = vst [vmem:[#allocation2 + $0x40] sm:$0xff] %v9145_v33  ;;  %vm3038_vm5 = vcmp.ge.f32.partialorder %v3005_v18, 0.0  ;;  %v3071_v54 = vmul.f32 %v9124_v20, %v3005_v18  ;;  %v9151_v62 = vpop.f32.mrb[73].mxu1 }
 0x23b   : > { %3146 = vst [vmem:[#allocation2 + $0x68] sm:$0xff] %v3102_v5  ;;  %v3211_v13 = vrot.slane %v3102_v5, 7  ;;  %v7271_v24 = vadd.f32 %v7270_v46, %v2717_v29  ;;  %v9154_v39 = vpop.f32.mrb[74].mxu1  ;;  %v3339_v36 = vrot.slane %v3102_v5, 1 }
 0x23c   : > { %v7279_v26 = vadd.f32 %v7278_v58, %v2720_v1  ;;  %v6450_v34 = vpop.f32.mrb[108].mxu0  ;;  %v3103_v9 = vsel %vm3038_vm5, %v3005_v18, %v3071_v54  ;;  %v9157_v51 = vpop.f32.mrb[75].mxu1  ;;  %v3470_v21 = vld [vmem:[#allocation2 + $0x30] sm:$0xff] }
 0x23d   : > { %3290 = vst [vmem:[#allocation2 + $0x60] sm:$0xfe] %v3211_v13  ;;  %v6451_v63 = vpop.f32.mrb[109].mxu0  ;;  %v2967_v12 = vmul.f32 %v7271_v24, %v9115_v37  ;;  %3147 = vst [vmem:[#allocation2 + $0x80] sm:$0xff] %v3103_v9  ;;  %v3212_v29 = vrot.slane %v3103_v9, 7  ;;  %v3340_v1 = vrot.slane %v3103_v9, 1  ;;  %v3567_v40 = vpack.c.bf16 %v3103_v9, %v3102_v5 }
 0x23e   : > { %v2968_v35 = vmul.f32 %v7279_v26, %v9115_v37  ;;  %v6452_v19 = vadd.f32 %v6451_v63, %v6450_v34  ;;  %v6453_v14 = vpop.f32.mrb[110].mxu0  ;;  %v3563_v58 = vpack.c.bf16 %v3210_v10, %v3470_v21  ;;  %v7739_v26 = vld [vmem:[#allocation10 + $0x148] sm:$0xff]  }
 0x23f   : > { %v6454_v48 = vpop.f32.mrb[111].mxu0  ;;  %v3006_v41 = vadd.f32 %v9120_v38, %v2967_v12  ;;  %v3213_v18 = vsel %vm465_vm0, %v3211_v13, %v3212_v29  ;;  %v3341_v46 = vsel %vm594_vm1, %v3339_v36, %v3340_v1  ;;  %3419 = vst [vmem:[#allocation2 + $0x88] sm:$0x7f] %v3340_v1  ;;  %v9169_v10 = vpop.f32.mrb[76].mxu1 }
 0x240   : > { %v3007_v31 = vadd.f32 %v9120_v38, %v2968_v35  ;;  %v7266_v43 = vadd.f32 %v8998_v4, %v6452_v19  ;;  %v6455_v42 = vadd.f32 %v6454_v48, %v6453_v14  ;;  %3291 = vst [vmem:[#allocation2 + $0x78] sm:$0xff] %v3213_v18  ;;  %3418 = vst [vmem:[#allocation2 + $0x70] sm:$0xff] %v3341_v46  ;;  %v3475_v54 = vld [vmem:[#allocation2 + $0x58] sm:$0xff]  ;;  %3841 = vmatmul.mubr.bf16.gmra.mrb[164].mxu0 %v3563_v58 }
 0x241   : > { %vm3039_vm6 = vcmp.ge.f32.partialorder %v3006_v41, 0.0  ;;  %v3072_v6 = vmul.f32 %v9124_v20, %v3006_v41  ;;  %v3565_v13 = vpack.c.bf16 %v3475_v54, %v9145_v33  ;;  %3848 = vmatprep.mubr.bf16.mxu0 %v3567_v40 }
 0x242   : > { %vm3040_vm7 = vcmp.ge.f32.partialorder %v3007_v31, 0.0  ;;  %v3073_v5 = vmul.f32 %v9124_v20, %v3007_v31  ;;  %v7267_v24 = vadd.f32 %v7266_v43, %v9131_v55  ;;  %v7274_v4 = vadd.f32 %v9006_v8, %v6455_v42  ;;  %v9171_v55 = vpop.f32.mrb[77].mxu1 }
 0x243   : > { %v3104_v34 = vsel %vm3039_vm6, %v3006_v41, %v3072_v6  ;;  %7121 = vmatmul.mubr.bf16.vlgmr.msra.gmra.mrb[96].mxu1 %v3565_v13  ;;  %v9174_v29 = vpop.f32.mrb[78].mxu1 }
 0x244   : > { %v3105_v63 = vsel %vm3040_vm7, %v3007_v31, %v3073_v5  ;;  %v6456_v9 = vpop.f32.mrb[112].mxu0  ;;  %v3476_v12 = vld [vmem:[#allocation2 + $0x60] sm:$0xff]  ;;  %3148 = vst [vmem:[#allocation2 + $0x98] sm:$0xff] %v3104_v34  ;;  %v3214_v35 = vrot.slane %v3104_v34, 7  ;;  %v3342_v19 = vrot.slane %v3104_v34, 1  ;;  %v2969_v33 = vmul.f32 %v7267_v24, %v9115_v37  ;;  %7153 = vmatpush3.bf16.msra.mxu1 %v9059_v50  ;;  %v9184_v43 = vpop.f32.mrb[79].mxu1 }
 0x245   : > { %3149 = vst [vmem:[#allocation2 + $0xb0] sm:$0xff] %v3105_v63  ;;  %v3215_v14 = vrot.slane %v3105_v63, 7  ;;  %v3343_v36 = vrot.slane %v3105_v63, 1  ;;  %v6457_v8 = vpop.f32.mrb[113].mxu0  ;;  %v7275_v1 = vadd.f32 %v7274_v4, %v9136_v32  ;;  %v3566_v21 = vpack.c.bf16 %v3213_v18, %v3476_v12  ;;  %7154 = vmatprep.subr.bf16.mxu1 %v7739_v26  ;;  %v7740_v24 = vld [vmem:[#allocation10 + $0x150] sm:$0xff]  }
 0x246   : > { %v6458_v48 = vadd.f32 %v6457_v8, %v6456_v9  ;;  %v6459_v41 = vpop.f32.mrb[114].mxu0  ;;  %3292 = vst [vmem:[#allocation2 + $0x90] sm:$0xfe] %v3214_v35  ;;  %v3570_v58 = vpack.c.bf16 %v3105_v63, %v3104_v34  ;;  %v3008_v50 = vadd.f32 %v9120_v38, %v2969_v33  ;;  %v3481_v54 = vld [vmem:[#allocation2 + $0x88] sm:$0xff]  ;;  %v7741_v9 = vld [vmem:[#allocation10 + $0x158] sm:$0xff]  }
 0x247   : > { %v9179_v40 = vsel %vm465_vm0, %v3214_v35, %v3215_v14  ;;  %v9182_v31 = vsel %vm594_vm1, %v3342_v19, %v3343_v36  ;;  %3421 = vst [vmem:[#allocation2 + $0xb8] sm:$0x7f] %v3343_v36  ;;  %v6460_v42 = vpop.f32.mrb[115].mxu0  ;;  %v2970_v32 = vmul.f32 %v7275_v1, %v9115_v37  ;;  %v3568_v4 = vpack.c.bf16 %v3481_v54, %v3341_v46  ;;  %v9196_v35 = vpop.f32.mrb[80].mxu1 }
 0x248   : > { %3293 = vst [vmem:[#allocation2 + $0xa8] sm:$0xff] %v9179_v40  ;;  %3420 = vst [vmem:[#allocation2 + $0xa0] sm:$0xff] %v9182_v31  ;;  %v7286_v6 = vadd.f32 %v9018_v59, %v6458_v48  ;;  %v6461_v5 = vadd.f32 %v6460_v42, %v6459_v41  ;;  %vm3041_vm8 = vcmp.ge.f32.partialorder %v3008_v50, 0.0  ;;  %v3074_v13 = vmul.f32 %v9124_v20, %v3008_v50 }
 0x249   : > { %v3009_v18 = vadd.f32 %v9120_v38, %v2970_v32  ;;  %7155 = vmatpush3.bf16.msra.mxu1 %v7739_v26  ;;  %3849 = vmatmul.mubr.bf16.gmra.mrb[168].mxu0 %v3566_v21 }
 0x24a   : > { %v7287_v34 = vadd.f32 %v7286_v6, %v9151_v62  ;;  %v7294_v63 = vadd.f32 %v9025_v49, %v6461_v5  ;;  %7124 = vmatprep.mubr.bf16.mxu1 %v3568_v4  ;;  %v3106_v12 = vsel %vm3041_vm8, %v3008_v50, %v3074_v13  ;;  %3856 = vmatprep.mubr.bf16.mxu0 %v3570_v58  ;;  %v9199_v62 = vpop.f32.mrb[81].mxu1 }
 0x24b   : > { %vm3042_vm9 = vcmp.ge.f32.partialorder %v3009_v18, 0.0  ;;  %v3075_v59 = vmul.f32 %v9124_v20, %v3009_v18  ;;  %7156 = vmatprep.subr.bf16.mxu1 %v7740_v24  ;;  %3150 = vst [vmem:[#allocation2 + $0xc8] sm:$0xff] %v3106_v12  ;;  %v3217_v14 = vrot.slane %v3106_v12, 7  ;;  %v3345_v36 = vrot.slane %v3106_v12, 1  ;;  %v9203_v1 = vpop.f32.mrb[82].mxu1 }
 0x24c   : > { %v2971_v46 = vmul.f32 %v7287_v34, %v9115_v37  ;;  %v6462_v19 = vpop.f32.mrb[116].mxu0  ;;  %v7295_v49 = vadd.f32 %v7294_v63, %v9157_v51  ;;  %v9206_v6 = vpop.f32.mrb[83].mxu1 }
 0x24d   : > { %v6463_v26 = vpop.f32.mrb[117].mxu0  ;;  %v3107_v8 = vsel %vm3042_vm9, %v3009_v18, %v3075_v59  ;;  %v3482_v42 = vld [vmem:[#allocation2 + $0x90] sm:$0xff]  ;;  %7157 = vmatpush3.bf16.msra.mxu1 %v7740_v24  ;;  %3294 = vst [vmem:[#allocation2 + $0xc0] sm:$0xfe] %v3217_v14  ;;  %v7743_v18 = vld [vmem:[#allocation10 + $0x160] sm:$0xff]  }
 0x24e   : > { %v3010_v33 = vadd.f32 %v9120_v38, %v2971_v46  ;;  %v6464_v48 = vadd.f32 %v6463_v26, %v6462_v19  ;;  %v6465_v41 = vpop.f32.mrb[118].mxu0  ;;  %v3487_v21 = vld [vmem:[#allocation2 + $0xb8] sm:$0xff]  ;;  %3151 = vst [vmem:[#allocation2 + $0xe0] sm:$0xff] %v3107_v8  ;;  %v3218_v58 = vrot.slane %v3107_v8, 7  ;;  %v3346_v50 = vrot.slane %v3107_v8, 1  ;;  %7158 = vmatprep.subr.bf16.mxu1 %v7741_v9 }
 0x24f   : > { %v2972_v32 = vmul.f32 %v7295_v49, %v9115_v37  ;;  %v6466_v51 = vpop.f32.mrb[119].mxu0  ;;  %v3569_v5 = vpack.c.bf16 %v9179_v40, %v3482_v42  ;;  %v3571_v59 = vpack.c.bf16 %v3487_v21, %v9182_v31  ;;  %v3573_v19 = vpack.c.bf16 %v3107_v8, %v3106_v12  ;;  %v7748_v31 = vld [vmem:[#allocation10 + $0x168] sm:$0xff]   ;;  %v9228_v26 = vpop.f32.mrb[84].mxu1 }
 0x250   : > { %vm3043_vm10 = vcmp.ge.f32.partialorder %v3010_v33, 0.0  ;;  %v3076_v54 = vmul.f32 %v9124_v20, %v3010_v33  ;;  %v7282_v4 = vadd.f32 %v9014_v22, %v6464_v48  ;;  %v6467_v13 = vadd.f32 %v6466_v51, %v6465_v41  ;;  %3423 = vst [vmem:[#allocation2 + $0xe8] sm:$0x7f] %v3346_v50  ;;  %v9233_v12 = vpop.f32.mrb[85].mxu1 }
 0x251   : > { %v9212_v24 = vsel %vm465_vm0, %v3217_v14, %v3218_v58  ;;  %v9215_v34 = vsel %vm594_vm1, %v3345_v36, %v3346_v50  ;;  %v3011_v63 = vadd.f32 %v9120_v38, %v2972_v32  ;;  %7159 = vmatpush3.bf16.msra.mxu1 %v7741_v9  ;;  %3857 = vmatmul.mubr.bf16.gmra.mrb[172].mxu0 %v3569_v5  ;;  %v9236_v21 = vpop.f32.mrb[86].mxu1 }
 0x252   : > { %3295 = vst [vmem:[#allocation2 + $0xd8] sm:$0xff] %v9212_v24  ;;  %3422 = vst [vmem:[#allocation2 + $0xd0] sm:$0xff] %v9215_v34  ;;  %v9221_v40 = vsel %vm3043_vm10, %v3010_v33, %v3076_v54  ;;  %v7283_v22 = vadd.f32 %v7282_v4, %v9149_v28  ;;  %v7290_v46 = vadd.f32 %v9022_v0, %v6467_v13  ;;  %7125 = vmatmul.mubr.bf16.gmra.mrb[100].mxu1 %v3571_v59  ;;  %v9239_v32 = vpop.f32.mrb[87].mxu1 }
 0x253   : > { %3152 = vst [vmem:[#allocation2 + $0xf8] sm:$0xff] %v9221_v40  ;;  %v3220_v14 = vrot.slane %v9221_v40, 7  ;;  %vm3044_vm11 = vcmp.ge.f32.partialorder %v3011_v63, 0.0  ;;  %v3077_v49 = vmul.f32 %v9124_v20, %v3011_v63  ;;  %3864 = vmatprep.mubr.bf16.mxu0 %v3573_v19  ;;  %7160 = vmatprep.subr.bf16.mxu1 %v7743_v18  ;;  %v3348_v0 = vrot.slane %v9221_v40, 1 }
 0x254   : > { %v2973_v36 = vmul.f32 %v7283_v22, %v9115_v37  ;;  %v7291_v28 = vadd.f32 %v7290_v46, %v9154_v39  ;;  %v6468_v33 = vpop.f32.mrb[120].mxu0  ;;  %v3488_v50 = vld [vmem:[#allocation2 + $0xc0] sm:$0xff]  ;;  %v7753_v22 = vld [vmem:[#allocation10 + $0x170] sm:$0xff]  }
 0x255   : > { %3296 = vst [vmem:[#allocation2 + $0xf0] sm:$0xfe] %v3220_v14  ;;  %v3109_v9 = vsel %vm3044_vm11, %v3011_v63, %v3077_v49  ;;  %v6469_v8 = vpop.f32.mrb[121].mxu0  ;;  %7161 = vmatpush3.bf16.msra.mxu1 %v7743_v18  ;;  %v3572_v54 = vpack.c.bf16 %v9212_v24, %v3488_v50 }
 0x256   : > { %3153 = vst [vmem:[#allocation2 + $0x110] sm:$0xff] %v3109_v9  ;;  %v3221_v48 = vrot.slane %v3109_v9, 7  ;;  %v3349_v41 = vrot.slane %v3109_v9, 1  ;;  %v3012_v42 = vadd.f32 %v9120_v38, %v2973_v36  ;;  %v2974_v58 = vmul.f32 %v7291_v28, %v9115_v37  ;;  %v6471_v39 = vpop.f32.mrb[122].mxu0  ;;  %7162 = vmatprep.subr.bf16.mxu1 %v7748_v31  ;;  %v7758_v28 = vld [vmem:[#allocation10 + $0x178] sm:$0xff]  }
 0x257   : > { %v6470_v51 = vadd.f32 %v6469_v8, %v6468_v33  ;;  %v6472_v5 = vpop.f32.mrb[123].mxu0  ;;  %v3576_v4 = vpack.c.bf16 %v3109_v9, %v9221_v40  ;;  %v3493_v18 = vld [vmem:[#allocation2 + $0xe8] sm:$0xff]  ;;  %v9256_v33 = vpop.f32.mrb[88].mxu1 }
 0x258   : > { %v9244_v13 = vsel %vm465_vm0, %v3220_v14, %v3221_v48  ;;  %v9247_v63 = vsel %vm594_vm1, %v3348_v0, %v3349_v41  ;;  %3425 = vst [vmem:[#allocation2 + $0x118] sm:$0x7f] %v3349_v41  ;;  %vm3045_vm12 = vcmp.ge.f32.partialorder %v3012_v42, 0.0  ;;  %v3078_v59 = vmul.f32 %v9124_v20, %v3012_v42  ;;  %v9260_v48 = vpop.f32.mrb[89].mxu1 }
 0x259   : > { %3297 = vst [vmem:[#allocation2 + $0x108] sm:$0xff] %v9244_v13  ;;  %3424 = vst [vmem:[#allocation2 + $0x100] sm:$0xff] %v9247_v63  ;;  %v3013_v24 = vadd.f32 %v9120_v38, %v2974_v58  ;;  %v7302_v40 = vadd.f32 %v9034_v47, %v6470_v51  ;;  %v6473_v46 = vadd.f32 %v6472_v5, %v6471_v39  ;;  %7163 = vmatpush3.bf16.msra.mxu1 %v7748_v31  ;;  %v9263_v50 = vpop.f32.mrb[90].mxu1 }
 0x25a   : > { %v3574_v19 = vpack.c.bf16 %v3493_v18, %v9215_v34  ;;  %v3110_v14 = vsel %vm3045_vm12, %v3012_v42, %v3078_v59  ;;  %3865 = vmatmul.mubr.bf16.gmra.mrb[176].mxu0 %v3572_v54  ;;  %7164 = vmatprep.subr.bf16.mxu1 %v7753_v22  ;;  %v9266_v51 = vpop.f32.mrb[91].mxu1 }
 0x25b   : > { %3154 = vst [vmem:[#allocation2 + $0x128] sm:$0xff] %v3110_v14  ;;  %v3223_v49 = vrot.slane %v3110_v14, 7  ;;  %vm3046_vm13 = vcmp.ge.f32.partialorder %v3013_v24, 0.0  ;;  %v3079_v36 = vmul.f32 %v9124_v20, %v3013_v24  ;;  %v7303_v0 = vadd.f32 %v7302_v40, %v9171_v55  ;;  %3872 = vmatprep.mubr.bf16.mxu0 %v3576_v4 }
 0x25c   : > { %7128 = vmatprep.mubr.bf16.mxu1 %v3574_v19  ;;  %v7310_v9 = vadd.f32 %v9041_v2, %v6473_v46  ;;  %v6474_v47 = vpop.f32.mrb[124].mxu0  ;;  %v3494_v8 = vld [vmem:[#allocation2 + $0xf0] sm:$0xff]  ;;  %v3351_v34 = vrot.slane %v3110_v14, 1 }
 0x25d   : > { %3298 = vst [vmem:[#allocation2 + $0x120] sm:$0xfe] %v3223_v49  ;;  %v3111_v31 = vsel %vm3046_vm13, %v3013_v24, %v3079_v36  ;;  %v6475_v41 = vpop.f32.mrb[125].mxu0  ;;  %v2975_v39 = vmul.f32 %v7303_v0, %v9115_v37  ;;  %7165 = vmatpush3.bf16.msra.mxu1 %v7753_v22  ;;  %v3575_v4 = vpack.c.bf16 %v9244_v13, %v3494_v8  ;;  %v7762_v22 = vld [vmem:[#allocation10 + $0x1c0] sm:$0xff]  }
 0x25e   : > { %3155 = vst [vmem:[#allocation2 + $0x140] sm:$0xff] %v3111_v31  ;;  %v3224_v42 = vrot.slane %v3111_v31, 7  ;;  %v3352_v58 = vrot.slane %v3111_v31, 1  ;;  %v7311_v55 = vadd.f32 %v7310_v9, %v9184_v43  ;;  %v6477_v2 = vpop.f32.mrb[126].mxu0  ;;  %v6476_v5 = vadd.f32 %v6475_v41, %v6474_v47  ;;  %7166 = vmatprep.subr.bf16.mxu1 %v7758_v28 }
 0x25f   : > { %v6478_v54 = vpop.f32.mrb[127].mxu0  ;;  %v3499_v59 = vld [vmem:[#allocation2 + $0x118] sm:$0xff]  ;;  %v3579_v18 = vpack.c.bf16 %v3111_v31, %v3110_v14  ;;  %v3014_v46 = vadd.f32 %v9120_v38, %v2975_v39 }
 0x260   : > { %v9270_v24 = vsel %vm465_vm0, %v3223_v49, %v3224_v42  ;;  %v3353_v40 = vsel %vm594_vm1, %v3351_v34, %v3352_v58  ;;  %3427 = vst [vmem:[#allocation2 + $0x148] sm:$0x7f] %v3352_v58  ;;  %v2976_v43 = vmul.f32 %v7311_v55, %v9115_v37  ;;  %v7298_v19 = vadd.f32 %v9030_v25, %v6476_v5  ;;  %v9283_v25 = vpop.f32.mrb[92].mxu1 }
 0x261   : > { %3299 = vst [vmem:[#allocation2 + $0x138] sm:$0xff] %v9270_v24  ;;  %3426 = vst [vmem:[#allocation2 + $0x130] sm:$0xff] %v3353_v40  ;;  %v6479_v13 = vadd.f32 %v6478_v54, %v6477_v2  ;;  %v3577_v14 = vpack.c.bf16 %v3499_v59, %v9247_v63  ;;  %vm3047_vm14 = vcmp.ge.f32.partialorder %v3014_v46, 0.0  ;;  %v3080_v49 = vmul.f32 %v9124_v20, %v3014_v46  ;;  %v9286_v41 = vpop.f32.mrb[93].mxu1 }
 0x262   : > { %v3015_v36 = vadd.f32 %v9120_v38, %v2976_v43  ;;  %7167 = vmatpush3.bf16.msra.mxu1 %v7758_v28  ;;  %v7299_v0 = vadd.f32 %v7298_v19, %v9169_v10  ;;  %3873 = vmatmul.mubr.bf16.gmra.mrb[180].mxu0 %v3575_v4  ;;  %v9289_v39 = vpop.f32.mrb[94].mxu1 }
 0x263   : > { %v7306_v9 = vadd.f32 %v9038_v57, %v6479_v13  ;;  %7129 = vmatmul.mubr.bf16.gmra.mrb[104].mxu1 %v3577_v14  ;;  %v3112_v47 = vsel %vm3047_vm14, %v3014_v46, %v3080_v49  ;;  %3880 = vmatprep.mubr.bf16.mxu0 %v3579_v18  ;;  %v9294_v46 = vpop.f32.mrb[95].mxu1 }
 0x264   : > { %vm3048_vm15 = vcmp.ge.f32.partialorder %v3015_v36, 0.0  ;;  %v3081_v8 = vmul.f32 %v9124_v20, %v3015_v36  ;;  %v6480_v34 = vpop.f32.mrb[128].mxu0  ;;  %v3500_v63 = vld [vmem:[#allocation2 + $0x120] sm:$0xff]  ;;  %6824 = vmatprep.subr.bf16.mxu1 %v7762_v22  ;;  %3156 = vst [vmem:[#allocation2 + $0x158] sm:$0xff] %v3112_v47  ;;  %v3226_v31 = vrot.slane %v3112_v47, 7  ;;  %v2977_v28 = vmul.f32 %v7299_v0, %v9115_v37 }
 0x265   : > { %v7307_v57 = vadd.f32 %v7306_v9, %v9174_v29  ;;  %v6481_v10 = vpop.f32.mrb[129].mxu0  ;;  %v3354_v42 = vrot.slane %v3112_v47, 1  ;;  %v3578_v5 = vpack.c.bf16 %v9270_v24, %v3500_v63 }
 0x266   : > { %v3113_v58 = vsel %vm3048_vm15, %v3015_v36, %v3081_v8  ;;  %v6482_v55 = vadd.f32 %v6481_v10, %v6480_v34  ;;  %v6483_v2 = vpop.f32.mrb[130].mxu0  ;;  %3300 = vst [vmem:[#allocation2 + $0x150] sm:$0xfe] %v3226_v31  ;;  %v3016_v59 = vadd.f32 %v9120_v38, %v2977_v28 }
 0x267   : > { %3157 = vst [vmem:[#allocation2 + $0x170] sm:$0xff] %v3113_v58  ;;  %v3227_v54 = vrot.slane %v3113_v58, 7  ;;  %v3355_v4 = vrot.slane %v3113_v58, 1  ;;  %v2978_v18 = vmul.f32 %v7307_v57, %v9115_v37  ;;  %v6484_v29 = vpop.f32.mrb[131].mxu0  ;;  %v9296_v43 = vld [vmem:[#allocation2 + $0x148] sm:$0xff]  ;;  %v3582_v14 = vpack.c.bf16 %v3113_v58, %v3112_v47 }
 0x268   : > { %v7318_v22 = vadd.f32 %v9050_v45, %v6482_v55  ;;  %v6485_v19 = vadd.f32 %v6484_v29, %v6483_v2  ;;  %v3580_v13 = vpack.c.bf16 %v9296_v43, %v3353_v40  ;;  %vm3049_vm2 = vcmp.ge.f32.partialorder %v3016_v59, 0.0 }
 0x269   : > { %v3228_v24 = vsel %vm465_vm0, %v3226_v31, %v3227_v54  ;;  %v3356_v49 = vsel %vm594_vm1, %v3354_v42, %v3355_v4  ;;  %3429 = vst [vmem:[#allocation2 + $0x178] sm:$0x7f] %v3355_v4  ;;  %v3082_v36 = vmul.f32 %v9124_v20, %v3016_v59  ;;  %v3017_v0 = vadd.f32 %v9120_v38, %v2978_v18 }
 0x26a   : > { %3301 = vst [vmem:[#allocation2 + $0x168] sm:$0xff] %v3228_v24  ;;  %3428 = vst [vmem:[#allocation2 + $0x160] sm:$0xff] %v3356_v49  ;;  %v7319_v9 = vadd.f32 %v7318_v22, %v9199_v62  ;;  %v7326_v45 = vadd.f32 %v9057_v16, %v6485_v19  ;;  %7132 = vmatprep.mubr.bf16.mxu1 %v3580_v13  ;;  %3881 = vmatmul.mubr.bf16.gmra.mrb[184].mxu0 %v3578_v5 }
 0x26b   : > { %v3114_v8 = vsel %vm3049_vm2, %v3016_v59, %v3082_v36  ;;  %vm3050_vm3 = vcmp.ge.f32.partialorder %v3017_v0, 0.0  ;;  %v3083_v47 = vmul.f32 %v9124_v20, %v3017_v0  ;;  %3888 = vmatprep.mubr.bf16.mxu0 %v3582_v14 }
 0x26c   : > { %3158 = vst [vmem:[#allocation2 + $0x188] sm:$0xff] %v3114_v8  ;;  %v3229_v40 = vrot.slane %v3114_v8, 7  ;;  %v6486_v34 = vpop.f32.mrb[132].mxu0  ;;  %v2979_v63 = vmul.f32 %v7319_v9, %v9115_v37  ;;  %v7327_v31 = vadd.f32 %v7326_v45, %v9206_v6  ;;  %v3357_v57 = vrot.slane %v3114_v8, 1 }
 0x26d   : > { %v6487_v28 = vpop.f32.mrb[133].mxu0  ;;  %v3115_v62 = vsel %vm3050_vm3, %v3017_v0, %v3083_v47  ;;  %v3506_v42 = vld [vmem:[#allocation2 + $0x150] sm:$0xff] }
 0x26e   : > { %3302 = vst [vmem:[#allocation2 + $0x180] sm:$0xfe] %v3229_v40  ;;  %v6488_v10 = vadd.f32 %v6487_v28, %v6486_v34  ;;  %v6489_v16 = vpop.f32.mrb[134].mxu0  ;;  %3159 = vst [vmem:[#allocation2 + $0x1a0] sm:$0xff] %v3115_v62  ;;  %v3230_v58 = vrot.slane %v3115_v62, 7  ;;  %v3358_v55 = vrot.slane %v3115_v62, 1  ;;  %v3018_v2 = vadd.f32 %v9120_v38, %v2979_v63 }
 0x26f   : > { %v2980_v5 = vmul.f32 %v7327_v31, %v9115_v37  ;;  %v6490_v54 = vpop.f32.mrb[135].mxu0  ;;  %v3581_v18 = vpack.c.bf16 %v3228_v24, %v3506_v42  ;;  %v3585_v29 = vpack.c.bf16 %v3115_v62, %v3114_v8 }
 0x270   : > { %v7314_v4 = vadd.f32 %v9046_v17, %v6488_v10  ;;  %v6491_v59 = vadd.f32 %v6490_v54, %v6489_v16  ;;  %v9312_v6 = vld [vmem:[#allocation2 + $0x178] sm:$0xff]  ;;  %v3231_v22 = vsel %vm465_vm0, %v3229_v40, %v3230_v58  ;;  %v3359_v19 = vsel %vm594_vm1, %v3357_v57, %v3358_v55  ;;  %3431 = vst [vmem:[#allocation2 + $0x1a8] sm:$0x7f] %v3358_v55 }
 0x271   : > { %vm3051_vm4 = vcmp.ge.f32.partialorder %v3018_v2, 0.0  ;;  %v3084_v13 = vmul.f32 %v9124_v20, %v3018_v2  ;;  %3303 = vst [vmem:[#allocation2 + $0x198] sm:$0xff] %v3231_v22  ;;  %3430 = vst [vmem:[#allocation2 + $0x190] sm:$0xff] %v3359_v19  ;;  %v3019_v14 = vadd.f32 %v9120_v38, %v2980_v5  ;;  %v3583_v24 = vpack.c.bf16 %v9312_v6, %v3356_v49 }
 0x272   : > { %v7315_v36 = vadd.f32 %v7314_v4, %v9196_v35  ;;  %v7322_v17 = vadd.f32 %v9054_v11, %v6491_v59  ;;  %3889 = vmatmul.mubr.bf16.gmra.mrb[188].mxu0 %v3581_v18 }
 0x273   : > { %v3116_v0 = vsel %vm3051_vm4, %v3018_v2, %v3084_v13  ;;  %vm3052_vm5 = vcmp.ge.f32.partialorder %v3019_v14, 0.0  ;;  %v3085_v45 = vmul.f32 %v9124_v20, %v3019_v14  ;;  %7133 = vmatmul.mubr.bf16.gmra.mrb[108].mxu1 %v3583_v24  ;;  %3896 = vmatprep.mubr.bf16.mxu0 %v3585_v29 }
 0x274   : > { %3160 = vst [vmem:[#allocation2 + $0x1b8] sm:$0xff] %v3116_v0  ;;  %v3232_v9 = vrot.slane %v3116_v0, 7  ;;  %v6492_v8 = vpop.f32.mrb[136].mxu0  ;;  %v2981_v40 = vmul.f32 %v7315_v36, %v9115_v37  ;;  %v7323_v47 = vadd.f32 %v7322_v17, %v9203_v1  ;;  %v3360_v11 = vrot.slane %v3116_v0, 1 }
 0x275   : > { %v6493_v34 = vpop.f32.mrb[137].mxu0  ;;  %v3512_v35 = vld [vmem:[#allocation2 + $0x180] sm:$0xff]  ;;  %v3117_v63 = vsel %vm3052_vm5, %v3019_v14, %v3085_v45 }
 0x276   : > { %3304 = vst [vmem:[#allocation2 + $0x1b0] sm:$0xfe] %v3232_v9  ;;  %v6494_v49 = vadd.f32 %v6493_v34, %v6492_v8  ;;  %v6495_v31 = vpop.f32.mrb[138].mxu0  ;;  %v3584_v28 = vpack.c.bf16 %v3231_v22, %v3512_v35  ;;  %3161 = vst [vmem:[#allocation2 + $0x1d0] sm:$0xff] %v3117_v63  ;;  %v3233_v57 = vrot.slane %v3117_v63, 7  ;;  %v3361_v62 = vrot.slane %v3117_v63, 1 }
 0x277   : > { %v3020_v10 = vadd.f32 %v9120_v38, %v2981_v40  ;;  %v2982_v16 = vmul.f32 %v7323_v47, %v9115_v37  ;;  %v6496_v42 = vpop.f32.mrb[139].mxu0  ;;  %v9327_v1 = vld [vmem:[#allocation2 + $0x1a8] sm:$0xff]  ;;  %v3588_v2 = vpack.c.bf16 %v3117_v63, %v3116_v0 }
 0x278   : > { %v7334_v58 = vadd.f32 %v9069_v7, %v6494_v49  ;;  %v6497_v55 = vadd.f32 %v6496_v42, %v6495_v31  ;;  %v3234_v5 = vsel %vm465_vm0, %v3232_v9, %v3233_v57  ;;  %v3362_v54 = vsel %vm594_vm1, %v3360_v11, %v3361_v62  ;;  %3433 = vst [vmem:[#allocation2 + $0x1d8] sm:$0x7f] %v3361_v62 }
 0x279   : > { %vm3053_vm6 = vcmp.ge.f32.partialorder %v3020_v10, 0.0  ;;  %v3086_v4 = vmul.f32 %v9124_v20, %v3020_v10  ;;  %3305 = vst [vmem:[#allocation2 + $0x1c8] sm:$0xff] %v3234_v5  ;;  %3432 = vst [vmem:[#allocation2 + $0x1c0] sm:$0xff] %v3362_v54  ;;  %v3021_v59 = vadd.f32 %v9120_v38, %v2982_v16  ;;  %v3586_v29 = vpack.c.bf16 %v9327_v1, %v3359_v19 }
 0x27a   : > { %v7335_v18 = vadd.f32 %v7334_v58, %v9233_v12  ;;  %v7342_v7 = vadd.f32 %v9076_v27, %v6497_v55  ;;  %3897 = vmatmul.mubr.bf16.gmra.mrb[192].mxu0 %v3584_v28 }
 0x27b   : > { %v3118_v22 = vsel %vm3053_vm6, %v3020_v10, %v3086_v4  ;;  %vm3054_vm7 = vcmp.ge.f32.partialorder %v3021_v59, 0.0  ;;  %v3087_v14 = vmul.f32 %v9124_v20, %v3021_v59  ;;  %7136 = vmatprep.mubr.bf16.mxu1 %v3586_v29  ;;  %3904 = vmatprep.mubr.bf16.mxu0 %v3588_v2 }
 0x27c   : > { %3162 = vst [vmem:[#allocation2 + $0x1e8] sm:$0xff] %v3118_v22  ;;  %v3235_v13 = vrot.slane %v3118_v22, 7  ;;  %v6498_v36 = vpop.f32.mrb[140].mxu0  ;;  %v2983_v17 = vmul.f32 %v7335_v18, %v9115_v37  ;;  %v7343_v24 = vadd.f32 %v7342_v7, %v9239_v32  ;;  %v3363_v27 = vrot.slane %v3118_v22, 1 }
 0x27d   : > { %v6499_v0 = vpop.f32.mrb[141].mxu0  ;;  %v9339_v12 = vld [vmem:[#allocation2 + $0x1b0] sm:$0xff]  ;;  %v3119_v19 = vsel %vm3054_vm7, %v3021_v59, %v3087_v14 }
 0x27e   : > { %3306 = vst [vmem:[#allocation2 + $0x1e0] sm:$0xfe] %v3235_v13  ;;  %v6500_v9 = vadd.f32 %v6499_v0, %v6498_v36  ;;  %v6501_v45 = vpop.f32.mrb[142].mxu0  ;;  %v3587_v8 = vpack.c.bf16 %v3234_v5, %v9339_v12  ;;  %3163 = vst [vmem:[#allocation2 + $0x200] sm:$0xff] %v3119_v19  ;;  %v3236_v40 = vrot.slane %v3119_v19, 7  ;;  %v3364_v47 = vrot.slane %v3119_v19, 1 }
 0x27f   : > { %v3022_v34 = vadd.f32 %v9120_v38, %v2983_v17  ;;  %v2984_v35 = vmul.f32 %v7343_v24, %v9115_v37  ;;  %v6502_v11 = vpop.f32.mrb[143].mxu0  ;;  %v9345_v49 = vld [vmem:[#allocation2 + $0x1d8] sm:$0xff]  ;;  %v3591_v31 = vpack.c.bf16 %v3119_v19, %v3118_v22 }
 0x280   : > { %v7330_v32 = vadd.f32 %v9065_v15, %v6500_v9  ;;  %v6503_v63 = vadd.f32 %v6502_v11, %v6501_v45  ;;  %v3237_v28 = vsel %vm465_vm0, %v3235_v13, %v3236_v40  ;;  %v3365_v57 = vsel %vm594_vm1, %v3363_v27, %v3364_v47  ;;  %3435 = vst [vmem:[#allocation2 + $0x208] sm:$0x7f] %v3364_v47 }
 0x281   : > { %vm3055_vm8 = vcmp.ge.f32.partialorder %v3022_v34, 0.0  ;;  %v3088_v62 = vmul.f32 %v9124_v20, %v3022_v34  ;;  %3307 = vst [vmem:[#allocation2 + $0x1f8] sm:$0xff] %v3237_v28  ;;  %3434 = vst [vmem:[#allocation2 + $0x1f0] sm:$0xff] %v3365_v57  ;;  %v3023_v10 = vadd.f32 %v9120_v38, %v2984_v35  ;;  %v3589_v42 = vpack.c.bf16 %v9345_v49, %v3362_v54 }
 0x282   : > { %v7331_v16 = vadd.f32 %v7330_v32, %v9228_v26  ;;  %v7338_v15 = vadd.f32 %v9073_v44, %v6503_v63  ;;  %3905 = vmatmul.mubr.bf16.gmra.mrb[196].mxu0 %v3587_v8 }
 0x283   : > { %v3120_v58 = vsel %vm3055_vm8, %v3022_v34, %v3088_v62  ;;  %vm3056_vm9 = vcmp.ge.f32.partialorder %v3023_v10, 0.0  ;;  %v3089_v2 = vmul.f32 %v9124_v20, %v3023_v10  ;;  %7137 = vmatmul.mubr.bf16.gmra.mrb[112].mxu1 %v3589_v42  ;;  %3912 = vmatprep.mubr.bf16.mxu0 %v3591_v31 }
 0x284   : > { %3164 = vst [vmem:[#allocation2 + $0x218] sm:$0xff] %v3120_v58  ;;  %v3238_v55 = vrot.slane %v3120_v58, 7  ;;  %v6504_v5 = vpop.f32.mrb[144].mxu0  ;;  %v2985_v4 = vmul.f32 %v7331_v16, %v9115_v37  ;;  %v7339_v59 = vadd.f32 %v7338_v15, %v9236_v21  ;;  %v3366_v44 = vrot.slane %v3120_v58, 1 }
 0x285   : > { %v6505_v18 = vpop.f32.mrb[145].mxu0  ;;  %v9357_v26 = vld [vmem:[#allocation2 + $0x1e0] sm:$0xff]  ;;  %v3121_v54 = vsel %vm3056_vm9, %v3023_v10, %v3089_v2 }
 0x286   : > { %3308 = vst [vmem:[#allocation2 + $0x210] sm:$0xfe] %v3238_v55  ;;  %v6506_v7 = vadd.f32 %v6505_v18, %v6504_v5  ;;  %v6507_v29 = vpop.f32.mrb[146].mxu0  ;;  %v3590_v22 = vpack.c.bf16 %v3237_v28, %v9357_v26  ;;  %3165 = vst [vmem:[#allocation2 + $0x230] sm:$0xff] %v3121_v54  ;;  %v3239_v13 = vrot.slane %v3121_v54, 7  ;;  %v3367_v14 = vrot.slane %v3121_v54, 1 }
 0x287   : > { %v3024_v36 = vadd.f32 %v9120_v38, %v2985_v4  ;;  %v2986_v17 = vmul.f32 %v7339_v59, %v9115_v37  ;;  %v6508_v24 = vpop.f32.mrb[147].mxu0  ;;  %v9363_v27 = vld [vmem:[#allocation2 + $0x208] sm:$0xff]  ;;  %v3594_v19 = vpack.c.bf16 %v3121_v54, %v3120_v58  ;;  %v9386_v58 = vld [vmem:[%s10145_s3] ss:$0 sm:$0xff] }
 0x288   : > { %v7350_v21 = vadd.f32 %v9085_v60, %v6506_v7  ;;  %v6509_v0 = vadd.f32 %v6508_v24, %v6507_v29  ;;  %v3240_v9 = vsel %vm465_vm0, %v3238_v55, %v3239_v13  ;;  %v3368_v45 = vsel %vm594_vm1, %v3366_v44, %v3367_v14  ;;  %3437 = vst [vmem:[#allocation2 + $0x238] sm:$0x7f] %v3367_v14 }
 0x289   : > { %vm3057_vm10 = vcmp.ge.f32.partialorder %v3024_v36, 0.0  ;;  %v3090_v8 = vmul.f32 %v9124_v20, %v3024_v36  ;;  %3309 = vst [vmem:[#allocation2 + $0x228] sm:$0xff] %v3240_v9  ;;  %3436 = vst [vmem:[#allocation2 + $0x220] sm:$0xff] %v3368_v45  ;;  %v3025_v40 = vadd.f32 %v9120_v38, %v2986_v17  ;;  %v3592_v47 = vpack.c.bf16 %v9363_v27, %v3365_v57  ;;  %v9376_v38 = vld [vmem:[%s10144_s2] ss:$0 sm:$0xff] }
 0x28a   : > { %v7351_v37 = vadd.f32 %v7350_v21, %v9260_v48  ;;  %v7358_v60 = vadd.f32 %v9092_v23, %v6509_v0  ;;  %3913 = vmatmul.mubr.bf16.gmra.mrb[200].mxu0 %v3590_v22 }
 0x28b   : > { %v3122_v34 = vsel %vm3057_vm10, %v3024_v36, %v3090_v8  ;;  %vm3058_vm11 = vcmp.ge.f32.partialorder %v3025_v40, 0.0  ;;  %v3091_v11 = vmul.f32 %v9124_v20, %v3025_v40  ;;  %7140 = vmatprep.mubr.bf16.mxu1 %v3592_v47  ;;  %3920 = vmatprep.mubr.bf16.mxu0 %v3594_v19 }
 0x28c   : > { %3166 = vst [vmem:[#allocation2 + $0x248] sm:$0xff] %v3122_v34  ;;  %v3241_v35 = vrot.slane %v3122_v34, 7  ;;  %v6510_v32 = vpop.f32.mrb[148].mxu0  ;;  %v2987_v48 = vmul.f32 %v9376_v38, %v7351_v37  ;;  %v7359_v23 = vadd.f32 %v7358_v60, %v9266_v51  ;;  %v3369_v28 = vrot.slane %v3122_v34, 1 }
 0x28d   : > { %v6511_v63 = vpop.f32.mrb[149].mxu0  ;;  %v9380_v31 = vld [vmem:[#allocation2 + $0x210] sm:$0xff]  ;;  %v3123_v57 = vsel %vm3058_vm11, %v3025_v40, %v3091_v11 }
 0x28e   : > { %3310 = vst [vmem:[#allocation2 + $0x240] sm:$0xfe] %v3241_v35  ;;  %v6512_v62 = vadd.f32 %v6511_v63, %v6510_v32  ;;  %v6513_v10 = vpop.f32.mrb[150].mxu0  ;;  %v3593_v16 = vpack.c.bf16 %v3240_v9, %v9380_v31  ;;  %3167 = vst [vmem:[#allocation2 + $0x260] sm:$0xff] %v3123_v57  ;;  %v3242_v15 = vrot.slane %v3123_v57, 7  ;;  %v3370_v42 = vrot.slane %v3123_v57, 1 }
 0x28f   : > { %v3026_v51 = vadd.f32 %v9386_v58, %v2987_v48  ;;  %v2988_v55 = vmul.f32 %v9376_v38, %v7359_v23  ;;  %v6514_v2 = vpop.f32.mrb[151].mxu0  ;;  %v3535_v59 = vld [vmem:[#allocation2 + $0x238] sm:$0xff]  ;;  %v3597_v18 = vpack.c.bf16 %v3123_v57, %v3122_v34 }
 0x290   : > { %v7346_v5 = vadd.f32 %v9081_v52, %v6512_v62  ;;  %v6515_v4 = vadd.f32 %v6514_v2, %v6513_v10  ;;  %v3243_v44 = vsel %vm465_vm0, %v3241_v35, %v3242_v15  ;;  %v3371_v54 = vsel %vm594_vm1, %v3369_v28, %v3370_v42  ;;  %3439 = vst [vmem:[#allocation2 + $0x268] sm:$0x7f] %v3370_v42 }
 0x291   : > { %vm3059_vm12 = vcmp.ge.f32.partialorder %v3026_v51, 0.0  ;;  %v3092_v7 = vmul.f32 %v9124_v20, %v3026_v51  ;;  %3311 = vst [vmem:[#allocation2 + $0x258] sm:$0xff] %v3243_v44  ;;  %3438 = vst [vmem:[#allocation2 + $0x250] sm:$0xff] %v3371_v54  ;;  %v3027_v29 = vadd.f32 %v9386_v58, %v2988_v55  ;;  %v9397_v52 = vpack.c.bf16 %v3535_v59, %v3368_v45 }
 0x292   : > { %v7347_v22 = vadd.f32 %v7346_v5, %v9256_v33  ;;  %v7354_v13 = vadd.f32 %v9089_v3, %v6515_v4  ;;  %3921 = vmatmul.mubr.bf16.gmra.mrb[204].mxu0 %v3593_v16 }
 0x293   : > { %v3124_v14 = vsel %vm3059_vm12, %v3026_v51, %v3092_v7  ;;  %vm3060_vm13 = vcmp.ge.f32.partialorder %v3027_v29, 0.0  ;;  %v3093_v17 = vmul.f32 %v9124_v20, %v3027_v29  ;;  %7141 = vmatmul.mubr.bf16.gmra.mrb[116].mxu1 %v9397_v52  ;;  %3928 = vmatprep.mubr.bf16.mxu0 %v3597_v18 }
 0x294   : > { %3168 = vst [vmem:[#allocation2 + $0x278] sm:$0xff] %v3124_v14  ;;  %v3244_v36 = vrot.slane %v3124_v14, 7  ;;  %v6516_v24 = vpop.f32.mrb[152].mxu0  ;;  %v2989_v21 = vmul.f32 %v9376_v38, %v7347_v22  ;;  %v7355_v0 = vadd.f32 %v7354_v13, %v9263_v50  ;;  %v3372_v3 = vrot.slane %v3124_v14, 1 }
 0x295   : > { %v6517_v33 = vpop.f32.mrb[153].mxu0  ;;  %v9403_v19 = vld [vmem:[#allocation2 + $0x240] sm:$0xff]  ;;  %v3125_v9 = vsel %vm3060_vm13, %v3027_v29, %v3093_v17 }
 0x296   : > { %3312 = vst [vmem:[#allocation2 + $0x270] sm:$0xfe] %v3244_v36  ;;  %v6518_v45 = vadd.f32 %v6517_v33, %v6516_v24  ;;  %v6519_v8 = vpop.f32.mrb[154].mxu0  ;;  %v3596_v40 = vpack.c.bf16 %v3243_v44, %v9403_v19  ;;  %3169 = vst [vmem:[#allocation2 + $0x290] sm:$0xff] %v3125_v9  ;;  %v3245_v37 = vrot.slane %v3125_v9, 7  ;;  %v3373_v60 = vrot.slane %v3125_v9, 1 }
 0x297   : > { %v3028_v47 = vadd.f32 %v9386_v58, %v2989_v21  ;;  %v2990_v34 = vmul.f32 %v9376_v38, %v7355_v0  ;;  %v6520_v35 = vpop.f32.mrb[155].mxu0  ;;  %v3541_v32 = vld [vmem:[#allocation2 + $0x268] sm:$0xff]  ;;  %v3600_v48 = vpack.c.bf16 %v3125_v9, %v3124_v14 }
 0x298   : > { %v7366_v50 = vadd.f32 %v9101_v53, %v6518_v45  ;;  %v6521_v11 = vadd.f32 %v6520_v35, %v6519_v8  ;;  %v3246_v23 = vsel %vm465_vm0, %v3244_v36, %v3245_v37  ;;  %v3374_v63 = vsel %vm594_vm1, %v3372_v3, %v3373_v60  ;;  %3441 = vst [vmem:[#allocation2 + $0x298] sm:$0x7f] %v3373_v60 }
 0x299   : > { %vm3061_vm14 = vcmp.ge.f32.partialorder %v3028_v47, 0.0  ;;  %v3094_v28 = vmul.f32 %v9124_v20, %v3028_v47  ;;  %3313 = vst [vmem:[#allocation2 + $0x288] sm:$0xff] %v3246_v23  ;;  %3440 = vst [vmem:[#allocation2 + $0x280] sm:$0xff] %v3374_v63  ;;  %v3029_v57 = vadd.f32 %v9386_v58, %v2990_v34  ;;  %v9415_v53 = vpack.c.bf16 %v3541_v32, %v3371_v54 }
 0x29a   : > { %v7367_v62 = vadd.f32 %v7366_v50, %v9286_v41  ;;  %v7374_v10 = vadd.f32 %v9108_v61, %v6521_v11  ;;  %3929 = vmatmul.mubr.bf16.gmra.mrb[208].mxu0 %v3596_v40 }
 0x29b   : > { %v3126_v16 = vsel %vm3061_vm14, %v3028_v47, %v3094_v28  ;;  %vm3062_vm15 = vcmp.ge.f32.partialorder %v3029_v57, 0.0  ;;  %v3095_v42 = vmul.f32 %v9124_v20, %v3029_v57  ;;  %7144 = vmatprep.mubr.bf16.mxu1 %v9415_v53  ;;  %3936 = vmatprep.mubr.bf16.mxu0 %v3600_v48 }
 0x29c   : > { %3170 = vst [vmem:[#allocation2 + $0x2a8] sm:$0xff] %v3126_v16  ;;  %v3247_v15 = vrot.slane %v3126_v16, 7  ;;  %v6522_v51 = vpop.f32.mrb[156].mxu0  ;;  %v2991_v55 = vmul.f32 %v9376_v38, %v7367_v62  ;;  %v7375_v2 = vadd.f32 %v7374_v10, %v9294_v46  ;;  %v3375_v61 = vrot.slane %v3126_v16, 1 }
 0x29d   : > { %v6523_v41 = vpop.f32.mrb[157].mxu0  ;;  %v9421_v5 = vld [vmem:[#allocation2 + $0x270] sm:$0xff]  ;;  %v3127_v4 = vsel %vm3062_vm15, %v3029_v57, %v3095_v42 }
 0x29e   : > { %3314 = vst [vmem:[#allocation2 + $0x2a0] sm:$0xfe] %v3247_v15  ;;  %v6524_v59 = vadd.f32 %v6523_v41, %v6522_v51  ;;  %v6525_v18 = vpop.f32.mrb[158].mxu0  ;;  %v3599_v44 = vpack.c.bf16 %v3246_v23, %v9421_v5  ;;  %3171 = vst [vmem:[#allocation2 + $0x2c0] sm:$0xff] %v3127_v4  ;;  %v3248_v54 = vrot.slane %v3127_v4, 7  ;;  %v3376_v7 = vrot.slane %v3127_v4, 1 }
 0x29f   : > { %v3030_v29 = vadd.f32 %v9386_v58, %v2991_v55  ;;  %v2992_v22 = vmul.f32 %v9376_v38, %v7375_v2  ;;  %v6526_v13 = vpop.f32.mrb[159].mxu0  ;;  %v3547_v36 = vld [vmem:[#allocation2 + $0x298] sm:$0xff]  ;;  %v3603_v17 = vpack.c.bf16 %v3127_v4, %v3126_v16 }
 0x2a0   : > { %v7362_v46 = vadd.f32 %v9097_v56, %v6524_v59  ;;  %v6527_v14 = vadd.f32 %v6526_v13, %v6525_v18  ;;  %v3249_v24 = vsel %vm465_vm0, %v3247_v15, %v3248_v54  ;;  %v3377_v21 = vsel %vm594_vm1, %v3375_v61, %v3376_v7  ;;  %3443 = vst [vmem:[#allocation2 + $0x2c8] sm:$0x7f] %v3376_v7  ;;  %v4156_v54 = vld [vmem:[#allocation2 + $0x40] sm:$0xff]  ;;  %v4159_v7 = vld [vmem:[#allocation2 + $0x58] sm:$0xff] }
 0x2a1   : > { %vm3063_vm2 = vcmp.ge.f32.partialorder %v3030_v29, 0.0  ;;  %v3096_v0 = vmul.f32 %v9124_v20, %v3030_v29  ;;  %3315 = vst [vmem:[#allocation2 + $0x2b8] sm:$0xff] %v3249_v24  ;;  %3442 = vst [vmem:[#allocation2 + $0x2b0] sm:$0xff] %v3377_v21  ;;  %v3031_v33 = vadd.f32 %v9386_v58, %v2992_v22  ;;  %v9433_v56 = vpack.c.bf16 %v3547_v36, %v3374_v63  ;;  %v4155_v36 = vld [vmem:[#allocation2 + $0x38] sm:$0xff] }
 0x2a2   : > { %v7363_v3 = vadd.f32 %v7362_v46, %v9283_v25  ;;  %v7370_v9 = vadd.f32 %v9105_v30, %v6527_v14  ;;  %3937 = vmatmul.mubr.bf16.gmra.mrb[212].mxu0 %v3599_v44 }
 0x2a3   : > { %v3128_v45 = vsel %vm3063_vm2, %v3030_v29, %v3096_v0  ;;  %vm3064_vm3 = vcmp.ge.f32.partialorder %v3031_v33, 0.0  ;;  %v3097_v40 = vmul.f32 %v9124_v20, %v3031_v33  ;;  %7145 = vmatmul.mubr.bf16.gmra.mrb[120].mxu1 %v9433_v56  ;;  %3944 = vmatprep.mubr.bf16.mxu0 %v3603_v17  ;;  %v4162_v0 = vld [vmem:[#allocation2 + $0x70] sm:$0xff] }
 0x2a4   : > { %3172 = vst [vmem:[#allocation2 + $0x2d8] sm:$0xff] %v3128_v45  ;;  %v3250_v8 = vrot.slane %v3128_v45, 7  ;;  %v6568_v37 = vpop.f32.mrb[160].mxu0  ;;  %v2993_v60 = vmul.f32 %v9376_v38, %v7363_v3  ;;  %v7371_v47 = vadd.f32 %v7370_v9, %v9289_v39  ;;  %v3378_v34 = vrot.slane %v3128_v45, 1  ;;  %v4164_v3 = vld [vmem:[#allocation2 + $0x80] sm:$0xff] }
 0x2a5   : > { %v9439_v25 = vld [vmem:[#allocation2 + $0x2a0] sm:$0xff]  ;;  %v6569_v30 = vpop.f32.mrb[161].mxu0  ;;  %v3129_v35 = vsel %vm3064_vm3, %v3031_v33, %v3097_v40  ;;  %v4165_v33 = vld [vmem:[#allocation2 + $0x88] sm:$0xff] }
 0x2a6   : > { %3316 = vst [vmem:[#allocation2 + $0x2d0] sm:$0xfe] %v3250_v8  ;;  %v3602_v50 = vpack.c.bf16 %v3249_v24, %v9439_v25  ;;  %v9442_v11 = vadd.f32 %v6569_v30, %v6568_v37  ;;  %v6571_v32 = vpop.f32.mrb[162].mxu0  ;;  %3173 = vst [vmem:[#allocation2 + $0x2f0] sm:$0xff] %v3129_v35  ;;  %v3251_v48 = vrot.slane %v3129_v35, 7  ;;  %v3379_v23 = vrot.slane %v3129_v35, 1 }
 0x2a7   : > { %v3032_v63 = vadd.f32 %v9386_v58, %v2993_v60  ;;  %v2994_v28 = vmul.f32 %v9376_v38, %v7371_v47  ;;  %v6572_v57 = vpop.f32.mrb[163].mxu0  ;;  %v3553_v39 = vld [vmem:[#allocation2 + $0x2c8] sm:$0xff]  ;;  %v9446_v62 = vpack.c.bf16 %v3129_v35, %v3128_v45  ;;  %v4252_v24 = vpack.c.bf16 %v4159_v7, %v4156_v54  ;;  %v4168_v9 = vld [vmem:[#allocation2 + $0xa0] sm:$0xff]  ;;  %v4171_v45 = vld [vmem:[#allocation2 + $0xb8] sm:$0xff] }
 0x2a8   : > { %v9448_v10 = vadd.f32 %v6572_v57, %v6571_v32  ;;  %v3252_v16 = vsel %vm465_vm0, %v3250_v8, %v3251_v48  ;;  %v3380_v15 = vsel %vm594_vm1, %v3378_v34, %v3379_v23  ;;  %3445 = vst [vmem:[#allocation2 + $0x2f8] sm:$0x7f] %v3379_v23  ;;  %v9454_v55 = vpack.c.bf16 %v3553_v39, %v3377_v21  ;;  %v4157_v21 = vld [vmem:[#allocation2 + $0x48] sm:$0xff]  ;;  %v4154_v8 = vld [vmem:[#allocation2 + $0x30] sm:$0xff]  ;;  %v7763_v47 = vld [vmem:[#allocation10 + $0x180] sm:$0xff]  }
 0x2a9   : > { %vm3065_vm4 = vcmp.ge.f32.partialorder %v3032_v63, 0.0  ;;  %v3098_v42 = vmul.f32 %v9124_v20, %v3032_v63  ;;  %3317 = vst [vmem:[#allocation2 + $0x2e8] sm:$0xff] %v3252_v16  ;;  %3444 = vst [vmem:[#allocation2 + $0x2e0] sm:$0xff] %v3380_v15  ;;  %v3033_v51 = vadd.f32 %v9386_v58, %v2994_v28  ;;  %v4250_v40 = vpack.c.bf16 %v4157_v21, %v4154_v8  ;;  %v4161_v60 = vld [vmem:[#allocation2 + $0x68] sm:$0xff]  ;;  %v4174_v48 = vld [vmem:[#allocation2 + $0xd0] sm:$0xff] }
 0x2aa   : > { %3945 = vmatmul.mubr.bf16.gmra.mrb[216].mxu0 %v3602_v50  ;;  %7148 = vmatprep.mubr.bf16.mxu1 %v9454_v55  ;;  %v9488_v37 = vpack.c.bf16 %v4165_v33, %v4162_v0  ;;  %v9490_v30 = vpack.c.bf16 %v4164_v3, %v4161_v60  ;;  %v9492_v34 = vpack.c.bf16 %v4171_v45, %v4168_v9  ;;  %v7764_v35 = vld [vmem:[#allocation10 + $0x1c8] sm:$0xff]   ;;  %v4163_v50 = vld [vmem:[#allocation2 + $0x78] sm:$0xff]  ;;  %v4170_v28 = vld [vmem:[#allocation2 + $0xb0] sm:$0xff] }
 0x2ab   : > { %v9456_v38 = vsel %vm3065_vm4, %v3032_v63, %v3098_v42  ;;  %vm3066_vm5 = vcmp.ge.f32.partialorder %v3033_v51, 0.0  ;;  %v3099_v41 = vmul.f32 %v9124_v20, %v3033_v51  ;;  %3952 = vmatprep.mubr.bf16.mxu0 %v9446_v62  ;;  %v4158_v20 = vld [vmem:[#allocation2 + $0x50] sm:$0xff]  ;;  %v7765_v32 = vld [vmem:[#allocation10 + $0x188] sm:$0xff]   ;;  %v4180_v57 = vld [vmem:[#allocation2 + $0x100] sm:$0xff] }
 0x2ac   : > { %3174 = vst [vmem:[#allocation2 + $0x308] sm:$0xff] %v9456_v38  ;;  %v3253_v2 = vrot.slane %v9456_v38, 7  ;;  %v3381_v58 = vrot.slane %v9456_v38, 1  ;;  %v4251_v17 = vpack.c.bf16 %v4158_v20, %v4155_v36  ;;  %v4177_v23 = vld [vmem:[#allocation2 + $0xe8] sm:$0xff]  ;;  %v7766_v63 = vld [vmem:[#allocation10 + $0x1d0] sm:$0xff]   ;;  %v4183_v39 = vld [vmem:[#allocation2 + $0x118] sm:$0xff] }
 0x2ad   : > { %v9463_v61 = vld [vmem:[#allocation2 + $0x2d0] sm:$0xff]  ;;  %v9466_v4 = vsel %vm3066_vm5, %v3033_v51, %v3099_v41  ;;  %v9499_v42 = vpack.c.bf16 %v4177_v23, %v4174_v48  ;;  %v4167_v51 = vld [vmem:[#allocation2 + $0x98] sm:$0xff]  ;;  %v4169_v20 = vld [vmem:[#allocation2 + $0xa8] sm:$0xff] }
 0x2ae   : > { %3318 = vst [vmem:[#allocation2 + $0x300] sm:$0xfe] %v3253_v2  ;;  %3175 = vst [vmem:[#allocation2 + $0x320] sm:$0xff] %v9466_v4  ;;  %v3254_v59 = vrot.slane %v9466_v4, 7  ;;  %v3382_v18 = vrot.slane %v9466_v4, 1  ;;  %v9472_v44 = vpack.c.bf16 %v3252_v16, %v9463_v61  ;;  %v4296_v29 = vpack.c.bf16 %v9466_v4, %v9456_v38  ;;  %v4160_v16 = vld [vmem:[#allocation2 + $0x60] sm:$0xff] }
 0x2af   : > { %v3559_v22 = vld [vmem:[#allocation2 + $0x2f8] sm:$0xff]  ;;  %v9501_v41 = vpack.c.bf16 %v4170_v28, %v4167_v51  ;;  %v9509_v54 = vld [vmem:[#allocation2 + $0x130] sm:$0xff]  ;;  %v7770_v7 = vld [vmem:[#allocation10 + $0x1e0] sm:$0xff]  }
 0x2b0   : > { %v9477_v13 = vsel %vm465_vm0, %v3253_v2, %v3254_v59  ;;  %v9480_v46 = vsel %vm594_vm1, %v3381_v58, %v3382_v18  ;;  %3447 = vst [vmem:[#allocation2 + $0x328] sm:$0x7f] %v3382_v18  ;;  %v9482_v14 = vpack.c.bf16 %v3559_v22, %v3380_v15  ;;  %v9497_v15 = vpack.c.bf16 %v4163_v50, %v4160_v16  ;;  %v7767_v2 = vld [vmem:[#allocation10 + $0x190] sm:$0xff]   ;;  %v7768_v59 = vld [vmem:[#allocation10 + $0x1d8] sm:$0xff]   ;;  %v4176_v22 = vld [vmem:[#allocation2 + $0xe0] sm:$0xff] }
 0x2b1   : > { %3319 = vst [vmem:[#allocation2 + $0x318] sm:$0xff] %v9477_v13  ;;  %3446 = vst [vmem:[#allocation2 + $0x310] sm:$0xff] %v9480_v46  ;;  %v9503_v58 = vpack.c.bf16 %v4183_v39, %v4180_v57  ;;  %v7769_v18 = vld [vmem:[#allocation10 + $0x198] sm:$0xff]   ;;  %v9511_v36 = vld [vmem:[#allocation2 + $0x160] sm:$0xff]  ;;  %v4267_v21 = vpack.c.bf16 %v9296_v43, %v9509_v54 }
 0x2b2   : > { %3953 = vmatmul.mubr.bf16.gmra.mrb[220].mxu0 %v9472_v44  ;;  %7149 = vmatmul.mubr.bf16.gmra.mrb[124].mxu1 %v9482_v14  ;;  %v4173_v0 = vld [vmem:[#allocation2 + $0xc8] sm:$0xff]  ;;  %v7771_v33 = vld [vmem:[#allocation10 + $0x1a0] sm:$0xff]   ;;  %v4270_v9 = vpack.c.bf16 %v9312_v6, %v9511_v36  ;;  %v9523_v43 = vld [vmem:[#allocation2 + $0x190] sm:$0xff] }
 0x2b3   : > { %4523 = vmatprep.mubr.bf16.mxu0 %v4251_v17  ;;  %7168 = vmatprep.mubr.bf16.mxu1 %v4252_v24  ;;  %v4166_v17 = vld [vmem:[#allocation2 + $0x90] sm:$0xff]  ;;  %v9517_v3 = vpack.c.bf16 %v4176_v22, %v4173_v0  ;;  %v7772_v45 = vld [vmem:[#allocation10 + $0x1e8] sm:$0xff]   ;;  %v4172_v50 = vld [vmem:[#allocation2 + $0xc0] sm:$0xff] }
 0x2b4   : > { %v9513_v24 = vpack.c.bf16 %v4169_v20, %v4166_v17  ;;  %v7773_v8 = vld [vmem:[#allocation10 + $0x1a8] sm:$0xff]   ;;  %v7774_v60 = vld [vmem:[#allocation10 + $0x1f0] sm:$0xff]   ;;  %v4179_v48 = vld [vmem:[#allocation2 + $0xf8] sm:$0xff] }
 0x2b5   : > { %v7775_v23 = vld [vmem:[#allocation10 + $0x1b0] sm:$0xff]   ;;  %v7776_v57 = vld [vmem:[#allocation10 + $0x1f8] sm:$0xff]   ;;  %v4181_v16 = vld [vmem:[#allocation2 + $0x108] sm:$0xff] }
 0x2b6   : > { %v7777_v39 = vld [vmem:[#allocation10 + $0x1b8] sm:$0xff]   ;;  %v7778_v51 = vld [vmem:[#allocation10 + $0x200] sm:$0xff]   ;;  %v4185_v20 = vld [vmem:[#allocation2 + $0x128] sm:$0xff] }
 0x2b7   : > { %v4187_v22 = vld [vmem:[#allocation2 + $0x138] sm:$0xff]  ;;  %v4194_v17 = vld [vmem:[#allocation2 + $0x170] sm:$0xff] }
 0x2ba   : > { %4524 = vmatmul.mubr.bf16.vlgmr.msra.gmra.mrb[224].mxu0 %v4250_v40  ;;  %7169 = vmatmul.mubr.bf16.vlgmr.msra.gmra.mrb[96].mxu1 %v9488_v37  ;;  %v4175_v40 = vld [vmem:[#allocation2 + $0xd8] sm:$0xff] }
 0x2bb   : > { %4531 = vmatprep.mubr.bf16.mxu0 %v9490_v30  ;;  %7172 = vmatprep.mubr.bf16.mxu1 %v9492_v34  ;;  %v9527_v6 = vpack.c.bf16 %v4175_v40, %v4172_v50  ;;  %v4197_v40 = vld [vmem:[#allocation2 + $0x188] sm:$0xff]  ;;  %v4196_v50 = vld [vmem:[#allocation2 + $0x180] sm:$0xff] }
 0x2bc   : > { %6825 = vmatpush3.bf16.msra.mxu1 %v7763_v47  ;;  %v4182_v47 = vld [vmem:[#allocation2 + $0x110] sm:$0xff] }
 0x2bd   : > { %6826 = vmatprep.subr.bf16.mxu1 %v7764_v35  ;;  %v9525_v35 = vld [vmem:[#allocation2 + $0x1c0] sm:$0xff] }
 0x2be   : > { %v4276_v28 = vpack.c.bf16 %v9345_v49, %v9525_v35 }
 0x2c0   : > { %6827 = vmatpush3.bf16.msra.mxu1 %v7765_v32  ;;  %v4273_v32 = vpack.c.bf16 %v9327_v1, %v9523_v43  ;;  %v9537_v1 = vld [vmem:[#allocation2 + $0x1f0] sm:$0xff] }
 0x2c1   : > { %6828 = vmatprep.subr.bf16.mxu1 %v7766_v63  ;;  %v9531_v63 = vpack.c.bf16 %v4182_v47, %v4179_v48  ;;  %v4279_v49 = vpack.c.bf16 %v9363_v27, %v9537_v1  ;;  %v4193_v27 = vld [vmem:[#allocation2 + $0x168] sm:$0xff] }
 0x2c2   : > { %4532 = vmatmul.mubr.bf16.gmra.mrb[228].mxu0 %v9497_v15  ;;  %7173 = vmatmul.mubr.bf16.gmra.mrb[100].mxu1 %v9499_v42  ;;  %v9564_v47 = vld [vmem:[#allocation2 + $0x328] sm:$0xff] }
 0x2c3   : > { %4539 = vmatprep.mubr.bf16.mxu0 %v9501_v41  ;;  %7176 = vmatprep.mubr.bf16.mxu1 %v9503_v58  ;;  %v4297_v48 = vpack.c.bf16 %v9564_v47, %v9480_v46  ;;  %v7779_v46 = vld [vmem:[#allocation10 + $0x208] sm:$0xff]  }
 0x2c4   : > { %6829 = vmatpush3.bf16.msra.mxu1 %v7767_v2  ;;  %v4188_v2 = vld [vmem:[#allocation2 + $0x140] sm:$0xff] }
 0x2c5   : > { %6830 = vmatprep.subr.bf16.mxu1 %v7768_v59  ;;  %v4178_v59 = vld [vmem:[#allocation2 + $0xf0] sm:$0xff] }
 0x2c8   : > { %6831 = vmatpush3.bf16.msra.mxu1 %v7769_v18  ;;  %v9539_v18 = vpack.c.bf16 %v4181_v16, %v4178_v59  ;;  %v4218_v59 = vld [vmem:[#allocation2 + $0x230] sm:$0xff] }
 0x2c9   : > { %6832 = vmatprep.subr.bf16.mxu1 %v7770_v7  ;;  %v9543_v7 = vpack.c.bf16 %v4188_v2, %v4185_v20  ;;  %v9584_v2 = vld [vmem:[#allocation2 + $0x1f8] sm:$0xff] }
 0x2ca   : > { %4540 = vmatmul.mubr.bf16.gmra.mrb[232].mxu0 %v9513_v24  ;;  %7177 = vmatmul.mubr.bf16.gmra.mrb[104].mxu1 %v4267_v21  ;;  %v4184_v21 = vld [vmem:[#allocation2 + $0x120] sm:$0xff] }
 0x2cb   : > { %4547 = vmatprep.mubr.bf16.mxu0 %v9517_v3  ;;  %7180 = vmatprep.mubr.bf16.mxu1 %v4270_v9  ;;  %v9548_v0 = vpack.c.bf16 %v4187_v22, %v4184_v21  ;;  %v7781_v22 = vld [vmem:[#allocation10 + $0x218] sm:$0xff]  }
 0x2cc   : > { %6833 = vmatpush3.bf16.msra.mxu1 %v7771_v33  ;;  %v4191_v33 = vld [vmem:[#allocation2 + $0x158] sm:$0xff] }
 0x2cd   : > { %6834 = vmatprep.subr.bf16.mxu1 %v7772_v45  ;;  %v9550_v9 = vpack.c.bf16 %v4194_v17, %v4191_v33  ;;  %v4200_v45 = vld [vmem:[#allocation2 + $0x1a0] sm:$0xff]  ;;  %v4221_v17 = vld [vmem:[#allocation2 + $0x248] sm:$0xff] }
 0x2ce   : > { %v7783_v33 = vld [vmem:[#allocation10 + $0x228] sm:$0xff]  }
 0x2d0   : > { %6835 = vmatpush3.bf16.msra.mxu1 %v7773_v8  ;;  %v4190_v8 = vld [vmem:[#allocation2 + $0x150] sm:$0xff] }
 0x2d1   : > { %6836 = vmatprep.subr.bf16.mxu1 %v7774_v60  ;;  %v9558_v60 = vpack.c.bf16 %v4200_v45, %v4197_v40  ;;  %v4227_v45 = vld [vmem:[#allocation2 + $0x278] sm:$0xff] }
 0x2d2   : > { %4548 = vmatmul.mubr.bf16.gmra.mrb[236].mxu0 %v9527_v6  ;;  %7181 = vmatmul.mubr.bf16.gmra.mrb[108].mxu1 %v4273_v32  ;;  %v7785_v40 = vld [vmem:[#allocation10 + $0x238] sm:$0xff]  }
 0x2d3   : > { %4555 = vmatprep.mubr.bf16.mxu0 %v9531_v63  ;;  %7184 = vmatprep.mubr.bf16.mxu1 %v4276_v28 }
 0x2d4   : > { %6837 = vmatpush3.bf16.msra.mxu1 %v7775_v23  ;;  %v4203_v23 = vld [vmem:[#allocation2 + $0x1b8] sm:$0xff] }
 0x2d5   : > { %6838 = vmatprep.subr.bf16.mxu1 %v7776_v57 }
 0x2d8   : > { %6839 = vmatpush3.bf16.msra.mxu1 %v7777_v39  ;;  %v4209_v39 = vld [vmem:[#allocation2 + $0x1e8] sm:$0xff] }
 0x2d9   : > { %7200 = vmatprep.subr.bf16.mxu1 %v7778_v51 }
 0x2da   : > { %4556 = vmatmul.mubr.bf16.gmra.mrb[240].mxu0 %v9539_v18  ;;  %7185 = vmatmul.mubr.bf16.gmra.mrb[112].mxu1 %v4279_v49  ;;  %v4215_v49 = vld [vmem:[#allocation2 + $0x218] sm:$0xff] }
 0x2db   : > { %4563 = vmatprep.mubr.bf16.mxu0 %v9543_v7  ;;  %7188 = vmatprep.mubr.bf16.mxu1 %v9397_v52  ;;  %v9556_v52 = vpack.c.bf16 %v4193_v27, %v4190_v8  ;;  %v9588_v20 = vpack.c.bf16 %v4218_v59, %v4215_v49  ;;  %v4230_v27 = vld [vmem:[#allocation2 + $0x290] sm:$0xff] }
 0x2dc   : > { %v9606_v8 = vpack.c.bf16 %v4230_v27, %v4227_v45 }
 0x2e2   : > { %4564 = vmatmul.mubr.bf16.gmra.mrb[244].mxu0 %v9548_v0  ;;  %7189 = vmatmul.mubr.bf16.gmra.mrb[116].mxu1 %v9415_v53  ;;  %v4199_v53 = vld [vmem:[#allocation2 + $0x198] sm:$0xff] }
 0x2e3   : > { %4571 = vmatprep.mubr.bf16.mxu0 %v9550_v9  ;;  %7192 = vmatprep.mubr.bf16.mxu1 %v9433_v56  ;;  %v4206_v56 = vld [vmem:[#allocation2 + $0x1d0] sm:$0xff]  ;;  %v9566_v32 = vpack.c.bf16 %v4199_v53, %v4196_v50 }
 0x2e4   : > { %v9570_v28 = vpack.c.bf16 %v4206_v56, %v4203_v23 }
 0x2ea   : > { %4572 = vmatmul.mubr.bf16.gmra.mrb[248].mxu0 %v9556_v52  ;;  %7193 = vmatmul.mubr.bf16.gmra.mrb[120].mxu1 %v9454_v55  ;;  %v9575_v55 = vld [vmem:[#allocation2 + $0x1c8] sm:$0xff] }
 0x2eb   : > { %4579 = vmatprep.mubr.bf16.mxu0 %v9558_v60  ;;  %7196 = vmatprep.mubr.bf16.mxu1 %v9482_v14  ;;  %v4212_v14 = vld [vmem:[#allocation2 + $0x200] sm:$0xff]  ;;  %v4274_v57 = vpack.c.bf16 %v9575_v55, %v9339_v12  ;;  %v4277_v12 = vpack.c.bf16 %v9584_v2, %v9357_v26 }
 0x2ec   : > { %v9579_v16 = vpack.c.bf16 %v4212_v14, %v4209_v39  ;;  %v4233_v14 = vld [vmem:[#allocation2 + $0x2a8] sm:$0xff]  ;;  %v4235_v39 = vld [vmem:[#allocation2 + $0x2b8] sm:$0xff] }
 0x2f2   : > { %4580 = vmatmul.mubr.bf16.gmra.mrb[252].mxu0 %v9566_v32  ;;  %7197 = vmatmul.mubr.bf16.gmra.mrb[124].mxu1 %v4297_v48 }
 0x2f3   : > { %4587 = vmatprep.mubr.bf16.mxu0 %v9570_v28  ;;  %5278 = vmatprep.mubr.bf16.mxu1 %v9490_v30  ;;  %v7780_v30 = vld [vmem:[#allocation10 + $0x210] sm:$0xff]  }
 0x2fa   : > { %4588 = vmatmul.mubr.bf16.gmra.mrb[0].mxu0 %v4274_v57  ;;  %5279 = vmatmul.mubr.bf16.vlgmr.msra.gmra.mrb[128].mxu1 %v9497_v15  ;;  %v9593_v15 = vld [vmem:[#allocation2 + $0x228] sm:$0xff] }
 0x2fb   : > { %4595 = vmatprep.mubr.bf16.mxu0 %v9579_v16  ;;  %5286 = vmatprep.mubr.bf16.mxu1 %v9501_v41  ;;  %v7782_v41 = vld [vmem:[#allocation10 + $0x220] sm:$0xff]   ;;  %v4280_v26 = vpack.c.bf16 %v9593_v15, %v9380_v31 }
 0x2fc   : > { %7201 = vmatpush3.bf16.msra.mxu1 %v7778_v51  ;;  %v4224_v51 = vld [vmem:[#allocation2 + $0x260] sm:$0xff] }
 0x2fd   : > { %7202 = vmatprep.subr.bf16.mxu1 %v7779_v46  ;;  %v9597_v21 = vpack.c.bf16 %v4224_v51, %v4221_v17 }
 0x300   : > { %7203 = vmatpush3.bf16.msra.mxu1 %v7779_v46 }
 0x301   : > { %7204 = vmatprep.subr.bf16.mxu1 %v7780_v30 }
 0x302   : > { %4596 = vmatmul.mubr.bf16.gmra.mrb[4].mxu0 %v4277_v12  ;;  %5287 = vmatmul.mubr.bf16.gmra.mrb[132].mxu1 %v9513_v24  ;;  %v9602_v24 = vld [vmem:[#allocation2 + $0x258] sm:$0xff]  ;;  %v9627_v12 = vpack.c.bf16 %v4235_v39, %v9439_v25 }
 0x303   : > { %4603 = vmatprep.mubr.bf16.mxu0 %v9588_v20  ;;  %5294 = vmatprep.mubr.bf16.mxu1 %v9517_v3  ;;  %v7784_v3 = vld [vmem:[#allocation10 + $0x230] sm:$0xff]   ;;  %v4283_v31 = vpack.c.bf16 %v9602_v24, %v9403_v19  ;;  %v4236_v19 = vld [vmem:[#allocation2 + $0x2c0] sm:$0xff] }
 0x304   : > { %7205 = vmatpush3.bf16.msra.mxu1 %v7780_v30  ;;  %v9619_v57 = vpack.c.bf16 %v4236_v19, %v4233_v14 }
 0x305   : > { %7206 = vmatprep.subr.bf16.mxu1 %v7781_v22 }
 0x308   : > { %7207 = vmatpush3.bf16.msra.mxu1 %v7781_v22 }
 0x309   : > { %7208 = vmatprep.subr.bf16.mxu1 %v7782_v41 }
 0x30a   : > { %4604 = vmatmul.mubr.bf16.gmra.mrb[8].mxu0 %v4280_v26  ;;  %5295 = vmatmul.mubr.bf16.gmra.mrb[136].mxu1 %v9527_v6 }
 0x30b   : > { %4611 = vmatprep.mubr.bf16.mxu0 %v9597_v21  ;;  %5302 = vmatprep.mubr.bf16.mxu1 %v9531_v63  ;;  %v9611_v63 = vld [vmem:[#allocation2 + $0x288] sm:$0xff] }
 0x30c   : > { %7209 = vmatpush3.bf16.msra.mxu1 %v7782_v41  ;;  %v4286_v23 = vpack.c.bf16 %v9611_v63, %v9421_v5 }
 0x30d   : > { %7210 = vmatprep.subr.bf16.mxu1 %v7783_v33 }
 0x310   : > { %7211 = vmatpush3.bf16.msra.mxu1 %v7783_v33  ;;  %v4951_v33 = vld [vmem:[#allocation2 + $0x1b0] sm:$0xff] }
 0x311   : > { %7212 = vmatprep.subr.bf16.mxu1 %v7784_v3 }
 0x312   : > { %4612 = vmatmul.mubr.bf16.gmra.mrb[12].mxu0 %v4283_v31  ;;  %5303 = vmatmul.mubr.bf16.gmra.mrb[140].mxu1 %v9539_v18  ;;  %v4957_v31 = vld [vmem:[#allocation2 + $0x1e0] sm:$0xff] }
 0x313   : > { %4619 = vmatprep.mubr.bf16.mxu0 %v9606_v8  ;;  %5310 = vmatprep.mubr.bf16.mxu1 %v9543_v7  ;;  %v6574_v6 = vpop.f32.mrb[164].mxu0 }
 0x314   : > { %7213 = vmatpush3.bf16.msra.mxu1 %v7784_v3  ;;  %v6575_v53 = vpop.f32.mrb[165].mxu0 }
 0x315   : > { %7214 = vmatprep.subr.bf16.mxu1 %v7785_v40  ;;  %v9613_v56 = vadd.f32 %v6575_v53, %v6574_v6  ;;  %v6577_v50 = vpop.f32.mrb[166].mxu0 }
 0x316   : > { %v6578_v48 = vpop.f32.mrb[167].mxu0 }
 0x317   : > { %v9617_v18 = vadd.f32 %v6578_v48, %v6577_v50 }
 0x318   : > { %7215 = vmatpush3.bf16.msra.mxu1 %v7785_v40  ;;  %v5029_v40 = vpack.c.bf16 %v9584_v2, %v4957_v31 }
 0x31a   : > { %4620 = vmatmul.mubr.bf16.gmra.mrb[16].mxu0 %v4286_v23  ;;  %5311 = vmatmul.mubr.bf16.gmra.mrb[144].mxu1 %v9548_v0 }
 0x31b   : > { %4627 = vmatprep.mubr.bf16.mxu0 %v9619_v57  ;;  %5318 = vmatprep.mubr.bf16.mxu1 %v9550_v9 }
 0x31c   : > { %v6580_v7 = vpop.f32.mrb[168].mxu0 }
 0x31d   : > { %v6581_v46 = vpop.f32.mrb[169].mxu0 }
 0x31e   : > { %v9624_v30 = vadd.f32 %v6581_v46, %v6580_v7  ;;  %v6583_v59 = vpop.f32.mrb[170].mxu0 }
 0x31f   : > { %v6584_v5 = vpop.f32.mrb[171].mxu0 }
 0x320   : > { %v9629_v49 = vadd.f32 %v6584_v5, %v6583_v59 }
 0x322   : > { %4628 = vmatmul.mubr.bf16.gmra.mrb[20].mxu0 %v9627_v12  ;;  %5319 = vmatmul.mubr.bf16.gmra.mrb[148].mxu1 %v9556_v52 }
 0x323   : > { %4635 = vmatprep.mubr.bf16.mxu0 %v9446_v62  ;;  %5326 = vmatprep.mubr.bf16.mxu1 %v9558_v60  ;;  %v9645_v62 = vld [vmem:[#allocation2 + $0x300] sm:$0xff] }
 0x324   : > { %v6586_v0 = vpop.f32.mrb[172].mxu0 }
 0x325   : > { %v6587_v9 = vpop.f32.mrb[173].mxu0 }
 0x326   : > { %v9635_v22 = vadd.f32 %v6587_v9, %v6586_v0  ;;  %v6589_v41 = vpop.f32.mrb[174].mxu0 }
 0x327   : > { %v6590_v51 = vpop.f32.mrb[175].mxu0 }
 0x328   : > { %v9637_v26 = vadd.f32 %v6590_v51, %v6589_v41 }
 0x32a   : > { %4636 = vmatmul.mubr.bf16.gmra.mrb[24].mxu0 %v9472_v44  ;;  %5327 = vmatmul.mubr.bf16.gmra.mrb[152].mxu1 %v9566_v32  ;;  %v4295_v44 = vpack.c.bf16 %v9477_v13, %v9645_v62  ;;  %v5026_v32 = vpack.c.bf16 %v9575_v55, %v4951_v33  ;;  %v4991_v33 = vld [vmem:[#allocation2 + $0x2f0] sm:$0xff] }
 0x32b   : > { %4643 = vmatprep.mubr.bf16.mxu0 %v4296_v29  ;;  %5334 = vmatprep.mubr.bf16.mxu1 %v9570_v28 }
 0x32d   : > { %v6592_v25 = vpop.f32.mrb[176].mxu0 }
 0x32e   : > { %v6593_v52 = vpop.f32.mrb[177].mxu0 }
 0x32f   : > { %v9647_v60 = vadd.f32 %v6593_v52, %v6592_v25  ;;  %v6595_v17 = vpop.f32.mrb[178].mxu0 }
 0x330   : > { %v6596_v3 = vpop.f32.mrb[179].mxu0 }
 0x331   : > { %v9652_v27 = vadd.f32 %v6596_v3, %v6595_v17 }
 0x332   : > { %4644 = vmatmul.mubr.bf16.gmra.mrb[28].mxu0 %v4295_v44  ;;  %5335 = vmatmul.mubr.bf16.gmra.mrb[156].mxu1 %v5026_v32  ;;  %v4988_v32 = vld [vmem:[#allocation2 + $0x2d8] sm:$0xff] }
 0x333   : > { %5342 = vmatprep.mubr.bf16.mxu1 %v9579_v16  ;;  %v4963_v16 = vld [vmem:[#allocation2 + $0x210] sm:$0xff] }
 0x334   : > { %v5032_v48 = vpack.c.bf16 %v9593_v15, %v4963_v16 }
 0x335   : > { %v6598_v38 = vpop.f32.mrb[180].mxu0 }
 0x336   : > { %v6599_v4 = vpop.f32.mrb[181].mxu0 }
 0x337   : > { %v9655_v29 = vadd.f32 %v6599_v4, %v6598_v38  ;;  %v6601_v28 = vpop.f32.mrb[182].mxu0  ;;  %v5045_v4 = vpack.c.bf16 %v4991_v33, %v4988_v32 }
 0x338   : > { %v6602_v45 = vpop.f32.mrb[183].mxu0 }
 0x339   : > { %v9658_v6 = vadd.f32 %v6602_v45, %v6601_v28  ;;  %v4990_v28 = vld [vmem:[#allocation2 + $0x2e8] sm:$0xff]  ;;  %v4997_v45 = vld [vmem:[#allocation2 + $0x320] sm:$0xff] }
 0x33a   : > { %5343 = vmatmul.mubr.bf16.gmra.mrb[160].mxu1 %v5029_v40 }
 0x33b   : > { %5350 = vmatprep.mubr.bf16.mxu1 %v9588_v20  ;;  %v4969_v20 = vld [vmem:[#allocation2 + $0x240] sm:$0xff] }
 0x33c   : > { %v5035_v59 = vpack.c.bf16 %v9602_v24, %v4969_v20  ;;  %v7790_v20 = vld [vmem:[#allocation2 + $0x8] sm:$0xff] }
 0x33d   : > { %v6604_v13 = vpop.f32.mrb[184].mxu0 }
 0x33e   : > { %v6605_v55 = vpop.f32.mrb[185].mxu0 }
 0x33f   : > { %v9661_v53 = vadd.f32 %v6605_v55, %v6604_v13  ;;  %v6607_v19 = vpop.f32.mrb[186].mxu0  ;;  %v5044_v55 = vpack.c.bf16 %v4990_v28, %v9463_v61  ;;  %v4938_v28 = vld [vmem:[#allocation2 + $0x148] sm:$0xff] }
 0x340   : > { %v6608_v50 = vpop.f32.mrb[187].mxu0 }
 0x341   : > { %v9664_v23 = vadd.f32 %v6608_v50, %v6607_v19  ;;  %v4994_v19 = vld [vmem:[#allocation2 + $0x308] sm:$0xff] }
 0x342   : > { %5351 = vmatmul.mubr.bf16.gmra.mrb[164].mxu1 %v5032_v48  ;;  %v5048_v50 = vpack.c.bf16 %v4997_v45, %v4994_v19  ;;  %v4944_v19 = vld [vmem:[#allocation2 + $0x178] sm:$0xff] }
 0x343   : > { %5358 = vmatprep.mubr.bf16.mxu1 %v9597_v21  ;;  %v4975_v21 = vld [vmem:[#allocation2 + $0x270] sm:$0xff] }
 0x344   : > { %v5038_v25 = vpack.c.bf16 %v9611_v63, %v4975_v21 }
 0x345   : > { %v6610_v2 = vpop.f32.mrb[188].mxu0 }
 0x346   : > { %v6611_v14 = vpop.f32.mrb[189].mxu0 }
 0x347   : > { %v9667_v7 = vadd.f32 %v6611_v14, %v6610_v2  ;;  %v6613_v39 = vpop.f32.mrb[190].mxu0  ;;  %v4996_v2 = vld [vmem:[#allocation2 + $0x318] sm:$0xff] }
 0x348   : > { %v6614_v46 = vpop.f32.mrb[191].mxu0 }
 0x349   : > { %v9670_v5 = vadd.f32 %v6614_v46, %v6613_v39  ;;  %v9691_v46 = vpack.c.bf16 %v7790_v20, %v7790_v20 }
 0x34a   : > { %5359 = vmatmul.mubr.bf16.gmra.mrb[168].mxu1 %v5035_v59 }
 0x34b   : > { %5366 = vmatprep.mubr.bf16.mxu1 %v9606_v8 }
 0x34d   : > { %v6616_v15 = vpop.f32.mrb[192].mxu0 }
 0x34e   : > { %v6617_v0 = vpop.f32.mrb[193].mxu0 }
 0x34f   : > { %v9673_v9 = vadd.f32 %v6617_v0, %v6616_v15  ;;  %v6619_v41 = vpop.f32.mrb[194].mxu0  ;;  %v5047_v15 = vpack.c.bf16 %v4996_v2, %v9645_v62 }
 0x350   : > { %v6620_v51 = vpop.f32.mrb[195].mxu0 }
 0x351   : > { %v9676_v52 = vadd.f32 %v6620_v51, %v6619_v41 }
 0x352   : > { %5367 = vmatmul.mubr.bf16.gmra.mrb[172].mxu1 %v5038_v25 }
 0x353   : > { %5374 = vmatprep.mubr.bf16.mxu1 %v9619_v57 }
 0x355   : > { %v6622_v24 = vpop.f32.mrb[196].mxu0 }
 0x356   : > { %v6623_v17 = vpop.f32.mrb[197].mxu0 }
 0x357   : > { %v9679_v3 = vadd.f32 %v6623_v17, %v6622_v24  ;;  %v6625_v8 = vpop.f32.mrb[198].mxu0 }
 0x358   : > { %v6626_v44 = vpop.f32.mrb[199].mxu0 }
 0x359   : > { %v9681_v38 = vadd.f32 %v6626_v44, %v6625_v8 }
 0x35a   : > { %5375 = vmatmul.mubr.bf16.gmra.mrb[176].mxu1 %v9627_v12 }
 0x35b   : > { %5382 = vmatprep.mubr.bf16.mxu1 %v5045_v4 }
 0x35d   : > { %v6628_v63 = vpop.f32.mrb[200].mxu0 }
 0x35e   : > { %v6629_v31 = vpop.f32.mrb[201].mxu0 }
 0x35f   : > { %v9684_v40 = vadd.f32 %v6629_v31, %v6628_v63  ;;  %v6631_v57 = vpop.f32.mrb[202].mxu0 }
 0x360   : > { %v6632_v13 = vpop.f32.mrb[203].mxu0 }
 0x361   : > { %v9687_v16 = vadd.f32 %v6632_v13, %v6631_v57  ;;  %v5019_v13 = vpack.c.bf16 %v4938_v28, %v9509_v54  ;;  %v4971_v28 = vld [vmem:[#allocation2 + $0x250] sm:$0xff] }
 0x362   : > { %5383 = vmatmul.mubr.bf16.gmra.mrb[180].mxu1 %v5044_v55 }
 0x363   : > { %5390 = vmatprep.mubr.bf16.mxu1 %v5048_v50 }
 0x365   : > { %v6634_v48 = vpop.f32.mrb[204].mxu0 }
 0x366   : > { %v6635_v12 = vpop.f32.mrb[205].mxu0 }
 0x367   : > { %v9689_v14 = vadd.f32 %v6635_v12, %v6634_v48  ;;  %v6637_v39 = vpop.f32.mrb[206].mxu0  ;;  %v5022_v12 = vpack.c.bf16 %v4944_v19, %v9511_v36 }
 0x368   : > { %v6638_v59 = vpop.f32.mrb[207].mxu0 }
 0x369   : > { %v9694_v0 = vadd.f32 %v6638_v59, %v6637_v39  ;;  %v4956_v59 = vld [vmem:[#allocation2 + $0x1d8] sm:$0xff] }
 0x36a   : > { %5391 = vmatmul.mubr.bf16.gmra.mrb[184].mxu1 %v5047_v15  ;;  %v4962_v15 = vld [vmem:[#allocation2 + $0x208] sm:$0xff] }
 0x36b   : > { %5398 = vmatprep.mubr.bf16.mxu1 %v9691_v46  ;;  %v5031_v36 = vpack.c.bf16 %v4962_v15, %v9537_v1 }
 0x36d   : > { %v6640_v61 = vpop.f32.mrb[208].mxu0 }
 0x36e   : > { %v6641_v41 = vpop.f32.mrb[209].mxu0 }
 0x36f   : > { %v9697_v21 = vadd.f32 %v6641_v41, %v6640_v61  ;;  %v6643_v51 = vpop.f32.mrb[210].mxu0 }
 0x370   : > { %v6644_v25 = vpop.f32.mrb[211].mxu0 }
 0x371   : > { %v9699_v24 = vadd.f32 %v6644_v25, %v6643_v51  ;;  %v5028_v25 = vpack.c.bf16 %v4956_v59, %v9525_v35 }
 0x372   : > { %5399 = vmatmul.mubr.bf16.gmra.mrb[188].mxu1 %v9691_v46 }
 0x373   : > { %7216 = vmatprep.mubr.bf16.mxu1 %v9488_v37 }
 0x375   : > { %v6646_v17 = vpop.f32.mrb[212].mxu0 }
 0x376   : > { %v6647_v33 = vpop.f32.mrb[213].mxu0 }
 0x377   : > { %v9703_v62 = vadd.f32 %v6647_v33, %v6646_v17  ;;  %v6649_v8 = vpop.f32.mrb[214].mxu0 }
 0x378   : > { %v6650_v44 = vpop.f32.mrb[215].mxu0 }
 0x379   : > { %v9705_v32 = vadd.f32 %v6650_v44, %v6649_v8  ;;  %v4965_v44 = vld [vmem:[#allocation2 + $0x220] sm:$0xff] }
 0x37a   : > { %7217 = vmatmul.mubr.bf16.vlgmr.msra.gmra.mrb[96].mxu1 %v9492_v34  ;;  %v4950_v34 = vld [vmem:[#allocation2 + $0x1a8] sm:$0xff] }
 0x37b   : > { %7220 = vmatprep.mubr.bf16.mxu1 %v9499_v42  ;;  %v5025_v20 = vpack.c.bf16 %v4950_v34, %v9523_v43  ;;  %v4977_v34 = vld [vmem:[#allocation2 + $0x280] sm:$0xff] }
 0x37d   : > { %v6652_v4 = vpop.f32.mrb[216].mxu0 }
 0x37e   : > { %v6653_v63 = vpop.f32.mrb[217].mxu0 }
 0x37f   : > { %v9709_v31 = vadd.f32 %v6653_v63, %v6652_v4  ;;  %v6655_v45 = vpop.f32.mrb[218].mxu0  ;;  %v4968_v4 = vld [vmem:[#allocation2 + $0x238] sm:$0xff] }
 0x380   : > { %v6656_v57 = vpop.f32.mrb[219].mxu0 }
 0x381   : > { %v9711_v37 = vadd.f32 %v6656_v57, %v6655_v45  ;;  %v4974_v45 = vld [vmem:[#allocation2 + $0x268] sm:$0xff] }
 0x382   : > { %7221 = vmatmul.mubr.bf16.gmra.mrb[100].mxu1 %v9503_v58  ;;  %v5037_v1 = vpack.c.bf16 %v4974_v45, %v4971_v28 }
 0x383   : > { %7224 = vmatprep.mubr.bf16.mxu1 %v5019_v13 }
 0x385   : > { %v6658_v55 = vpop.f32.mrb[220].mxu0 }
 0x386   : > { %v6659_v50 = vpop.f32.mrb[221].mxu0 }
 0x387   : > { %v9715_v48 = vadd.f32 %v6659_v50, %v6658_v55  ;;  %v6661_v42 = vpop.f32.mrb[222].mxu0  ;;  %v5034_v55 = vpack.c.bf16 %v4968_v4, %v4965_v44 }
 0x388   : > { %v6662_v2 = vpop.f32.mrb[223].mxu0 }
 0x389   : > { %v9718_v39 = vadd.f32 %v6662_v2, %v6661_v42  ;;  %v4980_v42 = vld [vmem:[#allocation2 + $0x298] sm:$0xff] }
 0x38a   : > { %7225 = vmatmul.mubr.bf16.gmra.mrb[104].mxu1 %v5022_v12  ;;  %v4983_v12 = vld [vmem:[#allocation2 + $0x2b0] sm:$0xff]  ;;  %v5040_v15 = vpack.c.bf16 %v4980_v42, %v4977_v34 }
 0x38b   : > { %7228 = vmatprep.mubr.bf16.mxu1 %v5025_v20  ;;  %v4986_v20 = vld [vmem:[#allocation2 + $0x2c8] sm:$0xff] }
 0x38d   : > { %v6704_v54 = vpop.f32.mrb[224].mxu0 }
 0x38e   : > { %v6705_v58 = vpop.f32.mrb[225].mxu0 }
 0x38f   : > { %v6706_v61 = vadd.f32 %v6705_v58, %v6704_v54  ;;  %v6707_v41 = vpop.f32.mrb[226].mxu0 }
 0x390   : > { %v6708_v51 = vpop.f32.mrb[227].mxu0 }
 0x391   : > { %v9723_v17 = vadd.f32 %v6706_v61, %v9442_v11  ;;  %v6709_v33 = vadd.f32 %v6708_v51, %v6707_v41  ;;  %v5043_v41 = vpack.c.bf16 %v4986_v20, %v4983_v12 }
 0x392   : > { %7229 = vmatmul.mubr.bf16.gmra.mrb[108].mxu1 %v5028_v25  ;;  %v4989_v25 = vld [vmem:[#allocation2 + $0x2e0] sm:$0xff] }
 0x393   : > { %v9727_v43 = vadd.f32 %v6709_v33, %v9448_v10  ;;  %7232 = vmatprep.mubr.bf16.mxu1 %v5031_v36  ;;  %v4992_v33 = vld [vmem:[#allocation2 + $0x2f8] sm:$0xff] }
 0x394   : > { %v5046_v28 = vpack.c.bf16 %v4992_v33, %v4989_v25 }
 0x395   : > { %v6710_v8 = vpop.f32.mrb[228].mxu0 }
 0x396   : > { %v6711_v63 = vpop.f32.mrb[229].mxu0 }
 0x397   : > { %v6712_v57 = vadd.f32 %v6711_v63, %v6710_v8  ;;  %v6713_v13 = vpop.f32.mrb[230].mxu0  ;;  %v4995_v8 = vld [vmem:[#allocation2 + $0x310] sm:$0xff] }
 0x398   : > { %v6714_v35 = vpop.f32.mrb[231].mxu0 }
 0x399   : > { %v9730_v11 = vadd.f32 %v6712_v57, %v9613_v56  ;;  %v6715_v19 = vadd.f32 %v6714_v35, %v6713_v13  ;;  %v5049_v57 = vpack.c.bf16 %v9564_v47, %v4995_v8 }
 0x39a   : > { %7233 = vmatmul.mubr.bf16.gmra.mrb[112].mxu1 %v5034_v55 }
 0x39b   : > { %v9733_v10 = vadd.f32 %v6715_v19, %v9617_v18  ;;  %7236 = vmatprep.mubr.bf16.mxu1 %v5037_v1 }
 0x39d   : > { %v6716_v50 = vpop.f32.mrb[232].mxu0 }
 0x39e   : > { %v6717_v2 = vpop.f32.mrb[233].mxu0 }
 0x39f   : > { %v6718_v54 = vadd.f32 %v6717_v2, %v6716_v50  ;;  %v6719_v59 = vpop.f32.mrb[234].mxu0 }
 0x3a0   : > { %v6720_v58 = vpop.f32.mrb[235].mxu0 }
 0x3a1   : > { %v9736_v56 = vadd.f32 %v6718_v54, %v9624_v30  ;;  %v6721_v61 = vadd.f32 %v6720_v58, %v6719_v59 }
 0x3a2   : > { %7237 = vmatmul.mubr.bf16.gmra.mrb[116].mxu1 %v5040_v15 }
 0x3a3   : > { %v9739_v18 = vadd.f32 %v6721_v61, %v9629_v49  ;;  %7240 = vmatprep.mubr.bf16.mxu1 %v5043_v41 }
 0x3a5   : > { %v6722_v51 = vpop.f32.mrb[236].mxu0 }
 0x3a6   : > { %v6723_v36 = vpop.f32.mrb[237].mxu0 }
 0x3a7   : > { %v6724_v44 = vadd.f32 %v6723_v36, %v6722_v51  ;;  %v6725_v4 = vpop.f32.mrb[238].mxu0 }
 0x3a8   : > { %v6726_v63 = vpop.f32.mrb[239].mxu0 }
 0x3a9   : > { %v9742_v45 = vadd.f32 %v6724_v44, %v9635_v22  ;;  %v6727_v30 = vadd.f32 %v6726_v63, %v6725_v4 }
 0x3aa   : > { %7241 = vmatmul.mubr.bf16.gmra.mrb[120].mxu1 %v5046_v28 }
 0x3ab   : > { %v9746_v49 = vadd.f32 %v6727_v30, %v9637_v26  ;;  %7244 = vmatprep.mubr.bf16.mxu1 %v5049_v57 }
 0x3ad   : > { %v6728_v13 = vpop.f32.mrb[240].mxu0 }
 0x3ae   : > { %v6729_v35 = vpop.f32.mrb[241].mxu0 }
 0x3af   : > { %v6730_v55 = vadd.f32 %v6729_v35, %v6728_v13  ;;  %v6731_v19 = vpop.f32.mrb[242].mxu0 }
 0x3b0   : > { %v6732_v1 = vpop.f32.mrb[243].mxu0 }
 0x3b1   : > { %v9749_v50 = vadd.f32 %v6730_v55, %v9647_v60  ;;  %v6733_v34 = vadd.f32 %v6732_v1, %v6731_v19 }
 0x3b2   : > { %7245 = vmatmul.mubr.bf16.gmra.mrb[124].mxu1 %v9691_v46 }
 0x3b3   : > { %v9753_v22 = vadd.f32 %v6733_v34, %v9652_v27 }
 0x3b5   : > { %v6734_v47 = vpop.f32.mrb[244].mxu0 }
 0x3b6   : > { %v6735_v42 = vpop.f32.mrb[245].mxu0 }
 0x3b7   : > { %v6736_v2 = vadd.f32 %v6735_v42, %v6734_v47  ;;  %v6737_v26 = vpop.f32.mrb[246].mxu0 }
 0x3b8   : > { %v6738_v12 = vpop.f32.mrb[247].mxu0 }
 0x3b9   : > { %v9756_v20 = vadd.f32 %v6736_v2, %v9655_v29  ;;  %v6739_v54 = vadd.f32 %v6738_v12, %v6737_v26 }
 0x3bb   : > { %v9759_v59 = vadd.f32 %v6739_v54, %v9658_v6 }
 0x3bd   : > { %v6740_v60 = vpop.f32.mrb[248].mxu0 }
 0x3be   : > { %v6741_v58 = vpop.f32.mrb[249].mxu0 }
 0x3bf   : > { %v6742_v15 = vadd.f32 %v6741_v58, %v6740_v60  ;;  %v6743_v61 = vpop.f32.mrb[250].mxu0 }
 0x3c0   : > { %v6744_v46 = vpop.f32.mrb[251].mxu0 }
 0x3c1   : > { %v9762_v27 = vadd.f32 %v6742_v15, %v9661_v53  ;;  %v6745_v41 = vadd.f32 %v6744_v46, %v6743_v61 }
 0x3c3   : > { %v9765_v51 = vadd.f32 %v6745_v41, %v9664_v23 }
 0x3c5   : > { %v6746_v25 = vpop.f32.mrb[252].mxu0 }
 0x3c6   : > { %v6747_v33 = vpop.f32.mrb[253].mxu0 }
 0x3c7   : > { %v6748_v29 = vadd.f32 %v6747_v33, %v6746_v25  ;;  %v6749_v36 = vpop.f32.mrb[254].mxu0 }
 0x3c8   : > { %v6750_v8 = vpop.f32.mrb[255].mxu0 }
 0x3c9   : > { %v9768_v6 = vadd.f32 %v6748_v29, %v9667_v7  ;;  %v6751_v44 = vadd.f32 %v6750_v8, %v6749_v36 }
 0x3cb   : > { %v9771_v4 = vadd.f32 %v6751_v44, %v9670_v5 }
 0x3cd   : > { %v6752_v63 = vpop.f32.mrb[0].mxu0  ;;  %v6840_v28 = vpop.f32.mrb[128].mxu1 }
 0x3ce   : > { %v6753_v53 = vpop.f32.mrb[1].mxu0  ;;  %v6841_v30 = vpop.f32.mrb[129].mxu1 }
 0x3cf   : > { %v6754_v57 = vadd.f32 %v6753_v53, %v6752_v63  ;;  %v6842_v13 = vadd.f32 %v6841_v30, %v6840_v28  ;;  %v6755_v23 = vpop.f32.mrb[2].mxu0  ;;  %v6843_v35 = vpop.f32.mrb[130].mxu1 }
 0x3d0   : > { %v6756_v55 = vpop.f32.mrb[3].mxu0  ;;  %v6844_v19 = vpop.f32.mrb[131].mxu1 }
 0x3d1   : > { %v9774_v1 = vadd.f32 %v6754_v57, %v9673_v9  ;;  %v6757_v34 = vadd.f32 %v6756_v55, %v6755_v23  ;;  %v6845_v7 = vadd.f32 %v6844_v19, %v6843_v35  ;;  %v9777_v47 = vadd.f32 %v9723_v17, %v6842_v13 }
 0x3d3   : > { %v9780_v5 = vadd.f32 %v6757_v34, %v9676_v52  ;;  %v9783_v42 = vadd.f32 %v9727_v43, %v6845_v7 }
 0x3d5   : > { %v6758_v2 = vpop.f32.mrb[4].mxu0  ;;  %v6846_v26 = vpop.f32.mrb[132].mxu1 }
 0x3d6   : > { %v6759_v12 = vpop.f32.mrb[5].mxu0  ;;  %v6847_v54 = vpop.f32.mrb[133].mxu1 }
 0x3d7   : > { %v6760_v60 = vadd.f32 %v6759_v12, %v6758_v2  ;;  %v6848_v58 = vadd.f32 %v6847_v54, %v6846_v26  ;;  %v6761_v15 = vpop.f32.mrb[6].mxu0  ;;  %v6849_v9 = vpop.f32.mrb[134].mxu1 }
 0x3d8   : > { %v6762_v61 = vpop.f32.mrb[7].mxu0  ;;  %v6850_v46 = vpop.f32.mrb[135].mxu1 }
 0x3d9   : > { %v9786_v41 = vadd.f32 %v6760_v60, %v9679_v3  ;;  %v6763_v17 = vadd.f32 %v6762_v61, %v6761_v15  ;;  %v6851_v25 = vadd.f32 %v6850_v46, %v6849_v9  ;;  %v9789_v52 = vadd.f32 %v9730_v11, %v6848_v58 }
 0x3db   : > { %v9792_v43 = vadd.f32 %v6763_v17, %v9681_v38  ;;  %v9795_v33 = vadd.f32 %v9733_v10, %v6851_v25 }
 0x3dd   : > { %v6764_v29 = vpop.f32.mrb[8].mxu0  ;;  %v6852_v36 = vpop.f32.mrb[136].mxu1 }
 0x3de   : > { %v6765_v8 = vpop.f32.mrb[9].mxu0  ;;  %v6853_v44 = vpop.f32.mrb[137].mxu1 }
 0x3df   : > { %v6766_v63 = vadd.f32 %v6765_v8, %v6764_v29  ;;  %v6854_v28 = vadd.f32 %v6853_v44, %v6852_v36  ;;  %v6767_v53 = vpop.f32.mrb[10].mxu0  ;;  %v6855_v3 = vpop.f32.mrb[138].mxu1 }
 0x3e0   : > { %v6768_v30 = vpop.f32.mrb[11].mxu0  ;;  %v6856_v57 = vpop.f32.mrb[139].mxu1 }
 0x3e1   : > { %v9798_v13 = vadd.f32 %v6766_v63, %v9684_v40  ;;  %v6769_v11 = vadd.f32 %v6768_v30, %v6767_v53  ;;  %v6857_v23 = vadd.f32 %v6856_v57, %v6855_v3  ;;  %v9801_v38 = vadd.f32 %v9736_v56, %v6854_v28 }
 0x3e3   : > { %v9804_v10 = vadd.f32 %v6769_v11, %v9687_v16  ;;  %v9807_v35 = vadd.f32 %v9739_v18, %v6857_v23 }
 0x3e5   : > { %v6770_v55 = vpop.f32.mrb[12].mxu0  ;;  %v6858_v19 = vpop.f32.mrb[140].mxu1 }
 0x3e6   : > { %v6771_v34 = vpop.f32.mrb[13].mxu0  ;;  %v6859_v7 = vpop.f32.mrb[141].mxu1 }
 0x3e7   : > { %v6772_v2 = vadd.f32 %v6771_v34, %v6770_v55  ;;  %v6860_v26 = vadd.f32 %v6859_v7, %v6858_v19  ;;  %v6773_v12 = vpop.f32.mrb[14].mxu0  ;;  %v6861_v40 = vpop.f32.mrb[142].mxu1 }
 0x3e8   : > { %v6774_v54 = vpop.f32.mrb[15].mxu0  ;;  %v6862_v60 = vpop.f32.mrb[143].mxu1 }
 0x3e9   : > { %v9810_v58 = vadd.f32 %v6772_v2, %v9689_v14  ;;  %v6775_v56 = vadd.f32 %v6774_v54, %v6773_v12  ;;  %v6863_v15 = vadd.f32 %v6862_v60, %v6861_v40  ;;  %v9813_v16 = vadd.f32 %v9742_v45, %v6860_v26 }
 0x3eb   : > { %v9816_v18 = vadd.f32 %v6775_v56, %v9694_v0  ;;  %v9819_v9 = vadd.f32 %v9746_v49, %v6863_v15 }
 0x3ed   : > { %v6776_v61 = vpop.f32.mrb[16].mxu0  ;;  %v6864_v46 = vpop.f32.mrb[144].mxu1 }
 0x3ee   : > { %v6777_v17 = vpop.f32.mrb[17].mxu0  ;;  %v6865_v25 = vpop.f32.mrb[145].mxu1 }
 0x3ef   : > { %v6778_v29 = vadd.f32 %v6777_v17, %v6776_v61  ;;  %v6866_v36 = vadd.f32 %v6865_v25, %v6864_v46  ;;  %v6779_v8 = vpop.f32.mrb[18].mxu0  ;;  %v6867_v14 = vpop.f32.mrb[146].mxu1 }
 0x3f0   : > { %v6780_v44 = vpop.f32.mrb[19].mxu0  ;;  %v6868_v63 = vpop.f32.mrb[147].mxu1 }
 0x3f1   : > { %v9822_v28 = vadd.f32 %v6778_v29, %v9697_v21  ;;  %v6781_v45 = vadd.f32 %v6780_v44, %v6779_v8  ;;  %v6869_v53 = vadd.f32 %v6868_v63, %v6867_v14  ;;  %v9825_v0 = vadd.f32 %v9749_v50, %v6866_v36 }
 0x3f3   : > { %v9828_v49 = vadd.f32 %v6781_v45, %v9699_v24  ;;  %v9831_v3 = vadd.f32 %v9753_v22, %v6869_v53 }
 0x3f5   : > { %v6782_v30 = vpop.f32.mrb[20].mxu0  ;;  %v6870_v57 = vpop.f32.mrb[148].mxu1 }
 0x3f6   : > { %v6783_v11 = vpop.f32.mrb[21].mxu0  ;;  %v6871_v23 = vpop.f32.mrb[149].mxu1 }
 0x3f7   : > { %v6784_v55 = vadd.f32 %v6783_v11, %v6782_v30  ;;  %v6872_v19 = vadd.f32 %v6871_v23, %v6870_v57  ;;  %v6785_v34 = vpop.f32.mrb[22].mxu0  ;;  %v6873_v21 = vpop.f32.mrb[150].mxu1 }
 0x3f8   : > { %v6786_v7 = vpop.f32.mrb[23].mxu0  ;;  %v6874_v2 = vpop.f32.mrb[151].mxu1 }
 0x3f9   : > { %v9834_v26 = vadd.f32 %v6784_v55, %v9703_v62  ;;  %v6787_v50 = vadd.f32 %v6786_v7, %v6785_v34  ;;  %v6875_v12 = vadd.f32 %v6874_v2, %v6873_v21  ;;  %v9837_v24 = vadd.f32 %v9756_v20, %v6872_v19 }
 0x3fb   : > { %v9840_v22 = vadd.f32 %v6787_v50, %v9705_v32  ;;  %v9843_v40 = vadd.f32 %v9759_v59, %v6875_v12 }
 0x3fd   : > { %v6788_v54 = vpop.f32.mrb[24].mxu0  ;;  %v6876_v60 = vpop.f32.mrb[152].mxu1 }
 0x3fe   : > { %v6789_v56 = vpop.f32.mrb[25].mxu0  ;;  %v6877_v15 = vpop.f32.mrb[153].mxu1 }
 0x3ff   : > { %v6790_v61 = vadd.f32 %v6789_v56, %v6788_v54  ;;  %v6878_v46 = vadd.f32 %v6877_v15, %v6876_v60  ;;  %v6791_v17 = vpop.f32.mrb[26].mxu0  ;;  %v6879_v62 = vpop.f32.mrb[154].mxu1 }
 0x400   : > { %v6792_v25 = vpop.f32.mrb[27].mxu0  ;;  %v6880_v29 = vpop.f32.mrb[155].mxu1 }
 0x401   : > { %v9846_v36 = vadd.f32 %v6790_v61, %v9709_v31  ;;  %v6793_v20 = vadd.f32 %v6792_v25, %v6791_v17  ;;  %v6881_v8 = vadd.f32 %v6880_v29, %v6879_v62  ;;  %v9849_v32 = vadd.f32 %v9762_v27, %v6878_v46 }
 0x403   : > { %v9852_v59 = vadd.f32 %v6793_v20, %v9711_v37  ;;  %v9855_v14 = vadd.f32 %v9765_v51, %v6881_v8 }
 0x405   : > { %v6794_v44 = vpop.f32.mrb[28].mxu0  ;;  %v6882_v63 = vpop.f32.mrb[156].mxu1 }
 0x406   : > { %v6795_v45 = vpop.f32.mrb[29].mxu0  ;;  %v6883_v53 = vpop.f32.mrb[157].mxu1 }
 0x407   : > { %v6796_v30 = vadd.f32 %v6795_v45, %v6794_v44  ;;  %v6884_v57 = vadd.f32 %v6883_v53, %v6882_v63  ;;  %v6797_v11 = vpop.f32.mrb[30].mxu0  ;;  %v6885_v31 = vpop.f32.mrb[158].mxu1 }
 0x408   : > { %v6798_v23 = vpop.f32.mrb[31].mxu0  ;;  %v6886_v55 = vpop.f32.mrb[159].mxu1 }
 0x409   : > { %v9858_v19 = vadd.f32 %v6796_v30, %v9715_v48  ;;  %v6799_v27 = vadd.f32 %v6798_v23, %v6797_v11  ;;  %v6887_v34 = vadd.f32 %v6886_v55, %v6885_v31  ;;  %v9861_v37 = vadd.f32 %v9768_v6, %v6884_v57 }
 0x40b   : > { %v9864_v51 = vadd.f32 %v6799_v27, %v9718_v39  ;;  %v9867_v21 = vadd.f32 %v9771_v4, %v6887_v34 }
 0x40d   : > { %v6888_v7 = vpop.f32.mrb[160].mxu1 }
 0x40e   : > { %v6889_v2 = vpop.f32.mrb[161].mxu1 }
 0x40f   : > { %v6890_v50 = vadd.f32 %v6889_v2, %v6888_v7  ;;  %v6891_v12 = vpop.f32.mrb[162].mxu1 }
 0x410   : > { %v6892_v54 = vpop.f32.mrb[163].mxu1 }
 0x411   : > { %v6893_v60 = vadd.f32 %v6892_v54, %v6891_v12  ;;  %v9870_v48 = vadd.f32 %v9774_v1, %v6890_v50 }
 0x413   : > { %v9873_v56 = vadd.f32 %v9780_v5, %v6893_v60 }
 0x415   : > { %v6894_v6 = vpop.f32.mrb[164].mxu1 }
 0x416   : > { %v6895_v15 = vpop.f32.mrb[165].mxu1 }
 0x417   : > { %v6896_v61 = vadd.f32 %v6895_v15, %v6894_v6  ;;  %v6897_v39 = vpop.f32.mrb[166].mxu1 }
 0x418   : > { %v6898_v46 = vpop.f32.mrb[167].mxu1 }
 0x419   : > { %v6899_v17 = vadd.f32 %v6898_v46, %v6897_v39  ;;  %v9876_v4 = vadd.f32 %v9786_v41, %v6896_v61 }
 0x41b   : > { %v9879_v62 = vadd.f32 %v9792_v43, %v6899_v17 }
 0x41d   : > { %v6900_v25 = vpop.f32.mrb[168].mxu1 }
 0x41e   : > { %v6901_v29 = vpop.f32.mrb[169].mxu1 }
 0x41f   : > { %v6902_v20 = vadd.f32 %v6901_v29, %v6900_v25  ;;  %v6903_v1 = vpop.f32.mrb[170].mxu1 }
 0x420   : > { %v6904_v8 = vpop.f32.mrb[171].mxu1 }
 0x421   : > { %v6905_v44 = vadd.f32 %v6904_v8, %v6903_v1  ;;  %v9882_v5 = vadd.f32 %v9798_v13, %v6902_v20 }
 0x423   : > { %v9885_v63 = vadd.f32 %v9804_v10, %v6905_v44 }
 0x425   : > { %v6906_v45 = vpop.f32.mrb[172].mxu1 }
 0x426   : > { %v6907_v53 = vpop.f32.mrb[173].mxu1 }
 0x427   : > { %v6908_v30 = vadd.f32 %v6907_v53, %v6906_v45  ;;  %v6909_v41 = vpop.f32.mrb[174].mxu1 }
 0x428   : > { %v6910_v57 = vpop.f32.mrb[175].mxu1 }
 0x429   : > { %v6911_v11 = vadd.f32 %v6910_v57, %v6909_v41  ;;  %v9888_v43 = vadd.f32 %v9810_v58, %v6908_v30  ;;  %v9926_v57 = vld [vmem:[%s10149_s7] ss:$0 sm:$0xff] }
 0x42b   : > { %v9891_v31 = vadd.f32 %v9816_v18, %v6911_v11 }
 0x42d   : > { %v6912_v23 = vpop.f32.mrb[176].mxu1 }
 0x42e   : > { %v6913_v55 = vpop.f32.mrb[177].mxu1 }
 0x42f   : > { %v6914_v27 = vadd.f32 %v6913_v55, %v6912_v23  ;;  %v6915_v13 = vpop.f32.mrb[178].mxu1 }
 0x430   : > { %v6916_v34 = vpop.f32.mrb[179].mxu1 }
 0x431   : > { %v6917_v7 = vadd.f32 %v6916_v34, %v6915_v13  ;;  %v9894_v10 = vadd.f32 %v9822_v28, %v6914_v27  ;;  %v5776_v27 = vld [vmem:[%s8187_s26 + $0x10] sm:$0xff] }
 0x433   : > { %v9897_v2 = vadd.f32 %v9828_v49, %v6917_v7  ;;  %v5774_v7 = vld [vmem:[%s8187_s26] sm:$0xff] }
 0x435   : > { %v6918_v50 = vpop.f32.mrb[180].mxu1 }
 0x436   : > { %v6919_v12 = vpop.f32.mrb[181].mxu1 }
 0x437   : > { %v6920_v54 = vadd.f32 %v6919_v12, %v6918_v50  ;;  %v6921_v58 = vpop.f32.mrb[182].mxu1  ;;  %v5777_v12 = vld [vmem:[%s8187_s26 + $0x18] sm:$0xff] }
 0x438   : > { %v6922_v60 = vpop.f32.mrb[183].mxu1 }
 0x439   : > { %v6923_v6 = vadd.f32 %v6922_v60, %v6921_v58  ;;  %v9900_v18 = vadd.f32 %v9834_v26, %v6920_v54  ;;  %v5775_v60 = vld [vmem:[%s8187_s26 + $0x8] sm:$0xff] }
 0x43b   : > { %v9903_v15 = vadd.f32 %v9840_v22, %v6923_v6 }
 0x43d   : > { %v6924_v61 = vpop.f32.mrb[184].mxu1 }
 0x43e   : > { %v6925_v39 = vpop.f32.mrb[185].mxu1 }
 0x43f   : > { %v6926_v46 = vadd.f32 %v6925_v39, %v6924_v61  ;;  %v6927_v28 = vpop.f32.mrb[186].mxu1 }
 0x440   : > { %v6928_v17 = vpop.f32.mrb[187].mxu1 }
 0x441   : > { %v6929_v25 = vadd.f32 %v6928_v17, %v6927_v28  ;;  %v9906_v49 = vadd.f32 %v9846_v36, %v6926_v46  ;;  %v9920_v36 = vld [vmem:[%s10148_s6] ss:$0 sm:$0xff] }
 0x443   : > { %v9909_v29 = vadd.f32 %v9852_v59, %v6929_v25 }
 0x445   : > { %v6930_v20 = vpop.f32.mrb[188].mxu1 }
 0x446   : > { %v6931_v1 = vpop.f32.mrb[189].mxu1 }
 0x447   : > { %v6932_v8 = vadd.f32 %v6931_v1, %v6930_v20  ;;  %v6933_v26 = vpop.f32.mrb[190].mxu1 }
 0x448   : > { %v6934_v44 = vpop.f32.mrb[191].mxu1 }
 0x449   : > { %v6935_v22 = vadd.f32 %v6934_v44, %v6933_v26  ;;  %v9912_v45 = vadd.f32 %v9858_v19, %v6932_v8  ;;  %v5780_v44 = vld [vmem:[%s8187_s26 + $0x30] sm:$0xff] }
 0x44b   : > { %v9915_v53 = vadd.f32 %v9864_v51, %v6935_v22 }
 0x44d   : > { %v7218_v30 = vpop.f32.mrb[96].mxu1 }
 0x44e   : > { %v7378_v59 = vadd.f32 %v9789_v52, %v7218_v30  ;;  %v5441_v41 = vpop.f32.mrb[97].mxu1 }
 0x44f   : > { %v7381_v19 = vadd.f32 %v9777_v47, %v5441_v41  ;;  %v7219_v51 = vpop.f32.mrb[98].mxu1 }
 0x450   : > { %v5705_v11 = vmul.f32 %v7378_v59, %v9920_v36  ;;  %v7384_v23 = vadd.f32 %v9795_v33, %v7219_v51  ;;  %v5444_v55 = vpop.f32.mrb[99].mxu1  ;;  %v5778_v59 = vld [vmem:[%s8187_s26 + $0x20] sm:$0xff] }
 0x451   : > { %v5703_v13 = vmul.f32 %v7381_v19, %v9920_v36  ;;  %v7387_v52 = vadd.f32 %v9783_v42, %v5444_v55  ;;  %v5781_v19 = vld [vmem:[%s8187_s26 + $0x38] sm:$0xff] }
 0x452   : > { %v5744_v34 = vadd.f32 %v9926_v57, %v5705_v11  ;;  %v5706_v50 = vmul.f32 %v7384_v23, %v9920_v36  ;;  %v5779_v23 = vld [vmem:[%s8187_s26 + $0x28] sm:$0xff] }
 0x453   : > { %v5742_v47 = vadd.f32 %v9926_v57, %v5703_v13  ;;  %v5704_v54 = vmul.f32 %v7387_v52, %v9920_v36 }
 0x454   : > { %v5808_v58 = vadd.f32 %v5776_v27, %v5744_v34  ;;  %v5745_v33 = vadd.f32 %v9926_v57, %v5706_v50 }
 0x455   : > { %v5806_v6 = vadd.f32 %v5774_v7, %v5742_v47  ;;  %v5743_v61 = vadd.f32 %v9926_v57, %v5704_v54  ;;  %v7222_v39 = vpop.f32.mrb[100].mxu1 }
 0x456   : > { %5840 = vst [vmem:[%s9945_s25 + $0x10] sm:$0xff] %v5808_v58  ;;  %v5809_v42 = vadd.f32 %v5777_v12, %v5745_v33  ;;  %v7390_v46 = vadd.f32 %v9813_v16, %v7222_v39  ;;  %v5457_v28 = vpop.f32.mrb[101].mxu1  ;;  %v5784_v33 = vld [vmem:[%s8187_s26 + $0x50] sm:$0xff] }
 0x457   : > { %5838 = vst [vmem:[%s9945_s25] sm:$0xff] %v5806_v6  ;;  %v5807_v17 = vadd.f32 %v5775_v60, %v5743_v61  ;;  %v7393_v25 = vadd.f32 %v9801_v38, %v5457_v28  ;;  %v7223_v20 = vpop.f32.mrb[102].mxu1  ;;  %v5782_v61 = vld [vmem:[%s8187_s26 + $0x40] sm:$0xff] }
 0x458   : > { %5841 = vst [vmem:[%s9945_s25 + $0x18] sm:$0xff] %v5809_v42  ;;  %v5709_v1 = vmul.f32 %v7390_v46, %v9920_v36  ;;  %v7396_v8 = vadd.f32 %v9819_v9, %v7223_v20  ;;  %v5460_v26 = vpop.f32.mrb[103].mxu1  ;;  %v5785_v42 = vld [vmem:[%s8187_s26 + $0x58] sm:$0xff] }
 0x459   : > { %5839 = vst [vmem:[%s9945_s25 + $0x8] sm:$0xff] %v5807_v17  ;;  %v5707_v22 = vmul.f32 %v7393_v25, %v9920_v36  ;;  %v7399_v16 = vadd.f32 %v9807_v35, %v5460_v26  ;;  %v5783_v17 = vld [vmem:[%s8187_s26 + $0x48] sm:$0xff] }
 0x45a   : > { %v5748_v30 = vadd.f32 %v9926_v57, %v5709_v1  ;;  %v5710_v38 = vmul.f32 %v7396_v8, %v9920_v36 }
 0x45b   : > { %v5746_v41 = vadd.f32 %v9926_v57, %v5707_v22  ;;  %v5708_v9 = vmul.f32 %v7399_v16, %v9920_v36 }
 0x45c   : > { %v5812_v51 = vadd.f32 %v5780_v44, %v5748_v30  ;;  %v5749_v11 = vadd.f32 %v9926_v57, %v5710_v38 }
 0x45d   : > { %v5810_v55 = vadd.f32 %v5778_v59, %v5746_v41  ;;  %v5747_v35 = vadd.f32 %v9926_v57, %v5708_v9  ;;  %v7226_v27 = vpop.f32.mrb[104].mxu1  ;;  %v5788_v41 = vld [vmem:[%s8187_s26 + $0x70] sm:$0xff] }
 0x45e   : > { %5844 = vst [vmem:[%s9945_s25 + $0x30] sm:$0xff] %v5812_v51  ;;  %v5813_v13 = vadd.f32 %v5781_v19, %v5749_v11  ;;  %v7402_v52 = vadd.f32 %v9837_v24, %v7226_v27  ;;  %v5473_v34 = vpop.f32.mrb[105].mxu1  ;;  %v5786_v51 = vld [vmem:[%s8187_s26 + $0x60] sm:$0xff]  ;;  %v5787_v27 = vld [vmem:[%s8187_s26 + $0x68] sm:$0xff] }
 0x45f   : > { %5842 = vst [vmem:[%s9945_s25 + $0x20] sm:$0xff] %v5810_v55  ;;  %v5811_v7 = vadd.f32 %v5779_v23, %v5747_v35  ;;  %v7405_v50 = vadd.f32 %v9825_v0, %v5473_v34  ;;  %v7227_v47 = vpop.f32.mrb[106].mxu1  ;;  %v5789_v23 = vld [vmem:[%s8187_s26 + $0x78] sm:$0xff] }
 0x460   : > { %5845 = vst [vmem:[%s9945_s25 + $0x38] sm:$0xff] %v5813_v13  ;;  %v5713_v12 = vmul.f32 %v7402_v52, %v9920_v36  ;;  %v7408_v54 = vadd.f32 %v9843_v40, %v7227_v47  ;;  %v5476_v58 = vpop.f32.mrb[107].mxu1 }
 0x461   : > { %5843 = vst [vmem:[%s9945_s25 + $0x28] sm:$0xff] %v5811_v7  ;;  %v5711_v60 = vmul.f32 %v7405_v50, %v9920_v36  ;;  %v7411_v24 = vadd.f32 %v9831_v3, %v5476_v58 }
 0x462   : > { %v5752_v6 = vadd.f32 %v9926_v57, %v5713_v12  ;;  %v5714_v0 = vmul.f32 %v7408_v54, %v9920_v36 }
 0x463   : > { %v5750_v39 = vadd.f32 %v9926_v57, %v5711_v60  ;;  %v5712_v40 = vmul.f32 %v7411_v24, %v9920_v36  ;;  %v5792_v24 = vld [vmem:[%s8187_s26 + $0x90] sm:$0xff] }
 0x464   : > { %v5816_v46 = vadd.f32 %v5784_v33, %v5752_v6  ;;  %v5753_v28 = vadd.f32 %v9926_v57, %v5714_v0  ;;  %v5790_v0 = vld [vmem:[%s8187_s26 + $0x80] sm:$0xff] }
 0x465   : > { %v5814_v25 = vadd.f32 %v5782_v61, %v5750_v39  ;;  %v5751_v3 = vadd.f32 %v9926_v57, %v5712_v40  ;;  %v7230_v20 = vpop.f32.mrb[108].mxu1 }
 0x466   : > { %5848 = vst [vmem:[%s9945_s25 + $0x50] sm:$0xff] %v5816_v46  ;;  %v5817_v1 = vadd.f32 %v5785_v42, %v5753_v28  ;;  %v7414_v8 = vadd.f32 %v9861_v37, %v7230_v20  ;;  %v5489_v26 = vpop.f32.mrb[109].mxu1  ;;  %v5793_v42 = vld [vmem:[%s8187_s26 + $0x98] sm:$0xff]  ;;  %v5791_v28 = vld [vmem:[%s8187_s26 + $0x88] sm:$0xff] }
 0x467   : > { %5846 = vst [vmem:[%s9945_s25 + $0x40] sm:$0xff] %v5814_v25  ;;  %v5815_v44 = vadd.f32 %v5783_v17, %v5751_v3  ;;  %v7417_v22 = vadd.f32 %v9849_v32, %v5489_v26  ;;  %v7231_v16 = vpop.f32.mrb[110].mxu1 }
 0x468   : > { %5849 = vst [vmem:[%s9945_s25 + $0x58] sm:$0xff] %v5817_v1  ;;  %v5717_v30 = vmul.f32 %v7414_v8, %v9920_v36  ;;  %v7420_v59 = vadd.f32 %v9867_v21, %v7231_v16  ;;  %v5492_v38 = vpop.f32.mrb[111].mxu1 }
 0x469   : > { %5847 = vst [vmem:[%s9945_s25 + $0x48] sm:$0xff] %v5815_v44  ;;  %v5715_v19 = vmul.f32 %v7417_v22, %v9920_v36  ;;  %v7423_v37 = vadd.f32 %v9855_v14, %v5492_v38 }
 0x46a   : > { %v5756_v9 = vadd.f32 %v9926_v57, %v5717_v30  ;;  %v5718_v32 = vmul.f32 %v7420_v59, %v9920_v36  ;;  %v5796_v59 = vld [vmem:[%s8187_s26 + $0xb0] sm:$0xff] }
 0x46b   : > { %v5754_v11 = vadd.f32 %v9926_v57, %v5715_v19  ;;  %v5716_v21 = vmul.f32 %v7423_v37, %v9920_v36  ;;  %v5794_v19 = vld [vmem:[%s8187_s26 + $0xa0] sm:$0xff] }
 0x46c   : > { %v5820_v55 = vadd.f32 %v5788_v41, %v5756_v9  ;;  %v5757_v35 = vadd.f32 %v9926_v57, %v5718_v32  ;;  %v5797_v9 = vld [vmem:[%s8187_s26 + $0xb8] sm:$0xff] }
 0x46d   : > { %v5818_v13 = vadd.f32 %v5786_v51, %v5754_v11  ;;  %v5755_v14 = vadd.f32 %v9926_v57, %v5716_v21  ;;  %v7234_v52 = vpop.f32.mrb[112].mxu1  ;;  %v5795_v11 = vld [vmem:[%s8187_s26 + $0xa8] sm:$0xff] }
 0x46e   : > { %5852 = vst [vmem:[%s9945_s25 + $0x70] sm:$0xff] %v5820_v55  ;;  %v5821_v34 = vadd.f32 %v5789_v23, %v5757_v35  ;;  %v7426_v7 = vadd.f32 %v9876_v4, %v7234_v52  ;;  %v5505_v50 = vpop.f32.mrb[113].mxu1 }
 0x46f   : > { %5850 = vst [vmem:[%s9945_s25 + $0x60] sm:$0xff] %v5818_v13  ;;  %v5819_v47 = vadd.f32 %v5787_v27, %v5755_v14  ;;  %v7429_v12 = vadd.f32 %v9870_v48, %v5505_v50  ;;  %v7235_v54 = vpop.f32.mrb[114].mxu1 }
 0x470   : > { %5853 = vst [vmem:[%s9945_s25 + $0x78] sm:$0xff] %v5821_v34  ;;  %v5721_v58 = vmul.f32 %v7426_v7, %v9920_v36  ;;  %v7432_v33 = vadd.f32 %v9879_v62, %v7235_v54  ;;  %v5508_v60 = vpop.f32.mrb[115].mxu1 }
 0x471   : > { %5851 = vst [vmem:[%s9945_s25 + $0x68] sm:$0xff] %v5819_v47  ;;  %v5719_v6 = vmul.f32 %v7429_v12, %v9920_v36  ;;  %v7435_v4 = vadd.f32 %v9873_v56, %v5508_v60  ;;  %v5800_v47 = vld [vmem:[%s8187_s26 + $0xd0] sm:$0xff]  ;;  %v5801_v60 = vld [vmem:[%s8187_s26 + $0xd8] sm:$0xff] }
 0x472   : > { %v5760_v61 = vadd.f32 %v9926_v57, %v5721_v58  ;;  %v5722_v48 = vmul.f32 %v7432_v33, %v9920_v36  ;;  %v5798_v58 = vld [vmem:[%s8187_s26 + $0xc0] sm:$0xff] }
 0x473   : > { %v5758_v39 = vadd.f32 %v9926_v57, %v5719_v6  ;;  %v5720_v62 = vmul.f32 %v7435_v4, %v9920_v36  ;;  %v5799_v4 = vld [vmem:[%s8187_s26 + $0xc8] sm:$0xff] }
 0x474   : > { %v5824_v40 = vadd.f32 %v5792_v24, %v5760_v61  ;;  %v5761_v46 = vadd.f32 %v9926_v57, %v5722_v48 }
 0x475   : > { %v5822_v17 = vadd.f32 %v5790_v0, %v5758_v39  ;;  %v5759_v56 = vadd.f32 %v9926_v57, %v5720_v62  ;;  %v7238_v25 = vpop.f32.mrb[116].mxu1 }
 0x476   : > { %5856 = vst [vmem:[%s9945_s25 + $0x90] sm:$0xff] %v5824_v40  ;;  %v5825_v3 = vadd.f32 %v5793_v42, %v5761_v46  ;;  %v7438_v20 = vadd.f32 %v9888_v43, %v7238_v25  ;;  %v5521_v1 = vpop.f32.mrb[117].mxu1  ;;  %v5804_v25 = vld [vmem:[%s8187_s26 + $0xf0] sm:$0xff] }
 0x477   : > { %5854 = vst [vmem:[%s9945_s25 + $0x80] sm:$0xff] %v5822_v17  ;;  %v5823_v8 = vadd.f32 %v5791_v28, %v5759_v56  ;;  %v7441_v26 = vadd.f32 %v9882_v5, %v5521_v1  ;;  %v7239_v44 = vpop.f32.mrb[118].mxu1 }
 0x478   : > { %5857 = vst [vmem:[%s9945_s25 + $0x98] sm:$0xff] %v5825_v3  ;;  %v5725_v22 = vmul.f32 %v7438_v20, %v9920_v36  ;;  %v7444_v16 = vadd.f32 %v9891_v31, %v7239_v44  ;;  %v5524_v30 = vpop.f32.mrb[119].mxu1 }
 0x479   : > { %5855 = vst [vmem:[%s9945_s25 + $0x88] sm:$0xff] %v5823_v8  ;;  %v5723_v38 = vmul.f32 %v7441_v26, %v9920_v36  ;;  %v7447_v43 = vadd.f32 %v9885_v63, %v5524_v30  ;;  %v5805_v26 = vld [vmem:[%s8187_s26 + $0xf8] sm:$0xff] }
 0x47a   : > { %v5764_v41 = vadd.f32 %v9926_v57, %v5725_v22  ;;  %v5726_v5 = vmul.f32 %v7444_v16, %v9920_v36  ;;  %v5803_v22 = vld [vmem:[%s8187_s26 + $0xe8] sm:$0xff] }
 0x47b   : > { %v5762_v37 = vadd.f32 %v9926_v57, %v5723_v38  ;;  %v5724_v31 = vmul.f32 %v7447_v43, %v9920_v36 }
 0x47c   : > { %v5828_v51 = vadd.f32 %v5796_v59, %v5764_v41  ;;  %v5765_v32 = vadd.f32 %v9926_v57, %v5726_v5 }
 0x47d   : > { %v5826_v23 = vadd.f32 %v5794_v19, %v5762_v37  ;;  %v5763_v63 = vadd.f32 %v9926_v57, %v5724_v31  ;;  %v7242_v21 = vpop.f32.mrb[120].mxu1 }
 0x47e   : > { %5860 = vst [vmem:[%s9945_s25 + $0xb0] sm:$0xff] %v5828_v51  ;;  %v5829_v55 = vadd.f32 %v5797_v9, %v5765_v32  ;;  %v7450_v35 = vadd.f32 %v9900_v18, %v7242_v21  ;;  %v5537_v27 = vpop.f32.mrb[121].mxu1 }
 0x47f   : > { %5858 = vst [vmem:[%s9945_s25 + $0xa0] sm:$0xff] %v5826_v23  ;;  %v5827_v13 = vadd.f32 %v5795_v11, %v5763_v63  ;;  %v7453_v14 = vadd.f32 %v9894_v10, %v5537_v27  ;;  %v7243_v52 = vpop.f32.mrb[122].mxu1 }
 0x480   : > { %5861 = vst [vmem:[%s9945_s25 + $0xb8] sm:$0xff] %v5829_v55  ;;  %v5729_v34 = vmul.f32 %v7450_v35, %v9920_v36  ;;  %v7456_v7 = vadd.f32 %v9903_v15, %v7243_v52  ;;  %v5540_v50 = vpop.f32.mrb[123].mxu1 }
 0x481   : > { %5859 = vst [vmem:[%s9945_s25 + $0xa8] sm:$0xff] %v5827_v13  ;;  %v5727_v12 = vmul.f32 %v7453_v14, %v9920_v36  ;;  %v7459_v18 = vadd.f32 %v9897_v2, %v5540_v50 }
 0x482   : > { %v5768_v54 = vadd.f32 %v9926_v57, %v5729_v34  ;;  %v5730_v10 = vmul.f32 %v7456_v7, %v9920_v36 }
 0x483   : > { %v5766_v33 = vadd.f32 %v9926_v57, %v5727_v12  ;;  %v5728_v15 = vmul.f32 %v7459_v18, %v9920_v36 }
 0x484   : > { %v5832_v24 = vadd.f32 %v5800_v47, %v5768_v54  ;;  %v5769_v6 = vadd.f32 %v9926_v57, %v5730_v10 }
 0x485   : > { %v5830_v61 = vadd.f32 %v5798_v58, %v5766_v33  ;;  %v5767_v2 = vadd.f32 %v9926_v57, %v5728_v15  ;;  %v7246_v0 = vpop.f32.mrb[124].mxu1 }
 0x486   : > { %5864 = vst [vmem:[%s9945_s25 + $0xd0] sm:$0xff] %v5832_v24  ;;  %v5833_v48 = vadd.f32 %v5801_v60, %v5769_v6  ;;  %v7462_v39 = vadd.f32 %v9912_v45, %v7246_v0  ;;  %v5553_v42 = vpop.f32.mrb[125].mxu1 }
 0x487   : > { %5862 = vst [vmem:[%s9945_s25 + $0xc0] sm:$0xff] %v5830_v61  ;;  %v5831_v62 = vadd.f32 %v5799_v4, %v5767_v2  ;;  %v7465_v40 = vadd.f32 %v9906_v49, %v5553_v42  ;;  %v7247_v46 = vpop.f32.mrb[126].mxu1  ;;  %v5802_v49 = vld [vmem:[%s8187_s26 + $0xe0] sm:$0xff]  ;;  %s7877_s26 = scalar_lea.vmem %s10095_s16, 4096 }
 0x488   : > { %5865 = vst [vmem:[%s9945_s25 + $0xd8] sm:$0xff] %v5833_v48  ;;  %v5733_v28 = vmul.f32 %v7462_v39, %v9920_v36  ;;  %v7468_v17 = vadd.f32 %v9915_v53, %v7247_v46  ;;  %v5556_v56 = vpop.f32.mrb[127].mxu1  ;;  %p7878_p11 = scmp.ne.s32.totalorder %s10095_s16, %s7877_s26  ;;  %p7885_p9 = scmp.lt.s32.totalorder %s7883_s19, %s7877_s26 }
 0x489   : > { %5863 = vst [vmem:[%s9945_s25 + $0xc8] sm:$0xff] %v5831_v62  ;;  %v5731_v45 = vmul.f32 %v7465_v40, %v9920_v36  ;;  %v7471_v3 = vadd.f32 %v9909_v29, %v5556_v56 }
 0x48a   : > { %v5772_v20 = vadd.f32 %v9926_v57, %v5733_v28  ;;  %v5734_v1 = vmul.f32 %v7468_v17, %v9920_v36  ;;  %p7879_p1 = pnand %p7878_p11, %p10193_p0  ;;  %p7886_p12 = por %p7885_p9, %p7884_p7 }
 0x48b   : > { %v5770_v8 = vadd.f32 %v9926_v57, %v5731_v45  ;;  %v5732_v53 = vmul.f32 %v7471_v3, %v9920_v36 }
 0x48c   : > { %v5836_v44 = vadd.f32 %v5804_v25, %v5772_v20  ;;  %v5773_v29 = vadd.f32 %v9926_v57, %v5734_v1  ;;  %p7880_p3 = pneg %p7879_p1 }
 0x48d   : > { %v5834_v16 = vadd.f32 %v5802_v49, %v5770_v8  ;;  %v5771_v30 = vadd.f32 %v9926_v57, %v5732_v53 }
 0x48e   : > { %5868 = vst [vmem:[%s9945_s25 + $0xf0] sm:$0xff] %v5836_v44  ;;  %v5837_v59 = vadd.f32 %v5805_v26, %v5773_v29  ;;  %p7887_p2 = pnand %p7886_p12, %p7880_p3 }
 0x48f   : > { %5866 = vst [vmem:[%s9945_s25 + $0xe0] sm:$0xff] %v5834_v16  ;;  %v5835_v36 = vadd.f32 %v5803_v22, %v5771_v30 }
 0x490   : > { %5869 = vst [vmem:[%s9945_s25 + $0xf8] sm:$0xff] %v5837_v59 }
 0x491   : > { %5867 = vst [vmem:[%s9945_s25 + $0xe8] sm:$0xff] %v5835_v36 }
 0x492   : > { %7890 = shalt.err (!%p7887_p2)
}
 0x493   : > { %s7891_s23 = scalar_lea.hbm %s10093_s20, 4096  ;;  %s7895_s25 = scalar_lea.hbm %s10150_s8, 8192 }
 0x494   : > { %p7892_p13 = scmp.ne.s32.totalorder %s10093_s20, %s7891_s23  ;;  %p7896_p4 = scmp.lt.u32.totalorder %s10093_s20, %s10150_s8 }
 0x495   : > { %p7897_p5 = scmp.lt.u32.totalorder %s7895_s25, %s7891_s23  ;;  %p7899_p11 = scmp.lt.u32.totalorder %s7891_s23, %s10093_s20 }
 0x496   : > { %p7893_p6 = pnand %p7892_p13, %p10193_p0 }
 0x497   : > { %p7898_p8 = por %p7897_p5, %p7896_p4 }
 0x498   : > { %p7894_p10 = pneg %p7893_p6 }
 0x499   : > { %p7900_p1 = por %p7899_p11, %p7898_p8 }
 0x49b   : > { %p7901_p3 = pnand %p7900_p1, %p7894_p10 }
 0x49d   : > { %7904 = shalt.err (!%p7901_p3)
}
 0x49e   : > { %s7959_s15 = smov 128   ;;  %s7960_s26 = smov 8  }
 0x49f   : > { %7578 = dma.vmem_to_hbm [thread:$0]  (%p10193_p0), %s10095_s16, 4096, %s10093_s20, %s5871_s4, %s7959_s15, %s7959_s15, %s7960_s26  }
 0x4a0 PF: > { %s5899_s24 = sand.u32 1, %s7935_s29   ;;  %p10194_p7 = scmp.ne.s32.totalorder %s10155_s13, 0 }
 0x4a1   : > { %p10195_p9 = scmp.ge.s32.totalorder %s7947_s10, 2  ;;  %s5900_s17 = scalar_lea.sflag [#allocation7], %s5899_s24 }
 0x4a3   : > { %p7592_p12 = pnand %p10195_p9, %p10194_p7 }
 0x4a5   : > { %7930 = dma.done.wait (!%p7592_p12), %s5900_s17, 4096  }
 0x4a6   : > { %7932 = vsyncadd (!%p7592_p12), %s5900_s17, 4294963200  ;;  %p23_p2 = scmp.ge.s32.totalorder %s8119_s18, 4   ;;  %s10196_s29 = smov %s7939_s30 }
 0x4a7   : > { %s10197_s30 = smov %s7943_s9  ;;  %s10198_s9 = smov %s8135_s22 }
 0x4a8   : > { %s10199_s10 = smov %s8119_s18  ;;  %25 = sbr.rel (!%p23_p2) target bundleno = 8 (0x8), region = 112 }
 0x4af   :  { %5905 = vsyncpa [#allocation6], 1 }
 0x4b0   :  { %5907 = vsyncpa [#allocation6 + $0x1], 1 }
 0x4b1   :  { %5908 = vsyncpa [#allocation9], 1 }
 0x4b2   :  { %5909 = vsyncpa [#allocation7], 1 }
 0x4b3   :  { %5911 = vsyncpa [#allocation7 + $0x1], 1 }

</bundles_post_ra>
